<compile_context>
chip_gen: v6e
topology: v6e:2x2x1
jax: 0.10.0
libtpu: 0.0.40
codegen_flags: <defaults>
</compile_context>

<pallas_src>
import functools
import math

import jax
import jax.numpy as jnp
from jax import lax
from jax.experimental import pallas as pl
from jax.experimental.pallas import tpu as pltpu

# ------------------------- configuration (small, synthetic) -------------------------
N_WORDS   = 64      # vocab size
EMB_DIM   = 32      # decoder_embed_dim
N_HEADS   = 4       # decoder_attention_heads
FFN_DIM   = 64      # decoder_ffn_embed_dim
N_LAYERS  = 2       # decoder_layers
PAD_INDEX = 1
BOS_INDEX = 0
LN_EPS    = 1e-5

# vocab padded up to a lane-dense multiple of 128 for the projection output
V_PAD = max(128, ((N_WORDS + 127) // 128) * 128)


# =====================================================================================
# Fused Pallas kernel: all decoder layers + vocab projection for one batch element
# =====================================================================================
def fused_decoder_kernel(x_ref, enc_ref, pad_ref,
                         wqkv_s_ref, bqkv_s_ref, wo_s_ref, bo_s_ref,
                         wq_c_ref, bq_c_ref, wkv_c_ref, bkv_c_ref,
                         wo_c_ref, bo_c_ref,
                         w1_ref, b1_ref, w2_ref, b2_ref,
                         lnw_ref, lnb_ref,
                         pw_ref, pb_ref,
                         out_ref, *, n_heads, n_layers):
    """One grid step = one batch element; loops over all layers in-kernel.

    x_ref    : (T, D)      decoder input (scaled embeddings + positions)
    enc_ref  : (S, D)      encoder output
    pad_ref  : (1, S)      encoder key padding mask (1.0 = pad)
    stacked per-layer weights (leading axis = layer):
      wqkv_s (L,D,3D) bqkv_s (L,1,3D) wo_s (L,D,D) bo_s (L,1,D)        self-attn
      wq_c   (L,D,D)  bq_c   (L,1,D)  wkv_c (L,D,2D) bkv_c (L,1,2D)
      wo_c   (L,D,D)  bo_c   (L,1,D)                                   cross-attn
      w1 (L,D,F) b1 (L,1,F) w2 (L,F,D) b2 (L,1,D)                      FFN
      lnw/lnb (L,3,D)                                                  layer norms
    pw_ref   : (D, V_PAD)  pb_ref : (1, V_PAD)                          vocab proj
    out_ref  : (T, V_PAD)  logits (padded vocab)
    """
    x   = x_ref[...].astype(jnp.float32)          # (T, D)
    enc = enc_ref[...].astype(jnp.float32)        # (S, D)
    pad = pad_ref[...].astype(jnp.float32)        # (1, S)

    T, D = x.shape
    S = enc.shape[0]
    hd = D // n_heads
    scaling = hd ** -0.5

    # Attention biases: computed once per batch element, reused by every layer.
    row = lax.broadcasted_iota(jnp.int32, (T, T), 0)
    col = lax.broadcasted_iota(jnp.int32, (T, T), 1)
    causal_bias = jnp.where(col > row, -1e9, 0.0).astype(jnp.float32)[None, :, :]  # (1,T,T)
    enc_bias = jnp.where(pad > 0.5, -1e9, 0.0).astype(jnp.float32)[None, :, :]     # (1,1,S)

    def layer_norm(h, g, b):
        mu = jnp.mean(h, axis=-1, keepdims=True)
        var = jnp.mean((h - mu) ** 2, axis=-1, keepdims=True)
        return (h - mu) * lax.rsqrt(var + LN_EPS) * g + b

    def attention(q, k, v, bias):
        # q: (Tq, D), k/v: (Skv, D); all heads in one batched contraction.
        tq = q.shape[0]
        skv = k.shape[0]
        qh = q.reshape(tq, n_heads, hd)
        kh = k.reshape(skv, n_heads, hd)
        vh = v.reshape(skv, n_heads, hd)
        s = jnp.einsum('thd,shd->hts', qh, kh,
                       preferred_element_type=jnp.float32) * scaling + bias
        s = s - jnp.max(s, axis=-1, keepdims=True)
        p = jnp.exp(s)
        p = p * pl.reciprocal(jnp.sum(p, axis=-1, keepdims=True), approx=True)
        o = jnp.einsum('hts,shd->thd', p, vh, preferred_element_type=jnp.float32)
        return o.reshape(tq, n_heads * hd)

    h = x
    for l in range(n_layers):          # static unrolled loop; weights resident in VMEM
        lnw = lnw_ref[l]                # (3, D)
        lnb = lnb_ref[l]

        # ---------------- self-attention (causal) ----------------
        qkv = jnp.dot(h, wqkv_s_ref[l], preferred_element_type=jnp.float32) + bqkv_s_ref[l]
        q = qkv[:, 0:D]
        k = qkv[:, D:2 * D]
        v = qkv[:, 2 * D:3 * D]
        a = attention(q, k, v, causal_bias)
        a = jnp.dot(a, wo_s_ref[l], preferred_element_type=jnp.float32) + bo_s_ref[l]
        h = layer_norm(h + a, lnw[0:1, :], lnb[0:1, :])

        # ---------------- encoder-decoder attention ----------------
        q = jnp.dot(h, wq_c_ref[l], preferred_element_type=jnp.float32) + bq_c_ref[l]
        kv = jnp.dot(enc, wkv_c_ref[l], preferred_element_type=jnp.float32) + bkv_c_ref[l]
        k = kv[:, 0:D]
        v = kv[:, D:2 * D]
        a = attention(q, k, v, enc_bias)
        a = jnp.dot(a, wo_c_ref[l], preferred_element_type=jnp.float32) + bo_c_ref[l]
        h = layer_norm(h + a, lnw[1:2, :], lnb[1:2, :])

        # ---------------- feed-forward ----------------
        f = jnp.dot(h, w1_ref[l], preferred_element_type=jnp.float32) + b1_ref[l]
        f = jnp.maximum(f, 0.0)
        f = jnp.dot(f, w2_ref[l], preferred_element_type=jnp.float32) + b2_ref[l]
        h = layer_norm(h + f, lnw[2:3, :], lnb[2:3, :])

    # ---------------- fused vocab projection (lane-dense, V_PAD = 128k) -------------
    out_ref[...] = (jnp.dot(h, pw_ref[...], preferred_element_type=jnp.float32)
                    + pb_ref[...]).astype(out_ref.dtype)


# =====================================================================================
# pallas_call wrapper
# =====================================================================================
def run_fused_decoder(x_btd, enc_bsd, padm_b1s, stacked, proj_w_pad, proj_b_pad):
    """x_btd: (B,T,D), enc_bsd: (B,S,D), padm_b1s: (B,1,S) -> (B, T, V_PAD)."""
    B, T, D = x_btd.shape
    S = enc_bsd.shape[1]
    L = stacked['wqkv_s'].shape[0]
    F = stacked['fc1_w'].shape[2]
    Vp = proj_w_pad.shape[1]

    kernel = functools.partial(fused_decoder_kernel, n_heads=N_HEADS, n_layers=L)

    def rep_spec(shape):
        n = len(shape)
        return pl.BlockSpec(shape, lambda b: (0,) * n)   # same full block every step

    return pl.pallas_call(
        kernel,
        out_shape=jax.ShapeDtypeStruct((B, T, Vp), jnp.float32),
        grid=(B,),
        in_specs=[
            pl.BlockSpec((None, T, D), lambda b: (b, 0, 0)),   # x, per-batch tile
            pl.BlockSpec((None, S, D), lambda b: (b, 0, 0)),   # enc, per-batch tile
            pl.BlockSpec((None, 1, S), lambda b: (b, 0, 0)),   # pad mask
            rep_spec((L, D, 3 * D)),   # wqkv_s
            rep_spec((L, 1, 3 * D)),   # bqkv_s
            rep_spec((L, D, D)),       # wo_s
            rep_spec((L, 1, D)),       # bo_s
            rep_spec((L, D, D)),       # wq_c
            rep_spec((L, 1, D)),       # bq_c
            rep_spec((L, D, 2 * D)),   # wkv_c
            rep_spec((L, 1, 2 * D)),   # bkv_c
            rep_spec((L, D, D)),       # wo_c
            rep_spec((L, 1, D)),       # bo_c
            rep_spec((L, D, F)),       # fc1_w
            rep_spec((L, 1, F)),       # fc1_b
            rep_spec((L, F, D)),       # fc2_w
            rep_spec((L, 1, D)),       # fc2_b
            rep_spec((L, 3, D)),       # ln_w
            rep_spec((L, 3, D)),       # ln_b
            rep_spec((D, Vp)),         # proj_w (padded)
            rep_spec((1, Vp)),         # proj_b (padded)
        ],
        out_specs=pl.BlockSpec((None, T, Vp), lambda b: (b, 0, 0)),
        compiler_params=pltpu.CompilerParams(
            dimension_semantics=("parallel",)),   # megacore-shard batch on v7x
    )(x_btd, enc_bsd, padm_b1s,
      stacked['wqkv_s'], stacked['bqkv_s'], stacked['wo_s'], stacked['bo_s'],
      stacked['wq_c'], stacked['bq_c'], stacked['wkv_c'], stacked['bkv_c'],
      stacked['wo_c'], stacked['bo_c'],
      stacked['fc1_w'], stacked['fc1_b'], stacked['fc2_w'], stacked['fc2_b'],
      stacked['ln_w'], stacked['ln_b'],
      proj_w_pad, proj_b_pad)


# =====================================================================================
# Parameter construction + glue (embeddings, positions) in plain JAX
# =====================================================================================
def sinusoidal_table(num_embeddings, dim, padding_idx):
    half = dim // 2
    scale = math.log(10000.0) / (half - 1)
    freqs = jnp.exp(jnp.arange(half, dtype=jnp.float32) * -scale)
    pos = jnp.arange(num_embeddings, dtype=jnp.float32)[:, None] * freqs[None, :]
    table = jnp.concatenate([jnp.sin(pos), jnp.cos(pos)], axis=1)
    table = table.at[padding_idx].set(0.0)
    return table


def _xavier(key, shape):
    fan_in, fan_out = shape[-2], shape[-1]
    a = math.sqrt(6.0 / (fan_in + fan_out))
    return jax.random.uniform(key, shape, jnp.float32, -a, a)


def init_params(key):
    D, F, L = EMB_DIM, FFN_DIM, N_LAYERS
    keys = jax.random.split(key, 2 + L)

    # token embeddings: N(0, emb_dim**-0.5), pad row zero
    emb = jax.random.normal(keys[0], (N_WORDS, D), jnp.float32) * (D ** -0.5)
    emb = emb.at[PAD_INDEX].set(0.0)

    layers = []
    for i in range(L):
        lk = jax.random.split(keys[2 + i], 7)
        layers.append(dict(
            wqkv_s=_xavier(lk[0], (D, 3 * D)),               # fused self-attn QKV (x @ W)
            bqkv_s=jnp.zeros((1, 3 * D), jnp.float32),
            wo_s=_xavier(lk[1], (D, D)),
            bo_s=jnp.zeros((1, D), jnp.float32),
            wq_c=_xavier(lk[2], (D, D)),                     # cross-attn Q
            bq_c=jnp.zeros((1, D), jnp.float32),
            wkv_c=_xavier(lk[3], (D, 2 * D)),                # fused cross-attn KV
            bkv_c=jnp.zeros((1, 2 * D), jnp.float32),
            wo_c=_xavier(lk[4], (D, D)),
            bo_c=jnp.zeros((1, D), jnp.float32),
            fc1_w=_xavier(lk[5], (D, F)),
            fc1_b=jnp.zeros((1, F), jnp.float32),
            fc2_w=_xavier(lk[6], (F, D)),
            fc2_b=jnp.zeros((1, D), jnp.float32),
            ln_w=jnp.ones((3, D), jnp.float32),
            ln_b=jnp.zeros((3, D), jnp.float32),
        ))
    stacked = {k: jnp.stack([lp[k] for lp in layers], axis=0) for k in layers[0]}

    proj_w = _xavier(keys[1], (D, N_WORDS))
    proj_b = jnp.zeros((1, N_WORDS), jnp.float32)
    # pad vocab dimension to a multiple of 128 for lane-dense output stores
    proj_w_pad = jnp.zeros((D, V_PAD), jnp.float32).at[:, :N_WORDS].set(proj_w)
    proj_b_pad = jnp.zeros((1, V_PAD), jnp.float32).at[:, :N_WORDS].set(proj_b)

    return dict(
        embeddings=emb,
        pos_table=sinusoidal_table(1024 + PAD_INDEX + 1, D, PAD_INDEX),
        stacked=stacked,
        proj_w_pad=proj_w_pad,
        proj_b_pad=proj_b_pad,
    )


def transformer_decoder_forward(params, y, encoder_out, encoder_padding_mask, attr=None):
    """
    y                    : (T, B) int32 previous output tokens
    encoder_out          : (S, B, D) float32
    encoder_padding_mask : (B, S) float32, 1.0 = padded key position
    attr                 : unused (bos_attr == '' and bias_attr == '')
    returns logits       : (T, B, n_words)
    """
    T, B = y.shape
    D = EMB_DIM
    embed_scale = math.sqrt(D)

    # fairseq make_positions: pad positions keep padding_idx (zero embedding row),
    # non-pad positions get padding_idx + cumulative count of non-pad tokens.
    not_pad = (y != PAD_INDEX)
    pos_idx = jnp.where(not_pad,
                        PAD_INDEX + jnp.cumsum(not_pad.astype(jnp.int32), axis=0),
                        PAD_INDEX)                                    # (T, B)

    # Build activations directly in batch-major layout (no transpose of x).
    x_btd = (embed_scale * params['embeddings'][y.T]
             + params['pos_table'][pos_idx.T])                        # (B, T, D)
    # dropout: eval -> identity

    enc_bsd = jnp.transpose(encoder_out, (1, 0, 2))                   # (B, S, D)
    padm = encoder_padding_mask[:, None, :].astype(jnp.float32)       # (B, 1, S)

    out = run_fused_decoder(x_btd, enc_bsd, padm,
                            params['stacked'],
                            params['proj_w_pad'], params['proj_b_pad'])   # (B, T, V_PAD)

    logits = jnp.transpose(out[:, :, :N_WORDS], (1, 0, 2))            # (T, B, V)
    return logits


# =====================================================================================
if __name__ == "__main__":
    key = jax.random.PRNGKey(0)
    k_param, k_tok, k_enc = jax.random.split(key, 3)

    B, T, S = 2, 8, 8
    params = init_params(k_param)

    # decoder input tokens (T, B): row 0 = BOS, rest random non-pad tokens
    y = jax.random.randint(k_tok, (T, B), 3, N_WORDS, dtype=jnp.int32)
    y = y.at[0, :].set(BOS_INDEX)

    # encoder output (S, B, D) and padding mask (B, S): pad last 2 positions of batch 1
    encoder_out = jax.random.normal(k_enc, (S, B, EMB_DIM), jnp.float32)
    encoder_padding_mask = jnp.zeros((B, S), jnp.float32).at[1, S - 2:].set(1.0)

    # attr (B, n_attributes) — present for API fidelity, unused (bos/bias_attr == '')
    attr = jnp.zeros((B, 1), jnp.int32)

    logits = transformer_decoder_forward(params, y, encoder_out,
                                         encoder_padding_mask, attr)
    jax.block_until_ready(logits)
    assert logits.shape == (T, B, N_WORDS)
    assert bool(jnp.all(jnp.isfinite(logits)))
    print("KERNEL_OK")
</pallas_src>

<mosaic_0001>
module attributes {stable_mosaic.version = 11 : i64} {
  func.func @fused_decoder_kernel(%arg0: i32, %arg1: memref<1x8x32xf32, #tpu.memory_space<vmem>>, %arg2: memref<1x8x32xf32, #tpu.memory_space<vmem>>, %arg3: memref<1x1x8xf32, #tpu.memory_space<vmem>>, %arg4: memref<2x32x96xf32, #tpu.memory_space<vmem>>, %arg5: memref<2x1x96xf32, #tpu.memory_space<vmem>>, %arg6: memref<2x32x32xf32, #tpu.memory_space<vmem>>, %arg7: memref<2x1x32xf32, #tpu.memory_space<vmem>>, %arg8: memref<2x32x32xf32, #tpu.memory_space<vmem>>, %arg9: memref<2x1x32xf32, #tpu.memory_space<vmem>>, %arg10: memref<2x32x64xf32, #tpu.memory_space<vmem>>, %arg11: memref<2x1x64xf32, #tpu.memory_space<vmem>>, %arg12: memref<2x32x32xf32, #tpu.memory_space<vmem>>, %arg13: memref<2x1x32xf32, #tpu.memory_space<vmem>>, %arg14: memref<2x32x64xf32, #tpu.memory_space<vmem>>, %arg15: memref<2x1x64xf32, #tpu.memory_space<vmem>>, %arg16: memref<2x64x32xf32, #tpu.memory_space<vmem>>, %arg17: memref<2x1x32xf32, #tpu.memory_space<vmem>>, %arg18: memref<2x3x32xf32, #tpu.memory_space<vmem>>, %arg19: memref<2x3x32xf32, #tpu.memory_space<vmem>>, %arg20: memref<32x128xf32, #tpu.memory_space<vmem>>, %arg21: memref<1x128xf32, #tpu.memory_space<vmem>>, %arg22: memref<1x8x128xf32, #tpu.memory_space<vmem>>) attributes {dimension_semantics = [#tpu.dimension_semantics<parallel>], iteration_bounds = array<i64: 2>, scalar_prefetch = 0 : i64, scratch_operands = 0 : i64, tpu.core_type = #tpu.core_type<tc>, window_params = [{transform_indices = @transform_0, window_bounds = array<i64: 1, 8, 32>}, {transform_indices = @transform_1, window_bounds = array<i64: 1, 8, 32>}, {transform_indices = @transform_2, window_bounds = array<i64: 1, 1, 8>}, {pipeline_mode = #tpu.pipeline_mode<synchronous>, transform_indices = @transform_3, window_bounds = array<i64: 2, 32, 96>}, {pipeline_mode = #tpu.pipeline_mode<synchronous>, transform_indices = @transform_4, window_bounds = array<i64: 2, 1, 96>}, {pipeline_mode = #tpu.pipeline_mode<synchronous>, transform_indices = @transform_5, window_bounds = array<i64: 2, 32, 32>}, {pipeline_mode = #tpu.pipeline_mode<synchronous>, transform_indices = @transform_6, window_bounds = array<i64: 2, 1, 32>}, {pipeline_mode = #tpu.pipeline_mode<synchronous>, transform_indices = @transform_7, window_bounds = array<i64: 2, 32, 32>}, {pipeline_mode = #tpu.pipeline_mode<synchronous>, transform_indices = @transform_8, window_bounds = array<i64: 2, 1, 32>}, {pipeline_mode = #tpu.pipeline_mode<synchronous>, transform_indices = @transform_9, window_bounds = array<i64: 2, 32, 64>}, {pipeline_mode = #tpu.pipeline_mode<synchronous>, transform_indices = @transform_10, window_bounds = array<i64: 2, 1, 64>}, {pipeline_mode = #tpu.pipeline_mode<synchronous>, transform_indices = @transform_11, window_bounds = array<i64: 2, 32, 32>}, {pipeline_mode = #tpu.pipeline_mode<synchronous>, transform_indices = @transform_12, window_bounds = array<i64: 2, 1, 32>}, {pipeline_mode = #tpu.pipeline_mode<synchronous>, transform_indices = @transform_13, window_bounds = array<i64: 2, 32, 64>}, {pipeline_mode = #tpu.pipeline_mode<synchronous>, transform_indices = @transform_14, window_bounds = array<i64: 2, 1, 64>}, {pipeline_mode = #tpu.pipeline_mode<synchronous>, transform_indices = @transform_15, window_bounds = array<i64: 2, 64, 32>}, {pipeline_mode = #tpu.pipeline_mode<synchronous>, transform_indices = @transform_16, window_bounds = array<i64: 2, 1, 32>}, {pipeline_mode = #tpu.pipeline_mode<synchronous>, transform_indices = @transform_17, window_bounds = array<i64: 2, 3, 32>}, {pipeline_mode = #tpu.pipeline_mode<synchronous>, transform_indices = @transform_18, window_bounds = array<i64: 2, 3, 32>}, {pipeline_mode = #tpu.pipeline_mode<synchronous>, transform_indices = @transform_19, window_bounds = array<i64: 32, 128>}, {pipeline_mode = #tpu.pipeline_mode<synchronous>, transform_indices = @transform_20, window_bounds = array<i64: 1, 128>}, {transform_indices = @transform_21, window_bounds = array<i64: 1, 8, 128>}]} {
    %c0 = arith.constant 0 : index
    %c0_0 = arith.constant 0 : index
    %c0_1 = arith.constant 0 : index
    %0 = vector.load %arg1[%c0, %c0_0, %c0_1] : memref<1x8x32xf32, #tpu.memory_space<vmem>>, vector<1x8x32xf32>
    %1 = vector.shape_cast %0 : vector<1x8x32xf32> to vector<8x32xf32>
    %c0_2 = arith.constant 0 : index
    %c0_3 = arith.constant 0 : index
    %c0_4 = arith.constant 0 : index
    %2 = vector.load %arg2[%c0_2, %c0_3, %c0_4] : memref<1x8x32xf32, #tpu.memory_space<vmem>>, vector<1x8x32xf32>
    %3 = vector.shape_cast %2 : vector<1x8x32xf32> to vector<8x32xf32>
    %c0_5 = arith.constant 0 : index
    %c0_6 = arith.constant 0 : index
    %c0_7 = arith.constant 0 : index
    %4 = vector.load %arg3[%c0_5, %c0_6, %c0_7] : memref<1x1x8xf32, #tpu.memory_space<vmem>>, vector<1x1x8xf32>
    %5 = vector.shape_cast %4 : vector<1x1x8xf32> to vector<1x8xf32>
    %6 = tpu.iota {dimensions = array<i32: 0>} : vector<8x8xi32>
    %7 = tpu.iota {dimensions = array<i32: 1>} : vector<8x8xi32>
    %8 = arith.cmpi sgt, %7, %6 : vector<8x8xi32>
    %cst = arith.constant -1.000000e+09 : f32
    %cst_8 = arith.constant 0.000000e+00 : f32
    %9 = vector.broadcast %cst : f32 to vector<8x8xf32>
    %10 = vector.broadcast %cst_8 : f32 to vector<8x8xf32>
    %11 = arith.select %8, %9, %10 : vector<8x8xi1>, vector<8x8xf32>
    %12 = vector.shape_cast %11 : vector<8x8xf32> to vector<1x8x8xf32>
    %cst_9 = arith.constant 5.000000e-01 : f32
    %13 = vector.broadcast %cst_9 : f32 to vector<1x8xf32>
    %14 = arith.cmpf ogt, %5, %13 : vector<1x8xf32>
    %cst_10 = arith.constant -1.000000e+09 : f32
    %cst_11 = arith.constant 0.000000e+00 : f32
    %15 = vector.broadcast %cst_10 : f32 to vector<1x8xf32>
    %16 = vector.broadcast %cst_11 : f32 to vector<1x8xf32>
    %17 = arith.select %14, %15, %16 : vector<1x8xi1>, vector<1x8xf32>
    %18 = vector.shape_cast %17 : vector<1x8xf32> to vector<1x1x8xf32>
    %c0_12 = arith.constant 0 : index
    %c0_13 = arith.constant 0 : index
    %c0_14 = arith.constant 0 : index
    %19 = vector.load %arg18[%c0_12, %c0_13, %c0_14] : memref<2x3x32xf32, #tpu.memory_space<vmem>>, vector<1x3x32xf32>
    %20 = vector.shape_cast %19 : vector<1x3x32xf32> to vector<3x32xf32>
    %c0_15 = arith.constant 0 : index
    %c0_16 = arith.constant 0 : index
    %c0_17 = arith.constant 0 : index
    %21 = vector.load %arg19[%c0_15, %c0_16, %c0_17] : memref<2x3x32xf32, #tpu.memory_space<vmem>>, vector<1x3x32xf32>
    %22 = vector.shape_cast %21 : vector<1x3x32xf32> to vector<3x32xf32>
    %c0_18 = arith.constant 0 : index
    %c0_19 = arith.constant 0 : index
    %c0_20 = arith.constant 0 : index
    %23 = vector.load %arg4[%c0_18, %c0_19, %c0_20] : memref<2x32x96xf32, #tpu.memory_space<vmem>>, vector<1x32x96xf32>
    %24 = vector.shape_cast %23 : vector<1x32x96xf32> to vector<32x96xf32>
    %cst_21 = arith.constant dense<0.000000e+00> : vector<8x96xf32>
    %25 = tpu.matmul %1, %24, %cst_21 {dimension_numbers = #tpu.dot_dimension_numbers<[1], [0], [0], [1], [0, 0, 1, 1], [], []>} : vector<8x32xf32>, vector<32x96xf32>, vector<8x96xf32> -> vector<8x96xf32>
    %c0_22 = arith.constant 0 : index
    %c0_23 = arith.constant 0 : index
    %c0_24 = arith.constant 0 : index
    %26 = vector.load %arg5[%c0_22, %c0_23, %c0_24] : memref<2x1x96xf32, #tpu.memory_space<vmem>>, vector<1x1x96xf32>
    %27 = vector.shape_cast %26 : vector<1x1x96xf32> to vector<1x96xf32>
    %28 = vector.broadcast %27 : vector<1x96xf32> to vector<8x96xf32>
    %29 = arith.addf %25, %28 : vector<8x96xf32>
    %30 = vector.extract_strided_slice %29 {offsets = [0, 0], sizes = [8, 32], strides = [1, 1]} : vector<8x96xf32> to vector<8x32xf32>
    %31 = vector.extract_strided_slice %29 {offsets = [0, 32], sizes = [8, 32], strides = [1, 1]} : vector<8x96xf32> to vector<8x32xf32>
    %32 = vector.extract_strided_slice %29 {offsets = [0, 64], sizes = [8, 32], strides = [1, 1]} : vector<8x96xf32> to vector<8x32xf32>
    %33 = vector.shape_cast %30 : vector<8x32xf32> to vector<8x4x8xf32>
    %34 = vector.shape_cast %31 : vector<8x32xf32> to vector<8x4x8xf32>
    %35 = vector.shape_cast %32 : vector<8x32xf32> to vector<8x4x8xf32>
    "tpu.trace_start"() <{level = 10 : i32, message = "thd,shd->hts"}> : () -> ()
    %cst_25 = arith.constant dense<0.000000e+00> : vector<4x8x8xf32>
    %36 = tpu.matmul %33, %34, %cst_25 {dimension_numbers = #tpu.dot_dimension_numbers<[2], [2], [0], [0], [0, 1, 0, 0, 1, 0], [1], [1]>} : vector<8x4x8xf32>, vector<8x4x8xf32>, vector<4x8x8xf32> -> vector<4x8x8xf32>
    "tpu.trace_stop"() : () -> ()
    %cst_26 = arith.constant 0.353553385 : f32
    %37 = vector.broadcast %cst_26 : f32 to vector<4x8x8xf32>
    %38 = arith.mulf %36, %37 : vector<4x8x8xf32>
    %39 = vector.broadcast %12 : vector<1x8x8xf32> to vector<4x8x8xf32>
    %40 = arith.addf %38, %39 : vector<4x8x8xf32>
    %cst_27 = arith.constant dense<0xFF800000> : vector<4x8xf32>
    %41 = vector.multi_reduction <maximumf>, %40, %cst_27 [2] : vector<4x8x8xf32> to vector<4x8xf32>
    %42 = vector.shape_cast %41 : vector<4x8xf32> to vector<4x8x1xf32>
    %43 = vector.broadcast %42 : vector<4x8x1xf32> to vector<4x8x8xf32>
    %44 = arith.subf %40, %43 : vector<4x8x8xf32>
    %45 = math.exp %44 : vector<4x8x8xf32>
    %cst_28 = arith.constant dense<0.000000e+00> : vector<4x8xf32>
    %46 = vector.multi_reduction <add>, %45, %cst_28 [2] : vector<4x8x8xf32> to vector<4x8xf32>
    %47 = vector.shape_cast %46 : vector<4x8xf32> to vector<4x8x1xf32>
    %48 = tpu.reciprocal %47 {approx = true} : vector<4x8x1xf32> -> vector<4x8x1xf32>
    %49 = vector.broadcast %48 : vector<4x8x1xf32> to vector<4x8x8xf32>
    %50 = arith.mulf %45, %49 : vector<4x8x8xf32>
    "tpu.trace_start"() <{level = 10 : i32, message = "hts,shd->thd"}> : () -> ()
    %cst_29 = arith.constant dense<0.000000e+00> : vector<4x8x8xf32>
    %51 = tpu.matmul %35, %50, %cst_29 {dimension_numbers = #tpu.dot_dimension_numbers<[0], [2], [2], [1], [0, 1, 0, 2, 1, 1], [1], [0]>} : vector<8x4x8xf32>, vector<4x8x8xf32>, vector<4x8x8xf32> -> vector<4x8x8xf32>
    %52 = tpu.transpose %51, [2, 0, 1] : vector<4x8x8xf32> -> vector<8x4x8xf32>
    "tpu.trace_stop"() : () -> ()
    %53 = vector.shape_cast %52 : vector<8x4x8xf32> to vector<8x32xf32>
    %c0_30 = arith.constant 0 : index
    %c0_31 = arith.constant 0 : index
    %c0_32 = arith.constant 0 : index
    %54 = vector.load %arg6[%c0_30, %c0_31, %c0_32] : memref<2x32x32xf32, #tpu.memory_space<vmem>>, vector<1x32x32xf32>
    %55 = vector.shape_cast %54 : vector<1x32x32xf32> to vector<32x32xf32>
    %cst_33 = arith.constant dense<0.000000e+00> : vector<8x32xf32>
    %56 = tpu.matmul %53, %55, %cst_33 {dimension_numbers = #tpu.dot_dimension_numbers<[1], [0], [0], [1], [0, 0, 1, 1], [], []>} : vector<8x32xf32>, vector<32x32xf32>, vector<8x32xf32> -> vector<8x32xf32>
    %c0_34 = arith.constant 0 : index
    %c0_35 = arith.constant 0 : index
    %c0_36 = arith.constant 0 : index
    %57 = vector.load %arg7[%c0_34, %c0_35, %c0_36] : memref<2x1x32xf32, #tpu.memory_space<vmem>>, vector<1x1x32xf32>
    %58 = vector.shape_cast %57 : vector<1x1x32xf32> to vector<1x32xf32>
    %59 = vector.broadcast %58 : vector<1x32xf32> to vector<8x32xf32>
    %60 = arith.addf %56, %59 : vector<8x32xf32>
    %61 = arith.addf %1, %60 : vector<8x32xf32>
    %62 = vector.extract_strided_slice %20 {offsets = [0, 0], sizes = [1, 32], strides = [1, 1]} : vector<3x32xf32> to vector<1x32xf32>
    %63 = vector.extract_strided_slice %22 {offsets = [0, 0], sizes = [1, 32], strides = [1, 1]} : vector<3x32xf32> to vector<1x32xf32>
    %cst_37 = arith.constant dense<0.000000e+00> : vector<8xf32>
    %64 = vector.multi_reduction <add>, %61, %cst_37 [1] : vector<8x32xf32> to vector<8xf32>
    %65 = vector.shape_cast %64 : vector<8xf32> to vector<8x1xf32>
    %cst_38 = arith.constant 3.200000e+01 : f32
    %66 = vector.broadcast %cst_38 : f32 to vector<8x1xf32>
    %67 = arith.divf %65, %66 : vector<8x1xf32>
    %68 = vector.broadcast %67 : vector<8x1xf32> to vector<8x32xf32>
    %69 = arith.subf %61, %68 : vector<8x32xf32>
    %70 = arith.mulf %69, %69 : vector<8x32xf32>
    %cst_39 = arith.constant dense<0.000000e+00> : vector<8xf32>
    %71 = vector.multi_reduction <add>, %70, %cst_39 [1] : vector<8x32xf32> to vector<8xf32>
    %72 = vector.shape_cast %71 : vector<8xf32> to vector<8x1xf32>
    %cst_40 = arith.constant 3.200000e+01 : f32
    %73 = vector.broadcast %cst_40 : f32 to vector<8x1xf32>
    %74 = arith.divf %72, %73 : vector<8x1xf32>
    %75 = vector.broadcast %67 : vector<8x1xf32> to vector<8x32xf32>
    %76 = arith.subf %61, %75 : vector<8x32xf32>
    %cst_41 = arith.constant 9.99999974E-6 : f32
    %77 = vector.broadcast %cst_41 : f32 to vector<8x1xf32>
    %78 = arith.addf %74, %77 : vector<8x1xf32>
    %79 = math.rsqrt %78 : vector<8x1xf32>
    %80 = vector.broadcast %79 : vector<8x1xf32> to vector<8x32xf32>
    %81 = arith.mulf %76, %80 : vector<8x32xf32>
    %82 = vector.broadcast %62 : vector<1x32xf32> to vector<8x32xf32>
    %83 = arith.mulf %81, %82 : vector<8x32xf32>
    %84 = vector.broadcast %63 : vector<1x32xf32> to vector<8x32xf32>
    %85 = arith.addf %83, %84 : vector<8x32xf32>
    %c0_42 = arith.constant 0 : index
    %c0_43 = arith.constant 0 : index
    %c0_44 = arith.constant 0 : index
    %86 = vector.load %arg8[%c0_42, %c0_43, %c0_44] : memref<2x32x32xf32, #tpu.memory_space<vmem>>, vector<1x32x32xf32>
    %87 = vector.shape_cast %86 : vector<1x32x32xf32> to vector<32x32xf32>
    %cst_45 = arith.constant dense<0.000000e+00> : vector<8x32xf32>
    %88 = tpu.matmul %85, %87, %cst_45 {dimension_numbers = #tpu.dot_dimension_numbers<[1], [0], [0], [1], [0, 0, 1, 1], [], []>} : vector<8x32xf32>, vector<32x32xf32>, vector<8x32xf32> -> vector<8x32xf32>
    %c0_46 = arith.constant 0 : index
    %c0_47 = arith.constant 0 : index
    %c0_48 = arith.constant 0 : index
    %89 = vector.load %arg9[%c0_46, %c0_47, %c0_48] : memref<2x1x32xf32, #tpu.memory_space<vmem>>, vector<1x1x32xf32>
    %90 = vector.shape_cast %89 : vector<1x1x32xf32> to vector<1x32xf32>
    %91 = vector.broadcast %90 : vector<1x32xf32> to vector<8x32xf32>
    %92 = arith.addf %88, %91 : vector<8x32xf32>
    %c0_49 = arith.constant 0 : index
    %c0_50 = arith.constant 0 : index
    %c0_51 = arith.constant 0 : index
    %93 = vector.load %arg10[%c0_49, %c0_50, %c0_51] : memref<2x32x64xf32, #tpu.memory_space<vmem>>, vector<1x32x64xf32>
    %94 = vector.shape_cast %93 : vector<1x32x64xf32> to vector<32x64xf32>
    %cst_52 = arith.constant dense<0.000000e+00> : vector<8x64xf32>
    %95 = tpu.matmul %3, %94, %cst_52 {dimension_numbers = #tpu.dot_dimension_numbers<[1], [0], [0], [1], [0, 0, 1, 1], [], []>} : vector<8x32xf32>, vector<32x64xf32>, vector<8x64xf32> -> vector<8x64xf32>
    %c0_53 = arith.constant 0 : index
    %c0_54 = arith.constant 0 : index
    %c0_55 = arith.constant 0 : index
    %96 = vector.load %arg11[%c0_53, %c0_54, %c0_55] : memref<2x1x64xf32, #tpu.memory_space<vmem>>, vector<1x1x64xf32>
    %97 = vector.shape_cast %96 : vector<1x1x64xf32> to vector<1x64xf32>
    %98 = vector.broadcast %97 : vector<1x64xf32> to vector<8x64xf32>
    %99 = arith.addf %95, %98 : vector<8x64xf32>
    %100 = vector.extract_strided_slice %99 {offsets = [0, 0], sizes = [8, 32], strides = [1, 1]} : vector<8x64xf32> to vector<8x32xf32>
    %101 = vector.extract_strided_slice %99 {offsets = [0, 32], sizes = [8, 32], strides = [1, 1]} : vector<8x64xf32> to vector<8x32xf32>
    %102 = vector.shape_cast %92 : vector<8x32xf32> to vector<8x4x8xf32>
    %103 = vector.shape_cast %100 : vector<8x32xf32> to vector<8x4x8xf32>
    %104 = vector.shape_cast %101 : vector<8x32xf32> to vector<8x4x8xf32>
    "tpu.trace_start"() <{level = 10 : i32, message = "thd,shd->hts"}> : () -> ()
    %cst_56 = arith.constant dense<0.000000e+00> : vector<4x8x8xf32>
    %105 = tpu.matmul %102, %103, %cst_56 {dimension_numbers = #tpu.dot_dimension_numbers<[2], [2], [0], [0], [0, 1, 0, 0, 1, 0], [1], [1]>} : vector<8x4x8xf32>, vector<8x4x8xf32>, vector<4x8x8xf32> -> vector<4x8x8xf32>
    "tpu.trace_stop"() : () -> ()
    %cst_57 = arith.constant 0.353553385 : f32
    %106 = vector.broadcast %cst_57 : f32 to vector<4x8x8xf32>
    %107 = arith.mulf %105, %106 : vector<4x8x8xf32>
    %108 = vector.broadcast %18 : vector<1x1x8xf32> to vector<4x8x8xf32>
    %109 = arith.addf %107, %108 : vector<4x8x8xf32>
    %cst_58 = arith.constant dense<0xFF800000> : vector<4x8xf32>
    %110 = vector.multi_reduction <maximumf>, %109, %cst_58 [2] : vector<4x8x8xf32> to vector<4x8xf32>
    %111 = vector.shape_cast %110 : vector<4x8xf32> to vector<4x8x1xf32>
    %112 = vector.broadcast %111 : vector<4x8x1xf32> to vector<4x8x8xf32>
    %113 = arith.subf %109, %112 : vector<4x8x8xf32>
    %114 = math.exp %113 : vector<4x8x8xf32>
    %cst_59 = arith.constant dense<0.000000e+00> : vector<4x8xf32>
    %115 = vector.multi_reduction <add>, %114, %cst_59 [2] : vector<4x8x8xf32> to vector<4x8xf32>
    %116 = vector.shape_cast %115 : vector<4x8xf32> to vector<4x8x1xf32>
    %117 = tpu.reciprocal %116 {approx = true} : vector<4x8x1xf32> -> vector<4x8x1xf32>
    %118 = vector.broadcast %117 : vector<4x8x1xf32> to vector<4x8x8xf32>
    %119 = arith.mulf %114, %118 : vector<4x8x8xf32>
    "tpu.trace_start"() <{level = 10 : i32, message = "hts,shd->thd"}> : () -> ()
    %cst_60 = arith.constant dense<0.000000e+00> : vector<4x8x8xf32>
    %120 = tpu.matmul %104, %119, %cst_60 {dimension_numbers = #tpu.dot_dimension_numbers<[0], [2], [2], [1], [0, 1, 0, 2, 1, 1], [1], [0]>} : vector<8x4x8xf32>, vector<4x8x8xf32>, vector<4x8x8xf32> -> vector<4x8x8xf32>
    %121 = tpu.transpose %120, [2, 0, 1] : vector<4x8x8xf32> -> vector<8x4x8xf32>
    "tpu.trace_stop"() : () -> ()
    %122 = vector.shape_cast %121 : vector<8x4x8xf32> to vector<8x32xf32>
    %c0_61 = arith.constant 0 : index
    %c0_62 = arith.constant 0 : index
    %c0_63 = arith.constant 0 : index
    %123 = vector.load %arg12[%c0_61, %c0_62, %c0_63] : memref<2x32x32xf32, #tpu.memory_space<vmem>>, vector<1x32x32xf32>
    %124 = vector.shape_cast %123 : vector<1x32x32xf32> to vector<32x32xf32>
    %cst_64 = arith.constant dense<0.000000e+00> : vector<8x32xf32>
    %125 = tpu.matmul %122, %124, %cst_64 {dimension_numbers = #tpu.dot_dimension_numbers<[1], [0], [0], [1], [0, 0, 1, 1], [], []>} : vector<8x32xf32>, vector<32x32xf32>, vector<8x32xf32> -> vector<8x32xf32>
    %c0_65 = arith.constant 0 : index
    %c0_66 = arith.constant 0 : index
    %c0_67 = arith.constant 0 : index
    %126 = vector.load %arg13[%c0_65, %c0_66, %c0_67] : memref<2x1x32xf32, #tpu.memory_space<vmem>>, vector<1x1x32xf32>
    %127 = vector.shape_cast %126 : vector<1x1x32xf32> to vector<1x32xf32>
    %128 = vector.broadcast %127 : vector<1x32xf32> to vector<8x32xf32>
    %129 = arith.addf %125, %128 : vector<8x32xf32>
    %130 = arith.addf %85, %129 : vector<8x32xf32>
    %131 = vector.extract_strided_slice %20 {offsets = [1, 0], sizes = [1, 32], strides = [1, 1]} : vector<3x32xf32> to vector<1x32xf32>
    %132 = vector.extract_strided_slice %22 {offsets = [1, 0], sizes = [1, 32], strides = [1, 1]} : vector<3x32xf32> to vector<1x32xf32>
    %cst_68 = arith.constant dense<0.000000e+00> : vector<8xf32>
    %133 = vector.multi_reduction <add>, %130, %cst_68 [1] : vector<8x32xf32> to vector<8xf32>
    %134 = vector.shape_cast %133 : vector<8xf32> to vector<8x1xf32>
    %cst_69 = arith.constant 3.200000e+01 : f32
    %135 = vector.broadcast %cst_69 : f32 to vector<8x1xf32>
    %136 = arith.divf %134, %135 : vector<8x1xf32>
    %137 = vector.broadcast %136 : vector<8x1xf32> to vector<8x32xf32>
    %138 = arith.subf %130, %137 : vector<8x32xf32>
    %139 = arith.mulf %138, %138 : vector<8x32xf32>
    %cst_70 = arith.constant dense<0.000000e+00> : vector<8xf32>
    %140 = vector.multi_reduction <add>, %139, %cst_70 [1] : vector<8x32xf32> to vector<8xf32>
    %141 = vector.shape_cast %140 : vector<8xf32> to vector<8x1xf32>
    %cst_71 = arith.constant 3.200000e+01 : f32
    %142 = vector.broadcast %cst_71 : f32 to vector<8x1xf32>
    %143 = arith.divf %141, %142 : vector<8x1xf32>
    %144 = vector.broadcast %136 : vector<8x1xf32> to vector<8x32xf32>
    %145 = arith.subf %130, %144 : vector<8x32xf32>
    %cst_72 = arith.constant 9.99999974E-6 : f32
    %146 = vector.broadcast %cst_72 : f32 to vector<8x1xf32>
    %147 = arith.addf %143, %146 : vector<8x1xf32>
    %148 = math.rsqrt %147 : vector<8x1xf32>
    %149 = vector.broadcast %148 : vector<8x1xf32> to vector<8x32xf32>
    %150 = arith.mulf %145, %149 : vector<8x32xf32>
    %151 = vector.broadcast %131 : vector<1x32xf32> to vector<8x32xf32>
    %152 = arith.mulf %150, %151 : vector<8x32xf32>
    %153 = vector.broadcast %132 : vector<1x32xf32> to vector<8x32xf32>
    %154 = arith.addf %152, %153 : vector<8x32xf32>
    %c0_73 = arith.constant 0 : index
    %c0_74 = arith.constant 0 : index
    %c0_75 = arith.constant 0 : index
    %155 = vector.load %arg14[%c0_73, %c0_74, %c0_75] : memref<2x32x64xf32, #tpu.memory_space<vmem>>, vector<1x32x64xf32>
    %156 = vector.shape_cast %155 : vector<1x32x64xf32> to vector<32x64xf32>
    %cst_76 = arith.constant dense<0.000000e+00> : vector<8x64xf32>
    %157 = tpu.matmul %154, %156, %cst_76 {dimension_numbers = #tpu.dot_dimension_numbers<[1], [0], [0], [1], [0, 0, 1, 1], [], []>} : vector<8x32xf32>, vector<32x64xf32>, vector<8x64xf32> -> vector<8x64xf32>
    %c0_77 = arith.constant 0 : index
    %c0_78 = arith.constant 0 : index
    %c0_79 = arith.constant 0 : index
    %158 = vector.load %arg15[%c0_77, %c0_78, %c0_79] : memref<2x1x64xf32, #tpu.memory_space<vmem>>, vector<1x1x64xf32>
    %159 = vector.shape_cast %158 : vector<1x1x64xf32> to vector<1x64xf32>
    %160 = vector.broadcast %159 : vector<1x64xf32> to vector<8x64xf32>
    %161 = arith.addf %157, %160 : vector<8x64xf32>
    %cst_80 = arith.constant 0.000000e+00 : f32
    %162 = vector.broadcast %cst_80 : f32 to vector<8x64xf32>
    %163 = arith.maximumf %161, %162 : vector<8x64xf32>
    %c0_81 = arith.constant 0 : index
    %c0_82 = arith.constant 0 : index
    %c0_83 = arith.constant 0 : index
    %164 = vector.load %arg16[%c0_81, %c0_82, %c0_83] : memref<2x64x32xf32, #tpu.memory_space<vmem>>, vector<1x64x32xf32>
    %165 = vector.shape_cast %164 : vector<1x64x32xf32> to vector<64x32xf32>
    %cst_84 = arith.constant dense<0.000000e+00> : vector<8x32xf32>
    %166 = tpu.matmul %163, %165, %cst_84 {dimension_numbers = #tpu.dot_dimension_numbers<[1], [0], [0], [1], [0, 0, 1, 1], [], []>} : vector<8x64xf32>, vector<64x32xf32>, vector<8x32xf32> -> vector<8x32xf32>
    %c0_85 = arith.constant 0 : index
    %c0_86 = arith.constant 0 : index
    %c0_87 = arith.constant 0 : index
    %167 = vector.load %arg17[%c0_85, %c0_86, %c0_87] : memref<2x1x32xf32, #tpu.memory_space<vmem>>, vector<1x1x32xf32>
    %168 = vector.shape_cast %167 : vector<1x1x32xf32> to vector<1x32xf32>
    %169 = vector.broadcast %168 : vector<1x32xf32> to vector<8x32xf32>
    %170 = arith.addf %166, %169 : vector<8x32xf32>
    %171 = arith.addf %154, %170 : vector<8x32xf32>
    %172 = vector.extract_strided_slice %20 {offsets = [2, 0], sizes = [1, 32], strides = [1, 1]} : vector<3x32xf32> to vector<1x32xf32>
    %173 = vector.extract_strided_slice %22 {offsets = [2, 0], sizes = [1, 32], strides = [1, 1]} : vector<3x32xf32> to vector<1x32xf32>
    %cst_88 = arith.constant dense<0.000000e+00> : vector<8xf32>
    %174 = vector.multi_reduction <add>, %171, %cst_88 [1] : vector<8x32xf32> to vector<8xf32>
    %175 = vector.shape_cast %174 : vector<8xf32> to vector<8x1xf32>
    %cst_89 = arith.constant 3.200000e+01 : f32
    %176 = vector.broadcast %cst_89 : f32 to vector<8x1xf32>
    %177 = arith.divf %175, %176 : vector<8x1xf32>
    %178 = vector.broadcast %177 : vector<8x1xf32> to vector<8x32xf32>
    %179 = arith.subf %171, %178 : vector<8x32xf32>
    %180 = arith.mulf %179, %179 : vector<8x32xf32>
    %cst_90 = arith.constant dense<0.000000e+00> : vector<8xf32>
    %181 = vector.multi_reduction <add>, %180, %cst_90 [1] : vector<8x32xf32> to vector<8xf32>
    %182 = vector.shape_cast %181 : vector<8xf32> to vector<8x1xf32>
    %cst_91 = arith.constant 3.200000e+01 : f32
    %183 = vector.broadcast %cst_91 : f32 to vector<8x1xf32>
    %184 = arith.divf %182, %183 : vector<8x1xf32>
    %185 = vector.broadcast %177 : vector<8x1xf32> to vector<8x32xf32>
    %186 = arith.subf %171, %185 : vector<8x32xf32>
    %cst_92 = arith.constant 9.99999974E-6 : f32
    %187 = vector.broadcast %cst_92 : f32 to vector<8x1xf32>
    %188 = arith.addf %184, %187 : vector<8x1xf32>
    %189 = math.rsqrt %188 : vector<8x1xf32>
    %190 = vector.broadcast %189 : vector<8x1xf32> to vector<8x32xf32>
    %191 = arith.mulf %186, %190 : vector<8x32xf32>
    %192 = vector.broadcast %172 : vector<1x32xf32> to vector<8x32xf32>
    %193 = arith.mulf %191, %192 : vector<8x32xf32>
    %194 = vector.broadcast %173 : vector<1x32xf32> to vector<8x32xf32>
    %195 = arith.addf %193, %194 : vector<8x32xf32>
    %c1 = arith.constant 1 : index
    %c0_93 = arith.constant 0 : index
    %c0_94 = arith.constant 0 : index
    %196 = vector.load %arg18[%c1, %c0_93, %c0_94] : memref<2x3x32xf32, #tpu.memory_space<vmem>>, vector<1x3x32xf32>
    %197 = vector.shape_cast %196 : vector<1x3x32xf32> to vector<3x32xf32>
    %c1_95 = arith.constant 1 : index
    %c0_96 = arith.constant 0 : index
    %c0_97 = arith.constant 0 : index
    %198 = vector.load %arg19[%c1_95, %c0_96, %c0_97] : memref<2x3x32xf32, #tpu.memory_space<vmem>>, vector<1x3x32xf32>
    %199 = vector.shape_cast %198 : vector<1x3x32xf32> to vector<3x32xf32>
    %c1_98 = arith.constant 1 : index
    %c0_99 = arith.constant 0 : index
    %c0_100 = arith.constant 0 : index
    %200 = vector.load %arg4[%c1_98, %c0_99, %c0_100] : memref<2x32x96xf32, #tpu.memory_space<vmem>>, vector<1x32x96xf32>
    %201 = vector.shape_cast %200 : vector<1x32x96xf32> to vector<32x96xf32>
    %cst_101 = arith.constant dense<0.000000e+00> : vector<8x96xf32>
    %202 = tpu.matmul %195, %201, %cst_101 {dimension_numbers = #tpu.dot_dimension_numbers<[1], [0], [0], [1], [0, 0, 1, 1], [], []>} : vector<8x32xf32>, vector<32x96xf32>, vector<8x96xf32> -> vector<8x96xf32>
    %c1_102 = arith.constant 1 : index
    %c0_103 = arith.constant 0 : index
    %c0_104 = arith.constant 0 : index
    %203 = vector.load %arg5[%c1_102, %c0_103, %c0_104] : memref<2x1x96xf32, #tpu.memory_space<vmem>>, vector<1x1x96xf32>
    %204 = vector.shape_cast %203 : vector<1x1x96xf32> to vector<1x96xf32>
    %205 = vector.broadcast %204 : vector<1x96xf32> to vector<8x96xf32>
    %206 = arith.addf %202, %205 : vector<8x96xf32>
    %207 = vector.extract_strided_slice %206 {offsets = [0, 0], sizes = [8, 32], strides = [1, 1]} : vector<8x96xf32> to vector<8x32xf32>
    %208 = vector.extract_strided_slice %206 {offsets = [0, 32], sizes = [8, 32], strides = [1, 1]} : vector<8x96xf32> to vector<8x32xf32>
    %209 = vector.extract_strided_slice %206 {offsets = [0, 64], sizes = [8, 32], strides = [1, 1]} : vector<8x96xf32> to vector<8x32xf32>
    %210 = vector.shape_cast %207 : vector<8x32xf32> to vector<8x4x8xf32>
    %211 = vector.shape_cast %208 : vector<8x32xf32> to vector<8x4x8xf32>
    %212 = vector.shape_cast %209 : vector<8x32xf32> to vector<8x4x8xf32>
    "tpu.trace_start"() <{level = 10 : i32, message = "thd,shd->hts"}> : () -> ()
    %cst_105 = arith.constant dense<0.000000e+00> : vector<4x8x8xf32>
    %213 = tpu.matmul %210, %211, %cst_105 {dimension_numbers = #tpu.dot_dimension_numbers<[2], [2], [0], [0], [0, 1, 0, 0, 1, 0], [1], [1]>} : vector<8x4x8xf32>, vector<8x4x8xf32>, vector<4x8x8xf32> -> vector<4x8x8xf32>
    "tpu.trace_stop"() : () -> ()
    %cst_106 = arith.constant 0.353553385 : f32
    %214 = vector.broadcast %cst_106 : f32 to vector<4x8x8xf32>
    %215 = arith.mulf %213, %214 : vector<4x8x8xf32>
    %216 = vector.broadcast %12 : vector<1x8x8xf32> to vector<4x8x8xf32>
    %217 = arith.addf %215, %216 : vector<4x8x8xf32>
    %cst_107 = arith.constant dense<0xFF800000> : vector<4x8xf32>
    %218 = vector.multi_reduction <maximumf>, %217, %cst_107 [2] : vector<4x8x8xf32> to vector<4x8xf32>
    %219 = vector.shape_cast %218 : vector<4x8xf32> to vector<4x8x1xf32>
    %220 = vector.broadcast %219 : vector<4x8x1xf32> to vector<4x8x8xf32>
    %221 = arith.subf %217, %220 : vector<4x8x8xf32>
    %222 = math.exp %221 : vector<4x8x8xf32>
    %cst_108 = arith.constant dense<0.000000e+00> : vector<4x8xf32>
    %223 = vector.multi_reduction <add>, %222, %cst_108 [2] : vector<4x8x8xf32> to vector<4x8xf32>
    %224 = vector.shape_cast %223 : vector<4x8xf32> to vector<4x8x1xf32>
    %225 = tpu.reciprocal %224 {approx = true} : vector<4x8x1xf32> -> vector<4x8x1xf32>
    %226 = vector.broadcast %225 : vector<4x8x1xf32> to vector<4x8x8xf32>
    %227 = arith.mulf %222, %226 : vector<4x8x8xf32>
    "tpu.trace_start"() <{level = 10 : i32, message = "hts,shd->thd"}> : () -> ()
    %cst_109 = arith.constant dense<0.000000e+00> : vector<4x8x8xf32>
    %228 = tpu.matmul %212, %227, %cst_109 {dimension_numbers = #tpu.dot_dimension_numbers<[0], [2], [2], [1], [0, 1, 0, 2, 1, 1], [1], [0]>} : vector<8x4x8xf32>, vector<4x8x8xf32>, vector<4x8x8xf32> -> vector<4x8x8xf32>
    %229 = tpu.transpose %228, [2, 0, 1] : vector<4x8x8xf32> -> vector<8x4x8xf32>
    "tpu.trace_stop"() : () -> ()
    %230 = vector.shape_cast %229 : vector<8x4x8xf32> to vector<8x32xf32>
    %c1_110 = arith.constant 1 : index
    %c0_111 = arith.constant 0 : index
    %c0_112 = arith.constant 0 : index
    %231 = vector.load %arg6[%c1_110, %c0_111, %c0_112] : memref<2x32x32xf32, #tpu.memory_space<vmem>>, vector<1x32x32xf32>
    %232 = vector.shape_cast %231 : vector<1x32x32xf32> to vector<32x32xf32>
    %cst_113 = arith.constant dense<0.000000e+00> : vector<8x32xf32>
    %233 = tpu.matmul %230, %232, %cst_113 {dimension_numbers = #tpu.dot_dimension_numbers<[1], [0], [0], [1], [0, 0, 1, 1], [], []>} : vector<8x32xf32>, vector<32x32xf32>, vector<8x32xf32> -> vector<8x32xf32>
    %c1_114 = arith.constant 1 : index
    %c0_115 = arith.constant 0 : index
    %c0_116 = arith.constant 0 : index
    %234 = vector.load %arg7[%c1_114, %c0_115, %c0_116] : memref<2x1x32xf32, #tpu.memory_space<vmem>>, vector<1x1x32xf32>
    %235 = vector.shape_cast %234 : vector<1x1x32xf32> to vector<1x32xf32>
    %236 = vector.broadcast %235 : vector<1x32xf32> to vector<8x32xf32>
    %237 = arith.addf %233, %236 : vector<8x32xf32>
    %238 = arith.addf %195, %237 : vector<8x32xf32>
    %239 = vector.extract_strided_slice %197 {offsets = [0, 0], sizes = [1, 32], strides = [1, 1]} : vector<3x32xf32> to vector<1x32xf32>
    %240 = vector.extract_strided_slice %199 {offsets = [0, 0], sizes = [1, 32], strides = [1, 1]} : vector<3x32xf32> to vector<1x32xf32>
    %cst_117 = arith.constant dense<0.000000e+00> : vector<8xf32>
    %241 = vector.multi_reduction <add>, %238, %cst_117 [1] : vector<8x32xf32> to vector<8xf32>
    %242 = vector.shape_cast %241 : vector<8xf32> to vector<8x1xf32>
    %cst_118 = arith.constant 3.200000e+01 : f32
    %243 = vector.broadcast %cst_118 : f32 to vector<8x1xf32>
    %244 = arith.divf %242, %243 : vector<8x1xf32>
    %245 = vector.broadcast %244 : vector<8x1xf32> to vector<8x32xf32>
    %246 = arith.subf %238, %245 : vector<8x32xf32>
    %247 = arith.mulf %246, %246 : vector<8x32xf32>
    %cst_119 = arith.constant dense<0.000000e+00> : vector<8xf32>
    %248 = vector.multi_reduction <add>, %247, %cst_119 [1] : vector<8x32xf32> to vector<8xf32>
    %249 = vector.shape_cast %248 : vector<8xf32> to vector<8x1xf32>
    %cst_120 = arith.constant 3.200000e+01 : f32
    %250 = vector.broadcast %cst_120 : f32 to vector<8x1xf32>
    %251 = arith.divf %249, %250 : vector<8x1xf32>
    %252 = vector.broadcast %244 : vector<8x1xf32> to vector<8x32xf32>
    %253 = arith.subf %238, %252 : vector<8x32xf32>
    %cst_121 = arith.constant 9.99999974E-6 : f32
    %254 = vector.broadcast %cst_121 : f32 to vector<8x1xf32>
    %255 = arith.addf %251, %254 : vector<8x1xf32>
    %256 = math.rsqrt %255 : vector<8x1xf32>
    %257 = vector.broadcast %256 : vector<8x1xf32> to vector<8x32xf32>
    %258 = arith.mulf %253, %257 : vector<8x32xf32>
    %259 = vector.broadcast %239 : vector<1x32xf32> to vector<8x32xf32>
    %260 = arith.mulf %258, %259 : vector<8x32xf32>
    %261 = vector.broadcast %240 : vector<1x32xf32> to vector<8x32xf32>
    %262 = arith.addf %260, %261 : vector<8x32xf32>
    %c1_122 = arith.constant 1 : index
    %c0_123 = arith.constant 0 : index
    %c0_124 = arith.constant 0 : index
    %263 = vector.load %arg8[%c1_122, %c0_123, %c0_124] : memref<2x32x32xf32, #tpu.memory_space<vmem>>, vector<1x32x32xf32>
    %264 = vector.shape_cast %263 : vector<1x32x32xf32> to vector<32x32xf32>
    %cst_125 = arith.constant dense<0.000000e+00> : vector<8x32xf32>
    %265 = tpu.matmul %262, %264, %cst_125 {dimension_numbers = #tpu.dot_dimension_numbers<[1], [0], [0], [1], [0, 0, 1, 1], [], []>} : vector<8x32xf32>, vector<32x32xf32>, vector<8x32xf32> -> vector<8x32xf32>
    %c1_126 = arith.constant 1 : index
    %c0_127 = arith.constant 0 : index
    %c0_128 = arith.constant 0 : index
    %266 = vector.load %arg9[%c1_126, %c0_127, %c0_128] : memref<2x1x32xf32, #tpu.memory_space<vmem>>, vector<1x1x32xf32>
    %267 = vector.shape_cast %266 : vector<1x1x32xf32> to vector<1x32xf32>
    %268 = vector.broadcast %267 : vector<1x32xf32> to vector<8x32xf32>
    %269 = arith.addf %265, %268 : vector<8x32xf32>
    %c1_129 = arith.constant 1 : index
    %c0_130 = arith.constant 0 : index
    %c0_131 = arith.constant 0 : index
    %270 = vector.load %arg10[%c1_129, %c0_130, %c0_131] : memref<2x32x64xf32, #tpu.memory_space<vmem>>, vector<1x32x64xf32>
    %271 = vector.shape_cast %270 : vector<1x32x64xf32> to vector<32x64xf32>
    %cst_132 = arith.constant dense<0.000000e+00> : vector<8x64xf32>
    %272 = tpu.matmul %3, %271, %cst_132 {dimension_numbers = #tpu.dot_dimension_numbers<[1], [0], [0], [1], [0, 0, 1, 1], [], []>} : vector<8x32xf32>, vector<32x64xf32>, vector<8x64xf32> -> vector<8x64xf32>
    %c1_133 = arith.constant 1 : index
    %c0_134 = arith.constant 0 : index
    %c0_135 = arith.constant 0 : index
    %273 = vector.load %arg11[%c1_133, %c0_134, %c0_135] : memref<2x1x64xf32, #tpu.memory_space<vmem>>, vector<1x1x64xf32>
    %274 = vector.shape_cast %273 : vector<1x1x64xf32> to vector<1x64xf32>
    %275 = vector.broadcast %274 : vector<1x64xf32> to vector<8x64xf32>
    %276 = arith.addf %272, %275 : vector<8x64xf32>
    %277 = vector.extract_strided_slice %276 {offsets = [0, 0], sizes = [8, 32], strides = [1, 1]} : vector<8x64xf32> to vector<8x32xf32>
    %278 = vector.extract_strided_slice %276 {offsets = [0, 32], sizes = [8, 32], strides = [1, 1]} : vector<8x64xf32> to vector<8x32xf32>
    %279 = vector.shape_cast %269 : vector<8x32xf32> to vector<8x4x8xf32>
    %280 = vector.shape_cast %277 : vector<8x32xf32> to vector<8x4x8xf32>
    %281 = vector.shape_cast %278 : vector<8x32xf32> to vector<8x4x8xf32>
    "tpu.trace_start"() <{level = 10 : i32, message = "thd,shd->hts"}> : () -> ()
    %cst_136 = arith.constant dense<0.000000e+00> : vector<4x8x8xf32>
    %282 = tpu.matmul %279, %280, %cst_136 {dimension_numbers = #tpu.dot_dimension_numbers<[2], [2], [0], [0], [0, 1, 0, 0, 1, 0], [1], [1]>} : vector<8x4x8xf32>, vector<8x4x8xf32>, vector<4x8x8xf32> -> vector<4x8x8xf32>
    "tpu.trace_stop"() : () -> ()
    %cst_137 = arith.constant 0.353553385 : f32
    %283 = vector.broadcast %cst_137 : f32 to vector<4x8x8xf32>
    %284 = arith.mulf %282, %283 : vector<4x8x8xf32>
    %285 = vector.broadcast %18 : vector<1x1x8xf32> to vector<4x8x8xf32>
    %286 = arith.addf %284, %285 : vector<4x8x8xf32>
    %cst_138 = arith.constant dense<0xFF800000> : vector<4x8xf32>
    %287 = vector.multi_reduction <maximumf>, %286, %cst_138 [2] : vector<4x8x8xf32> to vector<4x8xf32>
    %288 = vector.shape_cast %287 : vector<4x8xf32> to vector<4x8x1xf32>
    %289 = vector.broadcast %288 : vector<4x8x1xf32> to vector<4x8x8xf32>
    %290 = arith.subf %286, %289 : vector<4x8x8xf32>
    %291 = math.exp %290 : vector<4x8x8xf32>
    %cst_139 = arith.constant dense<0.000000e+00> : vector<4x8xf32>
    %292 = vector.multi_reduction <add>, %291, %cst_139 [2] : vector<4x8x8xf32> to vector<4x8xf32>
    %293 = vector.shape_cast %292 : vector<4x8xf32> to vector<4x8x1xf32>
    %294 = tpu.reciprocal %293 {approx = true} : vector<4x8x1xf32> -> vector<4x8x1xf32>
    %295 = vector.broadcast %294 : vector<4x8x1xf32> to vector<4x8x8xf32>
    %296 = arith.mulf %291, %295 : vector<4x8x8xf32>
    "tpu.trace_start"() <{level = 10 : i32, message = "hts,shd->thd"}> : () -> ()
    %cst_140 = arith.constant dense<0.000000e+00> : vector<4x8x8xf32>
    %297 = tpu.matmul %281, %296, %cst_140 {dimension_numbers = #tpu.dot_dimension_numbers<[0], [2], [2], [1], [0, 1, 0, 2, 1, 1], [1], [0]>} : vector<8x4x8xf32>, vector<4x8x8xf32>, vector<4x8x8xf32> -> vector<4x8x8xf32>
    %298 = tpu.transpose %297, [2, 0, 1] : vector<4x8x8xf32> -> vector<8x4x8xf32>
    "tpu.trace_stop"() : () -> ()
    %299 = vector.shape_cast %298 : vector<8x4x8xf32> to vector<8x32xf32>
    %c1_141 = arith.constant 1 : index
    %c0_142 = arith.constant 0 : index
    %c0_143 = arith.constant 0 : index
    %300 = vector.load %arg12[%c1_141, %c0_142, %c0_143] : memref<2x32x32xf32, #tpu.memory_space<vmem>>, vector<1x32x32xf32>
    %301 = vector.shape_cast %300 : vector<1x32x32xf32> to vector<32x32xf32>
    %cst_144 = arith.constant dense<0.000000e+00> : vector<8x32xf32>
    %302 = tpu.matmul %299, %301, %cst_144 {dimension_numbers = #tpu.dot_dimension_numbers<[1], [0], [0], [1], [0, 0, 1, 1], [], []>} : vector<8x32xf32>, vector<32x32xf32>, vector<8x32xf32> -> vector<8x32xf32>
    %c1_145 = arith.constant 1 : index
    %c0_146 = arith.constant 0 : index
    %c0_147 = arith.constant 0 : index
    %303 = vector.load %arg13[%c1_145, %c0_146, %c0_147] : memref<2x1x32xf32, #tpu.memory_space<vmem>>, vector<1x1x32xf32>
    %304 = vector.shape_cast %303 : vector<1x1x32xf32> to vector<1x32xf32>
    %305 = vector.broadcast %304 : vector<1x32xf32> to vector<8x32xf32>
    %306 = arith.addf %302, %305 : vector<8x32xf32>
    %307 = arith.addf %262, %306 : vector<8x32xf32>
    %308 = vector.extract_strided_slice %197 {offsets = [1, 0], sizes = [1, 32], strides = [1, 1]} : vector<3x32xf32> to vector<1x32xf32>
    %309 = vector.extract_strided_slice %199 {offsets = [1, 0], sizes = [1, 32], strides = [1, 1]} : vector<3x32xf32> to vector<1x32xf32>
    %cst_148 = arith.constant dense<0.000000e+00> : vector<8xf32>
    %310 = vector.multi_reduction <add>, %307, %cst_148 [1] : vector<8x32xf32> to vector<8xf32>
    %311 = vector.shape_cast %310 : vector<8xf32> to vector<8x1xf32>
    %cst_149 = arith.constant 3.200000e+01 : f32
    %312 = vector.broadcast %cst_149 : f32 to vector<8x1xf32>
    %313 = arith.divf %311, %312 : vector<8x1xf32>
    %314 = vector.broadcast %313 : vector<8x1xf32> to vector<8x32xf32>
    %315 = arith.subf %307, %314 : vector<8x32xf32>
    %316 = arith.mulf %315, %315 : vector<8x32xf32>
    %cst_150 = arith.constant dense<0.000000e+00> : vector<8xf32>
    %317 = vector.multi_reduction <add>, %316, %cst_150 [1] : vector<8x32xf32> to vector<8xf32>
    %318 = vector.shape_cast %317 : vector<8xf32> to vector<8x1xf32>
    %cst_151 = arith.constant 3.200000e+01 : f32
    %319 = vector.broadcast %cst_151 : f32 to vector<8x1xf32>
    %320 = arith.divf %318, %319 : vector<8x1xf32>
    %321 = vector.broadcast %313 : vector<8x1xf32> to vector<8x32xf32>
    %322 = arith.subf %307, %321 : vector<8x32xf32>
    %cst_152 = arith.constant 9.99999974E-6 : f32
    %323 = vector.broadcast %cst_152 : f32 to vector<8x1xf32>
    %324 = arith.addf %320, %323 : vector<8x1xf32>
    %325 = math.rsqrt %324 : vector<8x1xf32>
    %326 = vector.broadcast %325 : vector<8x1xf32> to vector<8x32xf32>
    %327 = arith.mulf %322, %326 : vector<8x32xf32>
    %328 = vector.broadcast %308 : vector<1x32xf32> to vector<8x32xf32>
    %329 = arith.mulf %327, %328 : vector<8x32xf32>
    %330 = vector.broadcast %309 : vector<1x32xf32> to vector<8x32xf32>
    %331 = arith.addf %329, %330 : vector<8x32xf32>
    %c1_153 = arith.constant 1 : index
    %c0_154 = arith.constant 0 : index
    %c0_155 = arith.constant 0 : index
    %332 = vector.load %arg14[%c1_153, %c0_154, %c0_155] : memref<2x32x64xf32, #tpu.memory_space<vmem>>, vector<1x32x64xf32>
    %333 = vector.shape_cast %332 : vector<1x32x64xf32> to vector<32x64xf32>
    %cst_156 = arith.constant dense<0.000000e+00> : vector<8x64xf32>
    %334 = tpu.matmul %331, %333, %cst_156 {dimension_numbers = #tpu.dot_dimension_numbers<[1], [0], [0], [1], [0, 0, 1, 1], [], []>} : vector<8x32xf32>, vector<32x64xf32>, vector<8x64xf32> -> vector<8x64xf32>
    %c1_157 = arith.constant 1 : index
    %c0_158 = arith.constant 0 : index
    %c0_159 = arith.constant 0 : index
    %335 = vector.load %arg15[%c1_157, %c0_158, %c0_159] : memref<2x1x64xf32, #tpu.memory_space<vmem>>, vector<1x1x64xf32>
    %336 = vector.shape_cast %335 : vector<1x1x64xf32> to vector<1x64xf32>
    %337 = vector.broadcast %336 : vector<1x64xf32> to vector<8x64xf32>
    %338 = arith.addf %334, %337 : vector<8x64xf32>
    %cst_160 = arith.constant 0.000000e+00 : f32
    %339 = vector.broadcast %cst_160 : f32 to vector<8x64xf32>
    %340 = arith.maximumf %338, %339 : vector<8x64xf32>
    %c1_161 = arith.constant 1 : index
    %c0_162 = arith.constant 0 : index
    %c0_163 = arith.constant 0 : index
    %341 = vector.load %arg16[%c1_161, %c0_162, %c0_163] : memref<2x64x32xf32, #tpu.memory_space<vmem>>, vector<1x64x32xf32>
    %342 = vector.shape_cast %341 : vector<1x64x32xf32> to vector<64x32xf32>
    %cst_164 = arith.constant dense<0.000000e+00> : vector<8x32xf32>
    %343 = tpu.matmul %340, %342, %cst_164 {dimension_numbers = #tpu.dot_dimension_numbers<[1], [0], [0], [1], [0, 0, 1, 1], [], []>} : vector<8x64xf32>, vector<64x32xf32>, vector<8x32xf32> -> vector<8x32xf32>
    %c1_165 = arith.constant 1 : index
    %c0_166 = arith.constant 0 : index
    %c0_167 = arith.constant 0 : index
    %344 = vector.load %arg17[%c1_165, %c0_166, %c0_167] : memref<2x1x32xf32, #tpu.memory_space<vmem>>, vector<1x1x32xf32>
    %345 = vector.shape_cast %344 : vector<1x1x32xf32> to vector<1x32xf32>
    %346 = vector.broadcast %345 : vector<1x32xf32> to vector<8x32xf32>
    %347 = arith.addf %343, %346 : vector<8x32xf32>
    %348 = arith.addf %331, %347 : vector<8x32xf32>
    %349 = vector.extract_strided_slice %197 {offsets = [2, 0], sizes = [1, 32], strides = [1, 1]} : vector<3x32xf32> to vector<1x32xf32>
    %350 = vector.extract_strided_slice %199 {offsets = [2, 0], sizes = [1, 32], strides = [1, 1]} : vector<3x32xf32> to vector<1x32xf32>
    %cst_168 = arith.constant dense<0.000000e+00> : vector<8xf32>
    %351 = vector.multi_reduction <add>, %348, %cst_168 [1] : vector<8x32xf32> to vector<8xf32>
    %352 = vector.shape_cast %351 : vector<8xf32> to vector<8x1xf32>
    %cst_169 = arith.constant 3.200000e+01 : f32
    %353 = vector.broadcast %cst_169 : f32 to vector<8x1xf32>
    %354 = arith.divf %352, %353 : vector<8x1xf32>
    %355 = vector.broadcast %354 : vector<8x1xf32> to vector<8x32xf32>
    %356 = arith.subf %348, %355 : vector<8x32xf32>
    %357 = arith.mulf %356, %356 : vector<8x32xf32>
    %cst_170 = arith.constant dense<0.000000e+00> : vector<8xf32>
    %358 = vector.multi_reduction <add>, %357, %cst_170 [1] : vector<8x32xf32> to vector<8xf32>
    %359 = vector.shape_cast %358 : vector<8xf32> to vector<8x1xf32>
    %cst_171 = arith.constant 3.200000e+01 : f32
    %360 = vector.broadcast %cst_171 : f32 to vector<8x1xf32>
    %361 = arith.divf %359, %360 : vector<8x1xf32>
    %362 = vector.broadcast %354 : vector<8x1xf32> to vector<8x32xf32>
    %363 = arith.subf %348, %362 : vector<8x32xf32>
    %cst_172 = arith.constant 9.99999974E-6 : f32
    %364 = vector.broadcast %cst_172 : f32 to vector<8x1xf32>
    %365 = arith.addf %361, %364 : vector<8x1xf32>
    %366 = math.rsqrt %365 : vector<8x1xf32>
    %367 = vector.broadcast %366 : vector<8x1xf32> to vector<8x32xf32>
    %368 = arith.mulf %363, %367 : vector<8x32xf32>
    %369 = vector.broadcast %349 : vector<1x32xf32> to vector<8x32xf32>
    %370 = arith.mulf %368, %369 : vector<8x32xf32>
    %371 = vector.broadcast %350 : vector<1x32xf32> to vector<8x32xf32>
    %372 = arith.addf %370, %371 : vector<8x32xf32>
    %c0_173 = arith.constant 0 : index
    %c0_174 = arith.constant 0 : index
    %373 = vector.load %arg20[%c0_173, %c0_174] : memref<32x128xf32, #tpu.memory_space<vmem>>, vector<32x128xf32>
    %cst_175 = arith.constant dense<0.000000e+00> : vector<8x128xf32>
    %374 = tpu.matmul %372, %373, %cst_175 {dimension_numbers = #tpu.dot_dimension_numbers<[1], [0], [0], [1], [0, 0, 1, 1], [], []>} : vector<8x32xf32>, vector<32x128xf32>, vector<8x128xf32> -> vector<8x128xf32>
    %c0_176 = arith.constant 0 : index
    %c0_177 = arith.constant 0 : index
    %375 = vector.load %arg21[%c0_176, %c0_177] : memref<1x128xf32, #tpu.memory_space<vmem>>, vector<1x128xf32>
    %376 = vector.broadcast %375 : vector<1x128xf32> to vector<8x128xf32>
    %377 = arith.addf %374, %376 : vector<8x128xf32>
    %c0_178 = arith.constant 0 : index
    %c0_179 = arith.constant 0 : index
    %c0_180 = arith.constant 0 : index
    %378 = vector.load %arg22[%c0_178, %c0_179, %c0_180] : memref<1x8x128xf32, #tpu.memory_space<vmem>>, vector<1x8x128xf32>
    %379 = vector.shape_cast %378 : vector<1x8x128xf32> to vector<8x128xf32>
    %380 = vector.shape_cast %377 : vector<8x128xf32> to vector<1x8x128xf32>
    tpu.vector_store %arg22[%c0_178, %c0_179, %c0_180], %380 {strides = array<i32>} : memref<1x8x128xf32, #tpu.memory_space<vmem>>, vector<1x8x128xf32>,
    return
  }
  func.func @transform_0(%arg0: i32) -> (i32, i32, i32) {
    %c0_i32 = arith.constant 0 : i32
    %c0_i32_0 = arith.constant 0 : i32
    %c0_i32_1 = arith.constant 0 : i32
    return %arg0, %c0_i32, %c0_i32_0 : i32, i32, i32
  }
  func.func @transform_1(%arg0: i32) -> (i32, i32, i32) {
    %c0_i32 = arith.constant 0 : i32
    %c0_i32_0 = arith.constant 0 : i32
    %c0_i32_1 = arith.constant 0 : i32
    return %arg0, %c0_i32, %c0_i32_0 : i32, i32, i32
  }
  func.func @transform_2(%arg0: i32) -> (i32, i32, i32) {
    %c0_i32 = arith.constant 0 : i32
    %c0_i32_0 = arith.constant 0 : i32
    %c0_i32_1 = arith.constant 0 : i32
    return %arg0, %c0_i32, %c0_i32_0 : i32, i32, i32
  }
  func.func @transform_3(%arg0: i32) -> (i32, i32, i32) {
    %c0_i32 = arith.constant 0 : i32
    %c0_i32_0 = arith.constant 0 : i32
    %c0_i32_1 = arith.constant 0 : i32
    %c0_i32_2 = arith.constant 0 : i32
    return %c0_i32, %c0_i32_0, %c0_i32_1 : i32, i32, i32
  }
  func.func @transform_4(%arg0: i32) -> (i32, i32, i32) {
    %c0_i32 = arith.constant 0 : i32
    %c0_i32_0 = arith.constant 0 : i32
    %c0_i32_1 = arith.constant 0 : i32
    %c0_i32_2 = arith.constant 0 : i32
    return %c0_i32, %c0_i32_0, %c0_i32_1 : i32, i32, i32
  }
  func.func @transform_5(%arg0: i32) -> (i32, i32, i32) {
    %c0_i32 = arith.constant 0 : i32
    %c0_i32_0 = arith.constant 0 : i32
    %c0_i32_1 = arith.constant 0 : i32
    %c0_i32_2 = arith.constant 0 : i32
    return %c0_i32, %c0_i32_0, %c0_i32_1 : i32, i32, i32
  }
  func.func @transform_6(%arg0: i32) -> (i32, i32, i32) {
    %c0_i32 = arith.constant 0 : i32
    %c0_i32_0 = arith.constant 0 : i32
    %c0_i32_1 = arith.constant 0 : i32
    %c0_i32_2 = arith.constant 0 : i32
    return %c0_i32, %c0_i32_0, %c0_i32_1 : i32, i32, i32
  }
  func.func @transform_7(%arg0: i32) -> (i32, i32, i32) {
    %c0_i32 = arith.constant 0 : i32
    %c0_i32_0 = arith.constant 0 : i32
    %c0_i32_1 = arith.constant 0 : i32
    %c0_i32_2 = arith.constant 0 : i32
    return %c0_i32, %c0_i32_0, %c0_i32_1 : i32, i32, i32
  }
  func.func @transform_8(%arg0: i32) -> (i32, i32, i32) {
    %c0_i32 = arith.constant 0 : i32
    %c0_i32_0 = arith.constant 0 : i32
    %c0_i32_1 = arith.constant 0 : i32
    %c0_i32_2 = arith.constant 0 : i32
    return %c0_i32, %c0_i32_0, %c0_i32_1 : i32, i32, i32
  }
  func.func @transform_9(%arg0: i32) -> (i32, i32, i32) {
    %c0_i32 = arith.constant 0 : i32
    %c0_i32_0 = arith.constant 0 : i32
    %c0_i32_1 = arith.constant 0 : i32
    %c0_i32_2 = arith.constant 0 : i32
    return %c0_i32, %c0_i32_0, %c0_i32_1 : i32, i32, i32
  }
  func.func @transform_10(%arg0: i32) -> (i32, i32, i32) {
    %c0_i32 = arith.constant 0 : i32
    %c0_i32_0 = arith.constant 0 : i32
    %c0_i32_1 = arith.constant 0 : i32
    %c0_i32_2 = arith.constant 0 : i32
    return %c0_i32, %c0_i32_0, %c0_i32_1 : i32, i32, i32
  }
  func.func @transform_11(%arg0: i32) -> (i32, i32, i32) {
    %c0_i32 = arith.constant 0 : i32
    %c0_i32_0 = arith.constant 0 : i32
    %c0_i32_1 = arith.constant 0 : i32
    %c0_i32_2 = arith.constant 0 : i32
    return %c0_i32, %c0_i32_0, %c0_i32_1 : i32, i32, i32
  }
  func.func @transform_12(%arg0: i32) -> (i32, i32, i32) {
    %c0_i32 = arith.constant 0 : i32
    %c0_i32_0 = arith.constant 0 : i32
    %c0_i32_1 = arith.constant 0 : i32
    %c0_i32_2 = arith.constant 0 : i32
    return %c0_i32, %c0_i32_0, %c0_i32_1 : i32, i32, i32
  }
  func.func @transform_13(%arg0: i32) -> (i32, i32, i32) {
    %c0_i32 = arith.constant 0 : i32
    %c0_i32_0 = arith.constant 0 : i32
    %c0_i32_1 = arith.constant 0 : i32
    %c0_i32_2 = arith.constant 0 : i32
    return %c0_i32, %c0_i32_0, %c0_i32_1 : i32, i32, i32
  }
  func.func @transform_14(%arg0: i32) -> (i32, i32, i32) {
    %c0_i32 = arith.constant 0 : i32
    %c0_i32_0 = arith.constant 0 : i32
    %c0_i32_1 = arith.constant 0 : i32
    %c0_i32_2 = arith.constant 0 : i32
    return %c0_i32, %c0_i32_0, %c0_i32_1 : i32, i32, i32
  }
  func.func @transform_15(%arg0: i32) -> (i32, i32, i32) {
    %c0_i32 = arith.constant 0 : i32
    %c0_i32_0 = arith.constant 0 : i32
    %c0_i32_1 = arith.constant 0 : i32
    %c0_i32_2 = arith.constant 0 : i32
    return %c0_i32, %c0_i32_0, %c0_i32_1 : i32, i32, i32
  }
  func.func @transform_16(%arg0: i32) -> (i32, i32, i32) {
    %c0_i32 = arith.constant 0 : i32
    %c0_i32_0 = arith.constant 0 : i32
    %c0_i32_1 = arith.constant 0 : i32
    %c0_i32_2 = arith.constant 0 : i32
    return %c0_i32, %c0_i32_0, %c0_i32_1 : i32, i32, i32
  }
  func.func @transform_17(%arg0: i32) -> (i32, i32, i32) {
    %c0_i32 = arith.constant 0 : i32
    %c0_i32_0 = arith.constant 0 : i32
    %c0_i32_1 = arith.constant 0 : i32
    %c0_i32_2 = arith.constant 0 : i32
    return %c0_i32, %c0_i32_0, %c0_i32_1 : i32, i32, i32
  }
  func.func @transform_18(%arg0: i32) -> (i32, i32, i32) {
    %c0_i32 = arith.constant 0 : i32
    %c0_i32_0 = arith.constant 0 : i32
    %c0_i32_1 = arith.constant 0 : i32
    %c0_i32_2 = arith.constant 0 : i32
    return %c0_i32, %c0_i32_0, %c0_i32_1 : i32, i32, i32
  }
  func.func @transform_19(%arg0: i32) -> (i32, i32) {
    %c0_i32 = arith.constant 0 : i32
    %c0_i32_0 = arith.constant 0 : i32
    %c0_i32_1 = arith.constant 0 : i32
    return %c0_i32, %c0_i32_0 : i32, i32
  }
  func.func @transform_20(%arg0: i32) -> (i32, i32) {
    %c0_i32 = arith.constant 0 : i32
    %c0_i32_0 = arith.constant 0 : i32
    %c0_i32_1 = arith.constant 0 : i32
    return %c0_i32, %c0_i32_0 : i32, i32
  }
  func.func @transform_21(%arg0: i32) -> (i32, i32, i32) {
    %c0_i32 = arith.constant 0 : i32
    %c0_i32_0 = arith.constant 0 : i32
    %c0_i32_1 = arith.constant 0 : i32
    return %arg0, %c0_i32, %c0_i32_0 : i32, i32, i32
  }
}

</mosaic_0001>

<bundles_post_ra>
// kernel: tpu_custom_call.1
= control target key start
LH: loop header
LB: loop body
LE: loop exit
PB: predicated region body
PF: predicated region fallthrough
CT: control target
= control target key end

     0   :  { %s9640_s0 = inlined_call_operand.hbm [shape: f32[2,8,32], index: 0, kind: input, shape index: {}]   ;;  %s9641_s1 = inlined_call_operand.hbm [shape: f32[2,8,32], index: 1, kind: input, shape index: {}]   ;;  %s9642_s2 = inlined_call_operand.hbm [shape: f32[2,1,8], index: 2, kind: input, shape index: {}]   ;;  %s9643_s3 = inlined_call_operand.vmem [shape: f32[2,32,96], index: 3, kind: input, shape index: {}]   ;;  %s9644_s4 = inlined_call_operand.hbm [shape: f32[2,1,96], index: 4, kind: input, shape index: {}]   ;;  %s9645_s5 = inlined_call_operand.vmem [shape: f32[2,32,32], index: 5, kind: input, shape index: {}]   ;;  %s9646_s6 = inlined_call_operand.hbm [shape: f32[2,1,32], index: 6, kind: input, shape index: {}]   ;;  %s9647_s7 = inlined_call_operand.vmem [shape: f32[2,32,32], index: 7, kind: input, shape index: {}]   ;;  %s9648_s8 = inlined_call_operand.hbm [shape: f32[2,1,32], index: 8, kind: input, shape index: {}]   ;;  %s9649_s9 = inlined_call_operand.hbm [shape: f32[2,32,64], index: 9, kind: input, shape index: {}]   ;;  %s9650_s10 = inlined_call_operand.vmem [shape: f32[2,1,64], index: 10, kind: input, shape index: {}]   ;;  %s9651_s11 = inlined_call_operand.hbm [shape: f32[2,32,32], index: 11, kind: input, shape index: {}]   ;;  %s9652_s12 = inlined_call_operand.vmem [shape: f32[2,1,32], index: 12, kind: input, shape index: {}]   ;;  %s9653_s13 = inlined_call_operand.hbm [shape: f32[2,32,64], index: 13, kind: input, shape index: {}]   ;;  %s9654_s14 = inlined_call_operand.vmem [shape: f32[2,1,64], index: 14, kind: input, shape index: {}]   ;;  %s9655_s15 = inlined_call_operand.vmem [shape: f32[2,64,32], index: 15, kind: input, shape index: {}]   ;;  %s9656_s16 = inlined_call_operand.vmem [shape: f32[2,1,32], index: 16, kind: input, shape index: {}]   ;;  %s9657_s17 = inlined_call_operand.vmem [shape: f32[2,3,32], index: 17, kind: input, shape index: {}]   ;;  %s9658_s18 = inlined_call_operand.vmem [shape: f32[2,3,32], index: 18, kind: input, shape index: {}]   ;;  %s9659_s19 = inlined_call_operand.vmem [shape: f32[32,128], index: 19, kind: input, shape index: {}]   ;;  %s9660_s20 = inlined_call_operand.vmem [shape: f32[1,128], index: 20, kind: input, shape index: {}]   ;;  %s9661_s21 = inlined_call_operand.hbm [shape: f32[2,8,128], index: 21, kind: output, shape index: {}]  }
   0x1   :  { %9709 = sst [smem:[#allocation30_spill]] %s9640_s0 }
   0x2   :  { %9710 = sst [smem:[#allocation31_spill]] %s9641_s1 }
   0x3   :  { %9711 = sst [smem:[#allocation32_spill]] %s9642_s2 }
   0x4   :  { %9712 = sst [smem:[#allocation33_spill]] %s9643_s3 }
   0x5   :  { %9713 = sst [smem:[#allocation34_spill]] %s9644_s4 }
   0x6   :  { %9714 = sst [smem:[#allocation35_spill]] %s9645_s5 }
   0x7   :  { %9715 = sst [smem:[#allocation36_spill]] %s9646_s6 }
   0x8   :  { %9716 = sst [smem:[#allocation37_spill]] %s9648_s8 }
   0x9   :  { %9717 = sst [smem:[#allocation38_spill]] %s9649_s9 }
   0xa   :  { %9718 = sst [smem:[#allocation39_spill]] %s9651_s11 }
   0xb   :  { %9719 = sst [smem:[#allocation40_spill]] %s9652_s12 }
   0xc   :  { %9720 = sst [smem:[#allocation41_spill]] %s9654_s14 }
   0xd   :  { %9721 = sst [smem:[#allocation42_spill]] %s9655_s15 }
   0xe   :  { %9722 = sst [smem:[#allocation43_spill]] %s9656_s16 }
   0xf   :  { %9723 = sst [smem:[#allocation44_spill]] %s9659_s19 }
  0x10   :  { %9724 = sst [smem:[#allocation45_spill]] %s9660_s20 }
  0x11   :  { %9725 = sst [smem:[#allocation46_spill]] %s9661_s21 }
  0x12   :  { %26 = vsyncpa [#allocation3], 0 }
  0x13   :  { %28 = vsyncpa [#allocation3 + $0x1], 0 }
  0x14   :  { %29 = vsyncpa [#allocation6], 0 }
  0x15   :  { %31 = vsyncpa [#allocation6 + $0x1], 0 }
  0x16   :  { %32 = vsyncpa [#allocation9], 0 }
  0x17   :  { %33 = vsyncpa [#allocation12], 0 }
  0x18   :  { %34 = vsyncpa [#allocation15], 0 }
  0x19   :  { %35 = vsyncpa [#allocation4], 0 }
  0x1a   :  { %37 = vsyncpa [#allocation4 + $0x1], 0  ;;  %s8595_s2 = smov 0   ;;  %s8597_s25 = smov 0  }
  0x1b   :  { %s8599_s26 = smov 0   ;;  %s8601_s27 = smov 0  }
  0x1c LB: > { %9726 = sst [smem:[#allocation24_spill]] %s8445_s2  ;;  %s8459_s3 = smov [#allocation8]   ;;  %s8457_s27 = sphi %s8601_s27, %s9785_s27   ;;  %s8453_s26 = sphi %s8599_s26, %s9787_s26   ;;  %s8449_s25 = sphi %s8597_s25, %s9789_s25   ;;  %s8445_s2 = sphi %s8595_s2, %s9788_s2  }
  0x1d   : > { %9727 = sst [smem:[#allocation25_spill]] %s8453_s26  ;;  %s545_s28 = sshll.u32 %s8459_s3, 4  ;;  %s546_s28 = int_to_ptr.vmem [resolvable:$true] %s545_s28 }
  0x1e   : > { %s8616_s29 = sadd.s32 4294967295, %s8457_s27   ;;  %p7300_p0 = scmp.ge.s32.totalorder %s8457_s27, 1 }
  0x1f   : > { %p9686_p1 = scmp.eq.s32.totalorder %s8616_s29, 0  ;;  %p530_p2 = scmp.lt.s32.totalorder %s8457_s27, 3 }
  0x20   : > { %s8460_s4 = smov [#allocation11]   ;;  %s8461_s22 = smov [#allocation14]  }
  0x21   : > { %p8621_p3 = pnand %p7300_p0, %p530_p2  ;;  %s577_s30 = sshll.u32 %s8460_s4, 4  ;;  %s578_s30 = int_to_ptr.vmem [resolvable:$true] %s577_s30 }
  0x22   : > { %s606_s23 = sshll.u32 %s8461_s22, 4  ;;  %s8148_s24 = scalar_lea.vmem %s546_s28, 32  ;;  %s607_s23 = int_to_ptr.vmem [resolvable:$true] %s606_s23 }
  0x23   : > { %s9728_s0 = scalar_select %p8621_p3, 1, 0 }
  0x24   : > { %p7959_p5 = pneg %p8621_p3  ;;  %p8149_p8 = scmp.ne.s32.totalorder %s546_s28, %s8148_s24 }
  0x25   : > { %p8156_p11 = scmp.lt.s32.totalorder %s546_s28, %s546_s28  ;;  %p8157_p12 = scmp.lt.s32.totalorder %s8148_s24, %s8148_s24 }
  0x26   : > { %p8630_p6 = pnand %p7959_p5, %p9686_p1 }
  0x27   : > { %p8158_p13 = por %p8157_p12, %p8156_p11 }
  0x28   : > { %s9729_s5 = scalar_select %p8630_p6, 1, 0 }
  0x29   : > { %p8636_p7 = pneg %p8630_p6 }
  0x2b   : > { %s9730_s1 = scalar_select %p8636_p7, 1, 0 }
  0x2c   : > { %p8151_p9 = pnand %p8149_p8, %p8636_p7 }
  0x2e   : > { %p8152_p10 = pneg %p8151_p9 }
  0x30   : > { %p8159_p0 = pnand %p8158_p13, %p8152_p10 }
  0x32   : > { %8162 = shalt.err (!%p8159_p0)
}
  0x33   : > { %s9670_s3 = smov 16   ;;  %s9676_s4 = smov 1  }
  0x34   : > { %s9731_s20 = sld [smem:[#allocation34_spill]]  ;;  %s8174_s19 = scalar_lea.vmem %s578_s30, 32 }
  0x35   : > { %p8175_p2 = scmp.ne.s32.totalorder %s578_s30, %s8174_s19  ;;  %p8182_p9 = scmp.lt.s32.totalorder %s578_s30, %s578_s30 }
  0x36   : > { %p8183_p10 = scmp.lt.s32.totalorder %s8174_s19, %s8174_s19 }
  0x37   : > { %p8177_p5 = pnand %p8175_p2, %p8636_p7 }
  0x38   : > { %p8184_p11 = por %p8183_p10, %p8182_p9 }
  0x39   : > { %p8178_p8 = pneg %p8177_p5 }
  0x3a   : > { %7962 = dma.hbm_to_vmem [thread:$0]  (!%p8630_p6), %s9731_s20, 32, %s546_s28, [#allocation9], %s9670_s3, %s9670_s3, %s9676_s4  }
  0x3b   : > { %p8185_p12 = pnand %p8184_p11, %p8178_p8 }
  0x3d   : > { %8188 = shalt.err (!%p8185_p12)
}
  0x3e   : > { %s9732_s8 = sld [smem:[#allocation37_spill]]  ;;  %s8200_s20 = scalar_lea.vmem %s607_s23, 1024 }
  0x3f   : > { %p8201_p13 = scmp.ne.s32.totalorder %s607_s23, %s8200_s20  ;;  %p8208_p5 = scmp.lt.s32.totalorder %s607_s23, %s607_s23 }
  0x40   : > { %p8209_p9 = scmp.lt.s32.totalorder %s8200_s20, %s8200_s20 }
  0x41   : > { %p8203_p0 = pnand %p8201_p13, %p8636_p7 }
  0x42   : > { %p8210_p8 = por %p8209_p9, %p8208_p5 }
  0x43   : > { %p8204_p2 = pneg %p8203_p0 }
  0x44   : > { %7968 = dma.hbm_to_vmem [thread:$0]  (!%p8630_p6), %s9732_s8, 32, %s578_s30, [#allocation12], %s9670_s3, %s9670_s3, %s9676_s4  }
  0x45   : > { %p8211_p10 = pnand %p8210_p8, %p8204_p2 }
  0x47   : > { %8214 = shalt.err (!%p8211_p10)
}
  0x48   : > { %s9672_s19 = smov 128   ;;  %s9674_s16 = smov 8  }
  0x49   : > { %s9733_s11 = sld [smem:[#allocation39_spill]]  ;;  %s7299_s30 = sadd.s32 4294967294, %s8457_s27  }
  0x4a   : > { %s8672_s22 = sadd.s32 1, %s8457_s27   ;;  %s50_s24 = sadd.s32 1, %s8453_s26 }
  0x4b   : > { %9734 = sst [smem:[#allocation26_spill]] %s8672_s22  ;;  %s47_s20 = ssub.s32 %s8457_s27, %s8672_s22 }
  0x4c   : > { %p57_p11 = scmp.ne.s32.totalorder %s8453_s26, %s8449_s25  ;;  %p48_p12 = scmp.eq.s32.totalorder %s47_s20, 0 }
  0x4d   : > { %p58_p13 = scmp.eq.s32.totalorder %s8457_s27, 0  ;;  %p63_p0 = scmp.ne.s32.totalorder %s8449_s25, %s8445_s2 }
  0x4e   : > { %p517_p2 = scmp.eq.s32.totalorder %s8616_s29, 1  ;;  %p523_p10 = scmp.eq.s32.totalorder %s7299_s30, 1 }
  0x4f   : > { %7974 = dma.hbm_to_vmem [thread:$0]  (!%p8630_p6), %s9733_s11, 1024, %s607_s23, [#allocation15], %s9672_s19, %s9672_s19, %s9674_s16  }
  0x50   : > { %s8684_s3 = scalar_select %p48_p12, %s8453_s26, %s50_s24  }
  0x51   : > { %p59_p5 = por %p58_p13, %p57_p11  ;;  %p8688_p9 = por %p9686_p1, %p63_p0 }
  0x52   : > { %9735 = sst [smem:[#allocation27_spill]] %s8684_s3  ;;  %p8692_p8 = por %p517_p2, %p57_p11 }
  0x53   : > { %s9736_s23 = scalar_select %p8688_p9, 1, 0 }
  0x54   : > { %s9737_s21 = scalar_select %p8692_p8, 1, 0 }
  0x55   : > { %p7998_p4 = scmp.lt.s32.totalorder %s8457_s27, 2  ;;  %s8698_s28 = sand.u32 1, %s8453_s26  }
  0x56   : > { %9738 = sst [smem:[#allocation28_spill]] %s9737_s21  ;;  %p8700_p3 = por %p523_p10, %p63_p0 }
  0x57   : > { %s9685_s24 = sshll.u32 %s8698_s28, 3  ;;  %s9684_s19 = sshll.u32 %s8457_s27, 7 }
  0x58   : > { %s9739_s20 = scalar_select %p8700_p3, 1, 0 }
  0x59   : > { %p8706_p12 = pnand %p7998_p4, %p59_p5  ;;  %s675_s4 = sand.u32 1, %s8457_s27  }
  0x5a   : > { %9740 = sst [smem:[#allocation29_spill]] %s9739_s20  ;;  %s679_s26 = scalar_lea.vmem [#allocation5], %s9685_s24 }
  0x5b   : > { %s9742_s11 = sld [smem:[#allocation31_spill]]  ;;  %s686_s22 = sshll.u32 %s679_s26, 4  ;;  %s687_s22 = int_to_ptr.vmem [resolvable:$true] %s686_s22 }
  0x5c   : > { %s8720_s20 = scalar_lea.sflag [#allocation6], %s675_s4  ;;  %p8726_p11 = pneg %p8706_p12 }
  0x61   : > { %s8716_s3 = scalar_lea.hbm %s9742_s11, %s9684_s19  ;;  %s8220_s19 = scalar_lea.hbm %s9742_s11, 256 }
  0x62   : > { %s8215_s2 = scalar_lea.hbm %s8716_s3, 128  ;;  %p8221_p2 = scmp.lt.s32.totalorder %s8716_s3, %s9742_s11 }
  0x63   : > { %p8216_p4 = scmp.ne.s32.totalorder %s8716_s3, %s8215_s2  ;;  %p8222_p5 = scmp.lt.s32.totalorder %s8220_s19, %s8215_s2 }
  0x65   : > { %p8218_p13 = pnand %p8726_p11, %p8216_p4  ;;  %p8223_p10 = por %p8222_p5, %p8221_p2 }
  0x67   : > { %p8219_p0 = pneg %p8218_p13 }
  0x69   : > { %p8224_p1 = pnand %p8223_p10, %p8219_p0 }
  0x6b   : > { %8227 = shalt.err (!%p8224_p1)
}
  0x6c   : > { %s8228_s4 = scalar_lea.vmem %s687_s22, 128  ;;  %s8466_s14 = smov [#allocation5]  }
  0x6d   : > { %p8229_p3 = scmp.ne.s32.totalorder %s687_s22, %s8228_s4  ;;  %s8233_s15 = sshll.u32 %s8466_s14, 4  ;;  %s8234_s15 = int_to_ptr.vmem [resolvable:$false] %s8233_s15 }
  0x6e   : > { %s8235_s12 = scalar_lea.vmem %s8234_s15, 256  ;;  %p8236_p4 = scmp.lt.s32.totalorder %s687_s22, %s8234_s15 }
  0x6f   : > { %p8231_p8 = pnand %p8229_p3, %p8726_p11  ;;  %p8237_p13 = scmp.lt.s32.totalorder %s8235_s12, %s8228_s4 }
  0x71   : > { %p8232_p9 = pneg %p8231_p8  ;;  %p8238_p6 = por %p8237_p13, %p8236_p4 }
  0x73   : > { %p8239_p7 = pnand %p8238_p6, %p8232_p9 }
  0x75   : > { %8242 = shalt.err (!%p8239_p7)
}
  0x76   : > { %7984 = dma.hbm_to_vmem [thread:$0]  (!%p8706_p12), %s8716_s3, 128, %s687_s22, %s8720_s20  }
  0x77   : > { %s8467_s2 = smov [#allocation10]   ;;  %s8468_s24 = smov [#allocation13]  }
  0x78   : > { %s561_s19 = sshll.u32 %s8467_s2, 4  ;;  %s590_s8 = sshll.u32 %s8468_s24, 4  ;;  %s562_s19 = int_to_ptr.vmem [resolvable:$true] %s561_s19  ;;  %s591_s8 = int_to_ptr.vmem [resolvable:$true] %s590_s8 }
  0x79   : > { %s8254_s30 = scalar_lea.vmem %s562_s19, 32  ;;  %p9744_p3 = scmp.ne.s32.totalorder %s9730_s1, 0 }
  0x7a   : > { %p8255_p1 = scmp.ne.s32.totalorder %s562_s19, %s8254_s30  ;;  %p8262_p2 = scmp.lt.s32.totalorder %s562_s19, %s562_s19 }
  0x7b   : > { %p8263_p5 = scmp.lt.s32.totalorder %s8254_s30, %s8254_s30 }
  0x7c   : > { %p8257_p8 = pnand %p8255_p1, %p9744_p3 }
  0x7d   : > { %p8264_p6 = por %p8263_p5, %p8262_p2 }
  0x7e   : > { %p8258_p0 = pneg %p8257_p8 }
  0x80   : > { %p8265_p7 = pnand %p8264_p6, %p8258_p0 }
  0x82   : > { %8268 = shalt.err (!%p8265_p7)
}
  0x83   : > { %p9745_p9 = scmp.ne.s32.totalorder %s9729_s5, 0  ;;  %s9746_s12 = smov 1  }
  0x84   : > { %s9747_s14 = smov 16   ;;  %s9748_s6 = sld [smem:[#allocation36_spill]] }
  0x85   : > { %s8280_s22 = scalar_lea.vmem %s591_s8, 1024  ;;  %p8288_p1 = scmp.lt.s32.totalorder %s591_s8, %s591_s8 }
  0x86   : > { %p8281_p10 = scmp.ne.s32.totalorder %s591_s8, %s8280_s22  ;;  %p8289_p8 = scmp.lt.s32.totalorder %s8280_s22, %s8280_s22 }
  0x88   : > { %p8283_p4 = pnand %p8281_p10, %p9744_p3  ;;  %p8290_p0 = por %p8289_p8, %p8288_p1 }
  0x8a   : > { %7965 = dma.hbm_to_vmem [thread:$0]  (!%p9745_p9), %s9748_s6, 32, %s562_s19, [#allocation9], %s9747_s14, %s9747_s14, %s9746_s12  }
  0x8b   : > { %p8284_p13 = pneg %p8283_p4 }
  0x8d   : > { %p8291_p2 = pnand %p8290_p0, %p8284_p13 }
  0x8f   : > { %8294 = shalt.err (!%p8291_p2)
}
  0x90   : > { %s9749_s26 = smov 8   ;;  %s9750_s4 = smov 128  }
  0x91   : > { %s9751_s9 = sld [smem:[#allocation38_spill]]  ;;  %s8469_s19 = smov [#allocation16]  }
  0x92   : > { %s622_s30 = sshll.u32 %s8469_s19, 4  ;;  %s623_s30 = int_to_ptr.vmem [resolvable:$true] %s622_s30 }
  0x93   : > { %s8306_s12 = scalar_lea.vmem %s623_s30, 1024  ;;  %p8314_p10 = scmp.lt.s32.totalorder %s623_s30, %s623_s30 }
  0x94   : > { %p8307_p5 = scmp.ne.s32.totalorder %s623_s30, %s8306_s12  ;;  %p8315_p4 = scmp.lt.s32.totalorder %s8306_s12, %s8306_s12 }
  0x96   : > { %p8309_p6 = pnand %p8307_p5, %p9744_p3  ;;  %p8316_p13 = por %p8315_p4, %p8314_p10 }
  0x97   : > { %7971 = dma.hbm_to_vmem [thread:$0]  (!%p9745_p9), %s9751_s9, 1024, %s591_s8, [#allocation12], %s9750_s4, %s9750_s4, %s9749_s26  }
  0x98   : > { %p8310_p7 = pneg %p8309_p6 }
  0x9a   : > { %p8317_p1 = pnand %p8316_p13, %p8310_p7 }
  0x9c   : > { %8320 = shalt.err (!%p8317_p1)
}
  0x9d   : > { %7977 = dma.hbm_to_vmem [thread:$0]  (!%p9745_p9), %s9653_s13, 1024, %s623_s30, [#allocation15], %s9750_s4, %s9750_s4, %s9749_s26  }
  0x9e   : > { %s9752_s1 = sshll.u32 %s8457_s27, 7  ;;  %s9753_s22 = sld [smem:[#allocation30_spill]] }
  0x9f   : > { %s9754_s24 = sshll.u32 %s8698_s28, 3  ;;  %s658_s12 = scalar_lea.sflag [#allocation3], %s8698_s28 }
  0xa0   : > { %s661_s5 = scalar_lea.vmem [#allocation2], %s9754_s24 }
  0xa1   : > { %s668_s19 = sshll.u32 %s661_s5, 4  ;;  %s669_s19 = int_to_ptr.vmem [resolvable:$true] %s668_s19 }
  0xa4   : > { %s8780_s2 = scalar_lea.hbm %s9753_s22, %s9752_s1  ;;  %s8326_s30 = scalar_lea.hbm %s9753_s22, 256 }
  0xa5   : > { %s8321_s14 = scalar_lea.hbm %s8780_s2, 128  ;;  %p8327_p9 = scmp.lt.s32.totalorder %s8780_s2, %s9753_s22 }
  0xa6   : > { %p8322_p3 = scmp.ne.s32.totalorder %s8780_s2, %s8321_s14  ;;  %p8328_p2 = scmp.lt.s32.totalorder %s8326_s30, %s8321_s14 }
  0xa8   : > { %p8324_p8 = pnand %p8322_p3, %p8726_p11  ;;  %p8329_p5 = por %p8328_p2, %p8327_p9 }
  0xaa   : > { %p8325_p0 = pneg %p8324_p8 }
  0xac   : > { %p8330_p6 = pnand %p8329_p5, %p8325_p0 }
  0xae   : > { %8333 = shalt.err (!%p8330_p6)
}
  0xaf   : > { %s8334_s15 = scalar_lea.vmem %s669_s19, 128  ;;  %s8470_s3 = smov [#allocation2]  }
  0xb0   : > { %p8335_p7 = scmp.ne.s32.totalorder %s669_s19, %s8334_s15  ;;  %s8339_s24 = sshll.u32 %s8470_s3, 4  ;;  %s8340_s24 = int_to_ptr.vmem [resolvable:$false] %s8339_s24 }
  0xb1   : > { %s8341_s5 = scalar_lea.vmem %s8340_s24, 256  ;;  %p8342_p13 = scmp.lt.s32.totalorder %s669_s19, %s8340_s24 }
  0xb2   : > { %p8337_p10 = pnand %p8335_p7, %p8726_p11  ;;  %p8343_p1 = scmp.lt.s32.totalorder %s8341_s5, %s8334_s15 }
  0xb4   : > { %p8338_p4 = pneg %p8337_p10  ;;  %p8344_p3 = por %p8343_p1, %p8342_p13 }
  0xb6   : > { %p8345_p8 = pnand %p8344_p3, %p8338_p4 }
  0xb8   : > { %8348 = shalt.err (!%p8345_p8)
}
  0xb9   : > { %7981 = dma.hbm_to_vmem [thread:$0]  (!%p8706_p12), %s8780_s2, 128, %s669_s19, %s658_s12  }
  0xba   : > { %s7312_s14 = sshll.u32 %s8457_s27, 4  ;;  %s696_s26 = scalar_lea.vmem [#allocation7], %s8698_s28 }
  0xbb   : > { %s703_s4 = sshll.u32 %s696_s26, 4  ;;  %s9755_s1 = sld [smem:[#allocation32_spill]]  ;;  %s704_s4 = int_to_ptr.vmem [resolvable:$true] %s703_s4 }
  0xc1   : > { %s701_s3 = scalar_lea.hbm %s9755_s1, %s7312_s14  ;;  %s8354_s6 = scalar_lea.hbm %s9755_s1, 32 }
  0xc2   : > { %s8349_s24 = scalar_lea.hbm %s701_s3, 16  ;;  %p8355_p5 = scmp.lt.s32.totalorder %s701_s3, %s9755_s1 }
  0xc3   : > { %p8350_p0 = scmp.ne.s32.totalorder %s701_s3, %s8349_s24  ;;  %p8356_p6 = scmp.lt.s32.totalorder %s8354_s6, %s8349_s24 }
  0xc5   : > { %p8352_p9 = pnand %p8350_p0, %p8726_p11  ;;  %p8357_p7 = por %p8356_p6, %p8355_p5 }
  0xc7   : > { %p8353_p2 = pneg %p8352_p9 }
  0xc9   : > { %p8358_p10 = pnand %p8357_p7, %p8353_p2 }
  0xcb   : > { %8361 = shalt.err (!%p8358_p10)
}
  0xcc   : > { %s8362_s28 = scalar_lea.vmem %s704_s4, 16  ;;  %s8471_s2 = smov [#allocation7]  }
  0xcd   : > { %p8363_p4 = scmp.ne.s32.totalorder %s704_s4, %s8362_s28  ;;  %s8367_s19 = sshll.u32 %s8471_s2, 4  ;;  %s8368_s19 = int_to_ptr.vmem [resolvable:$false] %s8367_s19 }
  0xce   : > { %s8369_s12 = scalar_lea.vmem %s8368_s19, 32  ;;  %p8370_p3 = scmp.lt.s32.totalorder %s704_s4, %s8368_s19 }
  0xcf   : > { %p8365_p13 = pnand %p8363_p4, %p8726_p11  ;;  %p8371_p8 = scmp.lt.s32.totalorder %s8369_s12, %s8362_s28 }
  0xd1   : > { %p8366_p1 = pneg %p8365_p13  ;;  %p8372_p0 = por %p8371_p8, %p8370_p3 }
  0xd3   : > { %p8373_p9 = pnand %p8372_p0, %p8366_p1 }
  0xd5   : > { %8376 = shalt.err (!%p8373_p9)
}
  0xd6   : > { %7987 = dma.hbm_to_vmem [thread:$0]  (!%p8706_p12), %s701_s3, 16, %s704_s4, %s8720_s20  }
  0xd7   : > { %p9756_p2 = scmp.ne.s32.totalorder %s9728_s0, 0 }
  0xd8   : > { %s8822_s6 = sand.u32 (!%p9756_p2), 1, %s8449_s25   ;;  %p9757_p11 = scmp.ne.s32.totalorder (!%p9756_p2), %s9736_s23, 0 }
  0xd9   : > { %712 = sbr.rel (%p9756_p2) target bundleno = 9697 (0x25e1), region = 104  ;;  %s8825_s9 = sshll.u32 (!%p9756_p2), %s8822_s6, 3 }
  0xda   : > { %s715_s11 = scalar_lea.sflag (!%p9756_p2), [#allocation3], %s8822_s6  ;;  %s718_s21 = scalar_lea.vmem (!%p9756_p2), [#allocation2], %s8825_s9 }
  0xde   : > { %8420 = dma.done.wait (%p9757_p11), %s715_s11, 128  }
  0xdf   : > { %8422 = vsyncadd (%p9757_p11), %s715_s11, 4294967168  ;;  %s723_s0 = sand.u32 1, %s8616_s29   ;;  %s9697_s20 = scalar_lea.vmem [#allocation5], %s8825_s9 }
  0xe0   : > { %s724_s16 = scalar_lea.sflag [#allocation6], %s723_s0 }
  0xe1   : > { %8424 = dma.done.wait (%p9757_p11), %s724_s16, 144  }
  0xe2   : > { %8426 = vsyncadd (%p9757_p11), %s724_s16, 4294967152  ;;  %s735_s14 = scalar_lea.vmem [#allocation7], %s8822_s6  ;;  %p9758_p12 = scmp.eq.s32.totalorder %s8616_s29, 0 }
  0xe4   : > { %8428 = dma.done.wait (%p9758_p12), [#allocation9], 64   ;;  %p9759_p5 = pmov %p9758_p12 }
  0xe6   : > { %8430 = vsyncadd (%p9759_p5), [#allocation9], 4294967232  ;;  %p9760_p6 = pmov %p9759_p5 }
  0xe7   : > { %p9761_p7 = pmov %p9759_p5 }
  0xe8   : > { %8432 = dma.done.wait (%p9760_p6), [#allocation12], 1056  }
  0xe9   : > { %8434 = vsyncadd (%p9761_p7), [#allocation12], 4294966240  ;;  %p9762_p10 = pmov %p9759_p5 }
  0xea   : > { %p9763_p4 = pmov %p9759_p5 }
  0xeb   : > { %8436 = dma.done.wait (%p9762_p10), [#allocation15], 2048  }
  0xec   : > { %8438 = vsyncadd (%p9763_p4), [#allocation15], 4294965248  ;;  %v8472_v0 = vmov 0.0   ;;  %vm8473_vm0 = vmmov 0   ;;  %s9764_s4 = sld [smem:[#allocation33_spill]]  ;;  %v8872_v5 = vld [vmem:[%s718_s21] sm:$0xff]  ;;  %v830_v21 = vlaneseq }
  0xed   : > { %7586 = vmatprep.subr.mxu0 %v8472_v0  ;;  %7594 = vmatprep.mubr.msk.f32.mxu0 %vm8473_vm0, %v8472_v0  ;;  %vm851_vm1 = vcmask 261120   ;;  %v7323_v6 = vld [vmem:[#allocation8] ss:$0 sm:$0xff]  ;;  %s9706_s28 = smov 104   ;;  %s8475_s2 = smov 120   ;;  %vm1072_vm2 = vcmask 64512  }
  0xee   : > { %7602 = vmatprep.subr.mxu1 %v8472_v0  ;;  %7604 = vmatprep.mubr.msk.f32.mxu1 %vm8473_vm0, %v8472_v0  ;;  %s9704_s19 = smov 96   ;;  %s8477_s12 = smov 112   ;;  %v8922_v22 = vshrl.u32 %v830_v21, 7  ;;  %v833_v23 = vand.u32 127, %v830_v21  ;;  %vm2134_vm4 = vcmask 130048   ;;  %vm2136_vm5 = vcmask 195584  }
  0xef   : > { %s8478_s11 = smov 64   ;;  %s9765_s16 = sld [smem:[#allocation35_spill]]  ;;  %vm3837_vm7 = vcmask 523264  }
  0xf0   : > { %vm834_vm3 = vcmp.gt.s32.totalorder %v833_v23, %v8922_v22  ;;  %s9702_s15 = smov 16   ;;  %s9700_s5 = smov 8  }
  0xf1   : > { %v8926_v25 = vsel %vm834_vm3, -1e+09, %v8472_v0  ;;  %s9698_s21 = smov 24   ;;  %s9766_s24 = sld [smem:[#allocation40_spill]] }
  0xf2   : > { %v843_v1 = vld [vmem:[%s9764_s4 + $0x18] sm:$0xff]  ;;  %v842_v2 = vld [vmem:[%s9764_s4 + $0x10] sm:$0xff]  ;;  %v841_v3 = vld [vmem:[%s9764_s4 + $0x8] sm:$0xff]  ;;  %s9768_s8 = sld [smem:[#allocation41_spill]]  ;;  %s9770_s3 = smov 16  }
  0xf3   : > { %7587 = vmatpush3.msra.mxu0 %v843_v1  ;;  %v840_v4 = vld [vmem:[%s9764_s4] sm:$0xff]  ;;  %s9769_s0 = sld [smem:[#allocation43_spill]]  ;;  %s7436_s26 = sshll.u32 %s8616_s29, 7 }
  0xf4   : > { %7588 = vmatprep.subr.mxu0 %v8472_v0  ;;  %s826_s30 = scalar_lea.vmem [#allocation17], %s8825_s9  ;;  %s8484_s23 = smov [#allocation17]  }
  0xf5   : > { %7589 = vmatpush3.msra.mxu0 %v842_v2  ;;  %s8381_s29 = sshll.u32 %s8484_s23, 4  ;;  %s8382_s29 = int_to_ptr.vmem [resolvable:$false] %s8381_s29 }
  0xf6   : > { %7590 = vmatprep.subr.mxu0 %v8472_v0 }
  0xf7   : > { %7591 = vmatpush3.msra.mxu0 %v841_v3 }
  0xf8   : > { %7592 = vmatprep.subr.mxu0 %v8472_v0 }
  0xf9   : > { %7593 = vmatpush3.msra.mxu0 %v840_v4 }
  0xfa   : > { %7595 = vmatmul.mubr.msk.f32.vlgmr.msra.gmra.mxu0 %vm851_vm1, %v8872_v5  ;;  %7597 = vmatprep.subr.mxu0 %v8472_v0 }
  0xfb   : > { %7599 = vmatprep.mubr.msk.f32.mxu0 %vm8473_vm0, %v8472_v0 }
 0x1ba   : > { %v921_v7 = vpop.f32.mrf.mxu0 }
 0x1bb   : > { %v8880_v8 = vadd.f32 %v7323_v6, %v921_v7 }
 0x1bc   : > { %v7596_v9 = vpop.f32.mrf.mxu0 }
 0x1bd   : > { %930 = vrot.lane.b32.xlu1 %v8880_v8, %s9706_s28  ;;  %926 = vrot.lane.b32.xlu0 %v8880_v8, %s8475_s2 }
 0x1c1   : > { %932 = vrot.lane.b32.xlu1 %v8880_v8, %s9704_s19  ;;  %928 = vrot.lane.b32.xlu0 %v8880_v8, %s8477_s12 }
 0x22f   : > { %v8890_v10 = vpop.permute.xlu0 %926  ;;  %v8894_v11 = vpop.permute.xlu1 %930 }
 0x230   : > { %934 = vrot.lane.b32.xlu0 %v8890_v10, %s9704_s19 }
 0x233   : > { %v8896_v12 = vpop.permute.xlu0 %928  ;;  %v933_v13 = vpop.permute.xlu1 %932 }
 0x234   : > { %938 = vrot.lane.b32.xlu0 %v8894_v11, %s9704_s19  ;;  %936 = vrot.lane.b32.xlu1 %v8896_v12, %s9704_s19 }
 0x25d   : > { %944 = vxpose.xlu1.b32.start.end [1/1] (short) (narrow) %v933_v13, 8 }
 0x2a2   : > { %v935_v14 = vpop.permute.xlu0 %934 }
 0x2a3   : > { %976 = vxpose.xlu0.b32.start.end [1/1] (short) (narrow) %v935_v14, 8 }
 0x2a6   : > { %v937_v15 = vpop.permute.xlu1 %936  ;;  %v939_v16 = vpop.permute.xlu0 %938 }
 0x2a7   : > { %1008 = vxpose.xlu0.b32.start.end [1/1] (short) (narrow) %v937_v15, 8 }
 0x2ab   : > { %1040 = vxpose.xlu0.b32.start.end [1/1] (short) (narrow) %v939_v16, 8 }
 0x2d9   : > { %v960_v17 = vpop.trf.xlu1 }
 0x2da   : > { %7598 = vmatpush3.msra.mxu0 %v960_v17 }
 0x2db   : > { %7600 = vmatmul.mubr.msk.f32.vlgmr.msra.gmra.mxu0 %vm1072_vm2, %v8880_v8  ;;  %7612 = vmatprep.subr.mxu0 %v8472_v0 }
 0x2dc   : > { %7614 = vmatprep.mubr.msk.f32.mxu0 %vm8473_vm0, %v8472_v0 }
 0x31f   : > { %v992_v18 = vpop.trf.xlu0 }
 0x320   : > { %7603 = vmatpush3.msra.mxu1 %v992_v18 }
 0x321   : > { %7605 = vmatmul.mubr.msk.f32.vlgmr.msra.gmra.mxu1 %vm1072_vm2, %v8890_v10  ;;  %7607 = vmatprep.subr.mxu1 %v8472_v0 }
 0x322   : > { %7609 = vmatprep.mubr.msk.f32.mxu1 %vm8473_vm0, %v8472_v0 }
 0x323   : > { %v1024_v19 = vpop.trf.xlu0 }
 0x324   : > { %7608 = vmatpush3.msra.mxu1 %v1024_v19 }
 0x325   : > { %7610 = vmatmul.mubr.msk.f32.vlgmr.msra.gmra.mxu1 %vm1072_vm2, %v8896_v12  ;;  %7617 = vmatprep.subr.mxu1 %v8472_v0 }
 0x326   : > { %7619 = vmatprep.mubr.msk.f32.mxu1 %vm8473_vm0, %v8472_v0 }
 0x327   : > { %v1056_v20 = vpop.trf.xlu0 }
 0x328   : > { %7613 = vmatpush3.msra.mxu0 %v1056_v20 }
 0x329   : > { %7615 = vmatmul.mubr.msk.f32.vlgmr.msra.gmra.mxu0 %vm1072_vm2, %v8894_v11  ;;  %7622 = vmatprep.subr.mxu0 %v8472_v0 }
 0x32a   : > { %7624 = vmatprep.mubr.msk.f32.mxu0 %vm8473_vm0, %v8472_v0 }
 0x39b   : > { %v1141_v24 = vpop.f32.mrf.mxu0 }
 0x39c   : > { %v1361_v26 = vmul.f32 0.35355338, %v1141_v24 }
 0x39d   : > { %v7601_v27 = vpop.f32.mrf.mxu0 }
 0x39e   : > { %v1365_v28 = vadd.f32 %v1361_v26, %v8926_v25 }
 0x3a0   : > { %v1369_v29 = vsel %vm1072_vm2, %v1365_v28, -inf }
 0x3a1   : > { %1370 = vmax.xlane.f32.xlu1 %v1369_v29 }
 0x3e1   : > { %v1213_v30 = vpop.f32.mrf.mxu1 }
 0x3e2   : > { %v1362_v31 = vmul.f32 0.35355338, %v1213_v30 }
 0x3e3   : > { %v7606_v32 = vpop.f32.mrf.mxu1 }
 0x3e4   : > { %v1366_v33 = vadd.f32 %v1362_v31, %v8926_v25 }
 0x3e5   : > { %v1285_v34 = vpop.f32.mrf.mxu1 }
 0x3e6   : > { %v1363_v35 = vmul.f32 0.35355338, %v1285_v34  ;;  %v1372_v36 = vsel %vm1072_vm2, %v1366_v33, -inf  ;;  %v8479_v34 = vmov 1983009808  }
 0x3e7   : > { %1373 = vmax.xlane.f32.xlu0 %v1372_v36  ;;  %v7611_v37 = vpop.f32.mrf.mxu1 }
 0x3e8   : > { %v1367_v38 = vadd.f32 %v1363_v35, %v8926_v25  ;;  %v1988_v35 = vunpack.c.l.s4 %v8479_v34  ;;  %v8480_v37 = vmov 1934713408  }
 0x3e9   : > { %v1357_v39 = vpop.f32.mrf.mxu0 }
 0x3ea   : > { %v1364_v40 = vmul.f32 0.35355338, %v1357_v39  ;;  %v1375_v41 = vsel %vm1072_vm2, %v1367_v38, -inf }
 0x3eb   : > { %1376 = vmax.xlane.f32.xlu1 %v1375_v41  ;;  %v7616_v42 = vpop.f32.mrf.mxu0 }
 0x3ec   : > { %v1368_v43 = vadd.f32 %v1364_v40, %v8926_v25  ;;  %v1989_v40 = vunpack.c.0.s8 %v1988_v35 }
 0x3ee   : > { %v1378_v44 = vsel %vm1072_vm2, %v1368_v43, -inf }
 0x3ef   : > { %1379 = vmax.xlane.f32.xlu1 %v1378_v44 }
 0x3fd   : > { %1413 = vrot.lane.b32.xlu0 %v8880_v8, %s8478_s11 }
 0x400   : > { %1415 = vrot.lane.b32.xlu1 %v8890_v10, %s8478_s11 }
 0x401   : > { %1417 = vrot.lane.b32.xlu0 %v8896_v12, %s8478_s11 }
 0x404   : > { %1419 = vrot.lane.b32.xlu1 %v8894_v11, %s8478_s11 }
 0x42a   : > { %v1371_v45 = vpop.xlane.xlu1 %1370 }
 0x42b   : > { %v1381_v46 = vsub.f32 %v1365_v28, %v1371_v45 }
 0x42d   : > { %v1385_v47 = vmul.f32 1.442695, %v1381_v46 }
 0x42f   : > { %8060 = vpow2.f32 %v1385_v47 }
 0x43c   : > { %v8061_v48 = vpop.eup %8060 }
 0x43d   : > { %v1393_v49 = vsel %vm1072_vm2, %v8061_v48, 0.0 }
 0x43e   : > { %1394 = vadd.xlane.f32.xlu1 %v1393_v49 }
 0x470   : > { %v1374_v50 = vpop.xlane.xlu0 %1373 }
 0x471   : > { %v1382_v51 = vsub.f32 %v1366_v33, %v1374_v50  ;;  %v2141_v33 = vld [vmem:[%s9765_s16 + $0x18] sm:$0xff] }
 0x473   : > { %v1387_v52 = vmul.f32 1.442695, %v1382_v51 }
 0x474   : > { %v1377_v53 = vpop.xlane.xlu1 %1376  ;;  %v1414_v2 = vpop.permute.xlu0 %1413 }
 0x475   : > { %8062 = vpow2.f32 %v1387_v52  ;;  %v1383_v54 = vsub.f32 %v1367_v38, %v1377_v53  ;;  %v2020_v38 = vunpack.c.l.s4 %v8480_v37  ;;  %v2334_v37 = vld [vmem:[#allocation13 + $0x18] sm:$0xff] }
 0x477   : > { %v1389_v55 = vmul.f32 1.442695, %v1383_v54  ;;  %v2021_v42 = vunpack.c.0.s8 %v2020_v38  ;;  %v2333_v38 = vld [vmem:[#allocation13 + $0x10] sm:$0xff] }
 0x478   : > { %v1380_v56 = vpop.xlane.xlu1 %1379  ;;  %v1418_v4 = vpop.permute.xlu0 %1417 }
 0x479   : > { %8064 = vpow2.f32 %v1389_v55  ;;  %v1384_v57 = vsub.f32 %v1368_v43, %v1380_v56  ;;  %v8973_v43 = vsub.s32 %v1989_v40, %v8922_v22  ;;  %v8976_v49 = vsub.s32 %v2021_v42, %v8922_v22  ;;  %v2331_v40 = vld [vmem:[#allocation13] sm:$0xff] }
 0x47b   : > { %v1391_v58 = vmul.f32 1.442695, %v1384_v57 }
 0x47c   : > { %v1416_v3 = vpop.permute.xlu1 %1415 }
 0x47d   : > { %8066 = vpow2.f32 %v1391_v58  ;;  %v2140_v58 = vld [vmem:[%s9765_s16 + $0x10] sm:$0xff] }
 0x480   : > { %v1420_v6 = vpop.permute.xlu1 %1419 }
 0x482   : > { %v8063_v59 = vpop.eup %8062 }
 0x483   : > { %v1396_v60 = vsel %vm1072_vm2, %v8063_v59, 0.0 }
 0x484   : > { %1397 = vadd.xlane.f32.xlu0 %v1396_v60 }
 0x486   : > { %v8065_v61 = vpop.eup %8064 }
 0x487   : > { %v1399_v62 = vsel %vm1072_vm2, %v8065_v61, 0.0 }
 0x488   : > { %1400 = vadd.xlane.f32.xlu1 %v1399_v62 }
 0x48a   : > { %v8067_v63 = vpop.eup %8066 }
 0x48b   : > { %v1402_v1 = vsel %vm1072_vm2, %v8067_v63, 0.0 }
 0x48c   : > { %1403 = vadd.xlane.f32.xlu0 %v1402_v1 }
 0x4b9   : > { %1425 = vxpose.xlu0.b32.start.end [1/1] (short) (narrow) %v1414_v2, 8 }
 0x4bb   : > { %1457 = vxpose.xlu1.b32.start.end [1/1] (short) (narrow) %v1416_v3, 8 }
 0x4bd   : > { %1489 = vxpose.xlu0.b32.start.end [1/1] (short) (narrow) %v1418_v4, 8 }
 0x4c1   : > { %1521 = vxpose.xlu0.b32.start.end [1/1] (short) (narrow) %v1420_v6, 8  ;;  %v2138_v6 = vld [vmem:[%s9765_s16] sm:$0xff] }
 0x4c7   : > { %v1395_v7 = vpop.xlane.xlu1 %1394 }
 0x4c8   : > { %8068 = vrcp.f32 %v1395_v7 }
 0x4d5   : > { %v8069_v8 = vpop.eup %8068 }
 0x4d6   : > { %v1409_v9 = vmul.f32 %v8069_v8, %v8061_v48 }
 0x4d8   : > { %7618 = vmatpush3.xpose.msk.msra.mxu1 %vm1072_vm2, %v1409_v9 }
 0x4d9   : > { %7627 = vmatprep.subr.mxu1 %v8472_v0 }
 0x50d   : > { %v1398_v10 = vpop.xlane.xlu0 %1397 }
 0x50e   : > { %8070 = vrcp.f32 %v1398_v10 }
 0x511   : > { %v1401_v13 = vpop.xlane.xlu1 %1400 }
 0x512   : > { %8072 = vrcp.f32 %v1401_v13 }
 0x515   : > { %v1404_v14 = vpop.xlane.xlu0 %1403 }
 0x516   : > { %8074 = vrcp.f32 %v1404_v14 }
 0x51b   : > { %v8071_v11 = vpop.eup %8070 }
 0x51c   : > { %v1410_v12 = vmul.f32 %v8071_v11, %v8063_v59  ;;  %v2139_v59 = vld [vmem:[%s9765_s16 + $0x8] sm:$0xff] }
 0x51e   : > { %7623 = vmatpush3.xpose.msk.msra.mxu0 %vm1072_vm2, %v1410_v12 }
 0x51f   : > { %7632 = vmatprep.subr.mxu0 %v8472_v0  ;;  %v8073_v15 = vpop.eup %8072 }
 0x520   : > { %v1411_v18 = vmul.f32 %v8073_v15, %v8065_v61 }
 0x523   : > { %v8075_v16 = vpop.eup %8074 }
 0x524   : > { %v1412_v20 = vmul.f32 %v8075_v16, %v8067_v63 }
 0x535   : > { %v1441_v17 = vpop.trf.xlu0 }
 0x536   : > { %7620 = vmatmul.mubr.msk.f32.vlgmr.msra.gmra.mxu1 %vm1072_vm2, %v1441_v17 }
 0x537   : > { %7628 = vmatpush3.xpose.msk.msra.mxu1 %vm1072_vm2, %v1411_v18  ;;  %v1473_v19 = vpop.trf.xlu1  ;;  %7629 = vmatprep.mubr.msk.f32.mxu1 %vm8473_vm0, %v8472_v0 }
 0x538   : > { %7625 = vmatmul.mubr.msk.f32.vlgmr.msra.gmra.mxu0 %vm1072_vm2, %v1473_v19  ;;  %7637 = vmatprep.subr.mxu1 %v8472_v0 }
 0x539   : > { %7633 = vmatpush3.xpose.msk.msra.mxu0 %vm1072_vm2, %v1412_v20  ;;  %v1505_v21 = vpop.trf.xlu0  ;;  %7634 = vmatprep.mubr.msk.f32.mxu0 %vm8473_vm0, %v8472_v0 }
 0x53a   : > { %7630 = vmatmul.mubr.msk.f32.vlgmr.msra.gmra.mxu1 %vm1072_vm2, %v1505_v21  ;;  %7648 = vmatprep.subr.mxu0 %v8472_v0 }
 0x53b   : > { %7645 = vmatprep.mubr.msk.f32.mxu1 %vm8473_vm0, %v8472_v0  ;;  %7638 = vmatpush3.msra.mxu1 %v2141_v33 }
 0x53c   : > { %7639 = vmatprep.subr.mxu1 %v8472_v0 }
 0x53d   : > { %v1537_v23 = vpop.trf.xlu0  ;;  %7640 = vmatpush3.msra.mxu1 %v2140_v58 }
 0x53e   : > { %7635 = vmatmul.mubr.msk.f32.vlgmr.msra.gmra.mxu0 %vm1072_vm2, %v1537_v23  ;;  %7641 = vmatprep.subr.mxu1 %v8472_v0 }
 0x53f   : > { %7656 = vmatprep.mubr.msk.f32.mxu0 %vm8473_vm0, %v8472_v0  ;;  %7642 = vmatpush3.msra.mxu1 %v2139_v59  ;;  %v9056_v59 = vsub.s32 0, %v8922_v22 }
 0x540   : > { %7643 = vmatprep.subr.mxu1 %v8472_v0 }
 0x541   : > { %7644 = vmatpush3.msra.mxu1 %v2138_v6 }
 0x542   : > { %7659 = vmatprep.subr.mxu1 %v8472_v0 }
 0x5f6   : > { %v1625_v24 = vpop.f32.mrf.mxu1 }
 0x5f7   : > { %1857 = vxpose.xlu1.b32.start.end [1/1] (short) (narrow) %v1625_v24, 8 }
 0x5f8   : > { %v7621_v26 = vpop.f32.mrf.mxu1  ;;  %v1701_v27 = vpop.f32.mrf.mxu0 }
 0x5f9   : > { %1889 = vxpose.xlu0.b32.start.end [1/1] (short) (narrow) %v1701_v27, 8 }
 0x5fa   : > { %v7626_v28 = vpop.f32.mrf.mxu0  ;;  %v1777_v29 = vpop.f32.mrf.mxu1 }
 0x5fb   : > { %1921 = vxpose.xlu1.b32.start.end [1/1] (short) (narrow) %v1777_v29, 8 }
 0x5fc   : > { %v7631_v30 = vpop.f32.mrf.mxu1 }
 0x5fe   : > { %v1853_v31 = vpop.f32.mrf.mxu0 }
 0x5ff   : > { %1953 = vxpose.xlu0.b32.start.end [1/1] (short) (narrow) %v1853_v31, 8  ;;  %v7339_v31 = vld [vmem:[#allocation10] ss:$0 sm:$0xff] }
 0x600   : > { %v7636_v32 = vpop.f32.mrf.mxu0 }
 0x673   : > { %v1873_v36 = vpop.trf.xlu1 }
 0x675   : > { %v1905_v39 = vpop.trf.xlu0 }
 0x677   : > { %v1937_v41 = vpop.trf.xlu1 }
 0x678   : > { %v1985_v44 = vcombine.low %v1873_v36, %v1937_v41  ;;  %v1986_v45 = vcombine.high %v1873_v36, %v1937_v41  ;;  %v828_v41 = vld [vmem:[%s9697_s20] sm:$0xff]  ;;  %s9767_s20 = sld [smem:[#allocation42_spill]] }
 0x67a   : > { %v1993_v50 = vrot.slane %v1985_v44, %v8973_v43  ;;  %v2000_v51 = vrot.slane %v1986_v45, %v8973_v43 }
 0x67b   : > { %v1969_v46 = vpop.trf.xlu0 }
 0x67c   : > { %v2001_v47 = vcombine.low %v1905_v39, %v1969_v46  ;;  %v2002_v48 = vcombine.high %v1905_v39, %v1969_v46  ;;  %v2332_v39 = vld [vmem:[#allocation13 + $0x8] sm:$0xff] }
 0x67e   : > { %v2009_v52 = vrot.slane %v2001_v47, %v8973_v43  ;;  %v2016_v53 = vrot.slane %v2002_v48, %v8973_v43  ;;  %v2250_v47 = vld [vmem:[%s9647_s7 + $0x18] sm:$0xff]  ;;  %v2249_v48 = vld [vmem:[%s9647_s7 + $0x10] sm:$0xff] }
 0x67f   : > { %7649 = vmatpush3.msra.mxu0 %v2250_v47 }
 0x680   : > { %v2017_v54 = vcombine.low %v1993_v50, %v2009_v52  ;;  %v2018_v55 = vcombine.high %v1993_v50, %v2009_v52  ;;  %v2033_v56 = vcombine.low %v2000_v51, %v2016_v53  ;;  %v2034_v57 = vcombine.high %v2000_v51, %v2016_v53  ;;  %7650 = vmatprep.subr.mxu0 %v8472_v0  ;;  %v2248_v50 = vld [vmem:[%s9647_s7 + $0x8] sm:$0xff]  ;;  %v2247_v51 = vld [vmem:[%s9647_s7] sm:$0xff] }
 0x681   : > { %7651 = vmatpush3.msra.mxu0 %v2249_v48  ;;  %v7343_v52 = vld [vmem:[%s9650_s10] ss:$0 sm:$0xff] }
 0x682   : > { %v2025_v60 = vrot.slane %v2017_v54, %v8976_v49  ;;  %v2032_v61 = vrot.slane %v2018_v55, %v8976_v49  ;;  %v2041_v62 = vrot.slane %v2033_v56, %v8976_v49  ;;  %v2048_v63 = vrot.slane %v2034_v57, %v8976_v49  ;;  %7652 = vmatprep.subr.mxu0 %v8472_v0 }
 0x683   : > { %7653 = vmatpush3.msra.mxu0 %v2248_v50 }
 0x684   : > { %v2053_v1 = vcombine.low %v2025_v60, %v2032_v61  ;;  %v7337_v2 = vcombine.high %v2025_v60, %v2032_v61  ;;  %v2069_v3 = vcombine.low %v2041_v62, %v2048_v63  ;;  %v7338_v4 = vcombine.high %v2041_v62, %v2048_v63  ;;  %7654 = vmatprep.subr.mxu0 %v8472_v0  ;;  %v9061_v60 = vld [vmem:[%s9657_s17] sm:$0x7] }
 0x685   : > { %7655 = vmatpush3.msra.mxu0 %v2247_v51  ;;  %v9066_v61 = vld [vmem:[%s9658_s18] sm:$0x7]  ;;  %v2240_v62 = vrot.slane %v9061_v60, %v9056_v59 }
 0x686   : > { %v2060_v7 = vrot.slane %v2053_v1, %v8973_v43  ;;  %v2068_v8 = vrot.slane %v7337_v2, %v8973_v43  ;;  %v2076_v9 = vrot.slane %v2069_v3, %v8973_v43  ;;  %v2084_v10 = vrot.slane %v7338_v4, %v8973_v43  ;;  %7670 = vmatprep.subr.mxu0 %v8472_v0 }
 0x687   : > { %v2245_v2 = vrot.slane %v9066_v61, %v9056_v59 }
 0x688   : > { %v2086_v11 = vcombine.high %v2060_v7, %v2068_v8  ;;  %v2102_v12 = vcombine.high %v2076_v9, %v2084_v10  ;;  %v2085_v13 = vcombine.low %v2060_v7, %v2068_v8  ;;  %v2101_v14 = vcombine.low %v2076_v9, %v2084_v10  ;;  %v7341_v8 = vld [vmem:[#allocation11] ss:$0 sm:$0xff] }
 0x68a   : > { %v2100_v15 = vrot.slane %v2086_v11, %v8976_v49  ;;  %v2116_v16 = vrot.slane %v2102_v12, %v8976_v49  ;;  %v2093_v17 = vrot.slane %v2085_v13, %v8976_v49  ;;  %v2109_v18 = vrot.slane %v2101_v14, %v8976_v49 }
 0x68c   : > { %v2119_v19 = vcombine.low %v2100_v15, %v2116_v16  ;;  %v2118_v20 = vcombine.high %v2093_v17, %v2109_v18  ;;  %v2117_v21 = vcombine.low %v2093_v17, %v2109_v18  ;;  %v2120_v23 = vcombine.high %v2100_v15, %v2116_v16 }
 0x68e   : > { %2126 = vrot.lane.b32.xlu0 %v2119_v19, %s9702_s15  ;;  %2122 = vrot.lane.b32.xlu1 %v2118_v20, %s9700_s5  ;;  %v829_v20 = vld [vmem:[%s735_s14] sm:$0x1]  ;;  %s9776_s14 = sld [smem:[#allocation44_spill]] }
 0x68f   : > { %vm836_vm6 = vcmp.gt.f32.partialorder %v829_v20, 0.5 }
 0x692   : > { %2130 = vrot.lane.b32.xlu1 %v2120_v23, %s9698_s21 }
 0x700   : > { %v2123_v24 = vpop.permute.xlu1 %2122  ;;  %v2127_v26 = vpop.permute.xlu0 %2126 }
 0x701   : > { %v2133_v27 = vsel %vm1072_vm2, %v2117_v21, %v2123_v24  ;;  %v837_v21 = vsel %vm836_vm6, -1e+09, %v8472_v0 }
 0x702   : > { %v2135_v29 = vsel %vm2134_vm4, %v2133_v27, %v2127_v26  ;;  %v9104_v23 = vrot.slane %v837_v21, %v9056_v59 }
 0x704   : > { %v2131_v28 = vpop.permute.xlu1 %2130 }
 0x705   : > { %v2137_v30 = vsel %vm2136_vm5, %v2135_v29, %v2131_v28 }
 0x706   : > { %7646 = vmatmul.mubr.msk.f32.vlgmr.msra.gmra.mxu1 %vm851_vm1, %v2137_v30 }
 0x707   : > { %7667 = vmatprep.mubr.msk.f32.mxu1 %vm8473_vm0, %v8472_v0  ;;  %7660 = vmatpush3.msra.mxu1 %v2334_v37 }
 0x708   : > { %7661 = vmatprep.subr.mxu1 %v8472_v0 }
 0x709   : > { %7662 = vmatpush3.msra.mxu1 %v2333_v38 }
 0x70a   : > { %7663 = vmatprep.subr.mxu1 %v8472_v0 }
 0x70b   : > { %7664 = vmatpush3.msra.mxu1 %v2332_v39 }
 0x70c   : > { %7665 = vmatprep.subr.mxu1 %v8472_v0 }
 0x70d   : > { %7666 = vmatpush3.msra.mxu1 %v2331_v40 }
 0x70e   : > { %7668 = vmatmul.mubr.msk.f32.vlgmr.msra.gmra.mxu1 %vm851_vm1, %v828_v41  ;;  %7680 = vmatprep.subr.mxu1 %v8472_v0 }
 0x70f   : > { %7682 = vmatprep.mubr.msk.f32.mxu1 %vm8473_vm0, %v8472_v0 }
 0x7c6   : > { %v2218_v32 = vpop.f32.mrf.mxu1 }
 0x7c7   : > { %v2219_v33 = vadd.f32 %v7339_v31, %v2218_v32 }
 0x7c8   : > { %v7647_v34 = vpop.f32.mrf.mxu1 }
 0x7c9   : > { %v2222_v35 = vadd.f32 %v2219_v33, %v8872_v5 }
 0x7cb   : > { %v2223_v36 = vsel %vm851_vm1, %v2222_v35, 0.0 }
 0x7cc   : > { %2224 = vadd.xlane.f32.xlu1 %v2223_v36 }
 0x7ce   : > { %v2411_v53 = vpop.f32.mrf.mxu1 }
 0x7cf   : > { %v9046_v54 = vadd.f32 %v7343_v52, %v2411_v53 }
 0x7d0   : > { %v7669_v55 = vpop.f32.mrf.mxu1 }
 0x7dd   : > { %2423 = vrot.lane.b32.xlu1 %v9046_v54, %s8475_s2 }
 0x7e1   : > { %2429 = vrot.lane.b32.xlu1 %v9046_v54, %s9706_s28 }
 0x855   : > { %v2225_v5 = vpop.xlane.xlu1 %2224 }
 0x856   : > { %v2227_v42 = vmul.f32 0.03125, %v2225_v5 }
 0x858   : > { %v2228_v44 = vsub.f32 %v2222_v35, %v2227_v42 }
 0x859   : > { %v2424_v12 = vpop.permute.xlu1 %2423 }
 0x85a   : > { %v2229_v45 = vmul.f32 %v2228_v44, %v2228_v44 }
 0x85c   : > { %v2230_v46 = vsel %vm851_vm1, %v2229_v45, 0.0 }
 0x85d   : > { %2231 = vadd.xlane.f32.xlu0 %v2230_v46  ;;  %v2430_v13 = vpop.permute.xlu1 %2429 }
 0x873   : > { %2426 = vrot.lane.b32.xlu0 %v9046_v54, %s8477_s12 }
 0x891   : > { %2432 = vxpose.xlu0.b32.start.end [1/1] (short) (narrow) %v9046_v54, 8 }
 0x8e6   : > { %v2232_v56 = vpop.xlane.xlu0 %2231 }
 0x8e7   : > { %v2233_v57 = vmul.f32 0.03125, %v2232_v56 }
 0x8e9   : > { %v2234_v58 = vadd.f32 1e-05, %v2233_v57 }
 0x8ea   : > { %v9078_v6 = vpop.permute.xlu0 %2426 }
 0x8eb   : > { %8076 = vrsqrt.f32 %v2234_v58 }
 0x8f8   : > { %v8077_v63 = vpop.eup %8076 }
 0x8f9   : > { %v2236_v1 = vmul.f32 %v8077_v63, %v2228_v44 }
 0x8fb   : > { %v2241_v3 = vmul.f32 %v2240_v62, %v2236_v1 }
 0x8fd   : > { %v9072_v4 = vadd.f32 %v2245_v2, %v2241_v3 }
 0x8ff   : > { %7657 = vmatmul.mubr.msk.f32.vlgmr.msra.gmra.mxu0 %vm851_vm1, %v9072_v4 }
 0x900   : > { %7672 = vmatprep.mubr.msk.f32.mxu0 %vm8473_vm0, %v8472_v0 }
 0x90d   : > { %v2448_v7 = vpop.trf.xlu0 }
 0x90e   : > { %7671 = vmatpush3.msra.mxu0 %v2448_v7 }
 0x90f   : > { %7675 = vmatprep.subr.mxu0 %v8472_v0 }
 0x9bf   : > { %v2327_v9 = vpop.f32.mrf.mxu0 }
 0x9c0   : > { %v2328_v10 = vadd.f32 %v7341_v8, %v2327_v9 }
 0x9c1   : > { %v7658_v11 = vpop.f32.mrf.mxu0 }
 0x9c2   : > { %2418 = vrot.lane.b32.xlu0 %v2328_v10, %s8477_s12  ;;  %2416 = vrot.lane.b32.xlu1 %v2328_v10, %s8475_s2 }
 0x9c3   : > { %7673 = vmatmul.mubr.msk.f32.vlgmr.msra.gmra.mxu0 %vm1072_vm2, %v2328_v10 }
 0x9c4   : > { %7677 = vmatprep.mubr.msk.f32.mxu0 %vm8473_vm0, %v8472_v0 }
 0x9c6   : > { %2420 = vrot.lane.b32.xlu1 %v2328_v10, %s9706_s28 }
 0x9e0   : > { %2496 = vxpose.xlu0.b32.start.end [1/1] (short) (narrow) %v9078_v6, 8 }
 0x9e4   : > { %2528 = vxpose.xlu0.b32.start.end [1/1] (short) (narrow) %v2430_v13, 8 }
 0x9ef   : > { %2464 = vxpose.xlu1.b32.start.end [1/1] (short) (narrow) %v2424_v12, 8 }
 0xa34   : > { %v2419_v14 = vpop.permute.xlu0 %2418  ;;  %v2417_v16 = vpop.permute.xlu1 %2416 }
 0xa38   : > { %v2421_v17 = vpop.permute.xlu1 %2420 }
 0xa5c   : > { %v2512_v15 = vpop.trf.xlu0 }
 0xa5d   : > { %7681 = vmatpush3.msra.mxu1 %v2512_v15 }
 0xa5e   : > { %7683 = vmatmul.mubr.msk.f32.vlgmr.msra.gmra.mxu1 %vm1072_vm2, %v2419_v14  ;;  %7690 = vmatprep.subr.mxu1 %v8472_v0 }
 0xa5f   : > { %7692 = vmatprep.mubr.msk.f32.mxu1 %vm8473_vm0, %v8472_v0 }
 0xa60   : > { %v2544_v19 = vpop.trf.xlu0 }
 0xa6b   : > { %v2480_v18 = vpop.trf.xlu1 }
 0xa6c   : > { %7676 = vmatpush3.msra.mxu0 %v2480_v18 }
 0xa6d   : > { %7678 = vmatmul.mubr.msk.f32.vlgmr.msra.gmra.mxu0 %vm1072_vm2, %v2417_v16  ;;  %7685 = vmatprep.subr.mxu0 %v8472_v0 }
 0xa6e   : > { %7686 = vmatpush3.msra.mxu0 %v2544_v19  ;;  %7687 = vmatprep.mubr.msk.f32.mxu0 %vm8473_vm0, %v8472_v0 }
 0xa6f   : > { %7695 = vmatprep.subr.mxu0 %v8472_v0 }
 0xa71   : > { %7688 = vmatmul.mubr.msk.f32.vlgmr.msra.gmra.mxu0 %vm1072_vm2, %v2421_v17 }
 0xa72   : > { %7697 = vmatprep.mubr.msk.f32.mxu0 %vm8473_vm0, %v8472_v0 }
 0xa83   : > { %v2628_v24 = vpop.f32.mrf.mxu0 }
 0xa84   : > { %v2848_v26 = vmul.f32 0.35355338, %v2628_v24 }
 0xa85   : > { %v7674_v27 = vpop.f32.mrf.mxu0 }
 0xa86   : > { %v2858_v28 = vadd.f32 %v9104_v23, %v2848_v26 }
 0xa88   : > { %v2862_v29 = vsel %vm1072_vm2, %v2858_v28, -inf }
 0xa89   : > { %2863 = vmax.xlane.f32.xlu0 %v2862_v29 }
 0xb12   : > { %v2864_v45 = vpop.xlane.xlu0 %2863 }
 0xb13   : > { %v2874_v46 = vsub.f32 %v2858_v28, %v2864_v45 }
 0xb15   : > { %v2878_v47 = vmul.f32 1.442695, %v2874_v46 }
 0xb17   : > { %8078 = vpow2.f32 %v2878_v47 }
 0xb1e   : > { %v2772_v30 = vpop.f32.mrf.mxu1 }
 0xb1f   : > { %v2850_v33 = vmul.f32 0.35355338, %v2772_v30 }
 0xb20   : > { %v7684_v31 = vpop.f32.mrf.mxu1 }
 0xb21   : > { %v2860_v40 = vadd.f32 %v9104_v23, %v2850_v33 }
 0xb23   : > { %v2868_v42 = vsel %vm1072_vm2, %v2860_v40, -inf }
 0xb24   : > { %v8079_v48 = vpop.eup %8078 }
 0xb25   : > { %v2886_v50 = vsel %vm1072_vm2, %v8079_v48, 0.0 }
 0xb2d   : > { %v2700_v32 = vpop.f32.mrf.mxu0 }
 0xb2e   : > { %v2849_v34 = vmul.f32 0.35355338, %v2700_v32 }
 0xb2f   : > { %v7679_v35 = vpop.f32.mrf.mxu0 }
 0xb30   : > { %v2859_v36 = vadd.f32 %v9104_v23, %v2849_v34 }
 0xb31   : > { %v2844_v37 = vpop.f32.mrf.mxu0 }
 0xb32   : > { %v2851_v38 = vmul.f32 0.35355338, %v2844_v37  ;;  %v2865_v39 = vsel %vm1072_vm2, %v2859_v36, -inf }
 0xb33   : > { %2866 = vmax.xlane.f32.xlu1 %v2865_v39  ;;  %v7689_v41 = vpop.f32.mrf.mxu0  ;;  %v3632_v39 = vld [vmem:[#allocation14 + $0x18] sm:$0xff] }
 0xb34   : > { %v2861_v5 = vadd.f32 %v9104_v23, %v2851_v38 }
 0xb36   : > { %v2871_v44 = vsel %vm1072_vm2, %v2861_v5, -inf }
 0xb37   : > { %2869 = vmax.xlane.f32.xlu1 %v2868_v42  ;;  %2872 = vmax.xlane.f32.xlu0 %v2871_v44 }
 0xb48   : > { %2906 = vrot.lane.b32.xlu1 %v9046_v54, %s9704_s19 }
 0xb4c   : > { %2910 = vrot.lane.b32.xlu1 %v9078_v6, %s9704_s19 }
 0xb4d   : > { %2908 = vrot.lane.b32.xlu0 %v2424_v12, %s9704_s19 }
 0xb51   : > { %2912 = vrot.lane.b32.xlu0 %v2430_v13, %s9704_s19 }
 0xb70   : > { %2887 = vadd.xlane.f32.xlu1 %v2886_v50 }
 0xbbc   : > { %v2867_v51 = vpop.xlane.xlu1 %2866 }
 0xbbd   : > { %v2875_v52 = vsub.f32 %v2859_v36, %v2867_v51 }
 0xbbf   : > { %v2880_v53 = vmul.f32 1.442695, %v2875_v52 }
 0xbc0   : > { %v2870_v55 = vpop.xlane.xlu1 %2869  ;;  %v2873_v54 = vpop.xlane.xlu0 %2872 }
 0xbc1   : > { %8080 = vpow2.f32 %v2880_v53  ;;  %v2876_v56 = vsub.f32 %v2860_v40, %v2870_v55  ;;  %v2877_v57 = vsub.f32 %v2861_v5, %v2873_v54 }
 0xbc3   : > { %v2882_v58 = vmul.f32 1.442695, %v2876_v56  ;;  %v2884_v62 = vmul.f32 1.442695, %v2877_v57  ;;  %v3631_v57 = vld [vmem:[#allocation14 + $0x10] sm:$0xff] }
 0xbc4   : > { %v2907_v8 = vpop.permute.xlu1 %2906  ;;  %v2909_v11 = vpop.permute.xlu0 %2908 }
 0xbc5   : > { %8082 = vpow2.f32 %v2882_v58  ;;  %v3630_v58 = vld [vmem:[#allocation14 + $0x8] sm:$0xff] }
 0xbc6   : > { %8084 = vpow2.f32 %v2884_v62 }
 0xbc8   : > { %v2911_v9 = vpop.permute.xlu1 %2910  ;;  %v2913_v14 = vpop.permute.xlu0 %2912 }
 0xbce   : > { %v8081_v63 = vpop.eup %8080 }
 0xbcf   : > { %v2889_v1 = vsel %vm1072_vm2, %v8081_v63, 0.0 }
 0xbd0   : > { %2890 = vadd.xlane.f32.xlu0 %v2889_v1 }
 0xbd2   : > { %v8083_v2 = vpop.eup %8082 }
 0xbd3   : > { %v8085_v3 = vpop.eup %8084  ;;  %v2892_v6 = vsel %vm1072_vm2, %v8083_v2, 0.0 }
 0xbd4   : > { %2893 = vadd.xlane.f32.xlu1 %v2892_v6  ;;  %v2895_v7 = vsel %vm1072_vm2, %v8085_v3, 0.0 }
 0xbd5   : > { %2896 = vadd.xlane.f32.xlu0 %v2895_v7 }
 0xbf9   : > { %v2888_v10 = vpop.xlane.xlu1 %2887 }
 0xbfa   : > { %8086 = vrcp.f32 %v2888_v10 }
 0xc02   : > { %2950 = vxpose.xlu0.b32.start.end [1/1] (short) (narrow) %v2909_v11, 8 }
 0xc06   : > { %2982 = vxpose.xlu0.b32.start.end [1/1] (short) (narrow) %v2911_v9, 8  ;;  %v3629_v9 = vld [vmem:[#allocation14] sm:$0xff] }
 0xc07   : > { %v8087_v12 = vpop.eup %8086  ;;  %2918 = vxpose.xlu1.b32.start.end [1/1] (short) (narrow) %v2907_v8, 8 }
 0xc08   : > { %v2902_v13 = vmul.f32 %v8087_v12, %v8079_v48 }
 0xc0a   : > { %7691 = vmatpush3.xpose.msk.msra.mxu1 %vm1072_vm2, %v2902_v13 }
 0xc0b   : > { %3014 = vxpose.xlu1.b32.start.end [1/1] (short) (narrow) %v2913_v14, 8  ;;  %7700 = vmatprep.subr.mxu1 %v8472_v0 }
 0xc59   : > { %v2891_v15 = vpop.xlane.xlu0 %2890 }
 0xc5a   : > { %8088 = vrcp.f32 %v2891_v15 }
 0xc5d   : > { %v2894_v19 = vpop.xlane.xlu1 %2893 }
 0xc5e   : > { %v2897_v18 = vpop.xlane.xlu0 %2896 }
 0xc5f   : > { %8090 = vrcp.f32 %v2897_v18 }
 0xc60   : > { %8092 = vrcp.f32 %v2894_v19 }
 0xc67   : > { %v8089_v16 = vpop.eup %8088 }
 0xc68   : > { %v2903_v17 = vmul.f32 %v8089_v16, %v8081_v63 }
 0xc6a   : > { %7696 = vmatpush3.xpose.msk.msra.mxu0 %vm1072_vm2, %v2903_v17 }
 0xc6b   : > { %7705 = vmatprep.subr.mxu0 %v8472_v0 }
 0xc6c   : > { %v8091_v20 = vpop.eup %8090 }
 0xc6d   : > { %v2905_v24 = vmul.f32 %v8091_v20, %v8085_v3  ;;  %v8093_v26 = vpop.eup %8092 }
 0xc6e   : > { %v2904_v28 = vmul.f32 %v8093_v26, %v8083_v2 }
 0xc7e   : > { %v2966_v21 = vpop.trf.xlu0 }
 0xc7f   : > { %7698 = vmatmul.mubr.msk.f32.vlgmr.msra.gmra.mxu0 %vm1072_vm2, %v2966_v21 }
 0xc80   : > { %7706 = vmatpush3.xpose.msk.msra.mxu0 %vm1072_vm2, %v2905_v24  ;;  %7707 = vmatprep.mubr.msk.f32.mxu0 %vm8473_vm0, %v8472_v0 }
 0xc81   : > { %7721 = vmatprep.subr.mxu0 %v8472_v0 }
 0xc82   : > { %v2998_v29 = vpop.trf.xlu0 }
 0xc83   : > { %v2934_v27 = vpop.trf.xlu1 }
 0xc84   : > { %7693 = vmatmul.mubr.msk.f32.vlgmr.msra.gmra.mxu1 %vm1072_vm2, %v2934_v27 }
 0xc85   : > { %7701 = vmatpush3.xpose.msk.msra.mxu1 %vm1072_vm2, %v2904_v28  ;;  %7702 = vmatprep.mubr.msk.f32.mxu1 %vm8473_vm0, %v8472_v0 }
 0xc86   : > { %7710 = vmatprep.subr.mxu1 %v8472_v0 }
 0xc87   : > { %v3030_v30 = vpop.trf.xlu1 }
 0xc88   : > { %7703 = vmatmul.mubr.msk.f32.vlgmr.msra.gmra.mxu1 %vm1072_vm2, %v2998_v29  ;;  %7708 = vmatmul.mubr.msk.f32.vlgmr.msra.gmra.mxu0 %vm1072_vm2, %v3030_v30 }
 0xc89   : > { %7718 = vmatprep.mubr.msk.f32.mxu1 %vm8473_vm0, %v8472_v0  ;;  %7729 = vmatprep.mubr.msk.f32.mxu0 %vm8473_vm0, %v8472_v0 }
 0xc8a   : > { %7711 = vmatpush3.msra.mxu1 %v3632_v39 }
 0xc8b   : > { %7712 = vmatprep.subr.mxu1 %v8472_v0 }
 0xc8c   : > { %7713 = vmatpush3.msra.mxu1 %v3631_v57 }
 0xc8d   : > { %7714 = vmatprep.subr.mxu1 %v8472_v0 }
 0xc8e   : > { %7715 = vmatpush3.msra.mxu1 %v3630_v58  ;;  %v9204_v58 = vsub.s32 1, %v8922_v22 }
 0xc8f   : > { %7716 = vmatprep.subr.mxu1 %v8472_v0 }
 0xc90   : > { %7717 = vmatpush3.msra.mxu1 %v3629_v9  ;;  %v3822_v9 = vld [vmem:[%s9767_s20] sm:$0xff] }
 0xc91   : > { %7732 = vmatprep.subr.mxu1 %v8472_v0 }
 0xd3f   : > { %v3194_v31 = vpop.f32.mrf.mxu0 }
 0xd40   : > { %3382 = vxpose.xlu1.b32.start.end [1/1] (short) (narrow) %v3194_v31, 8 }
 0xd41   : > { %v7699_v32 = vpop.f32.mrf.mxu0 }
 0xd44   : > { %v3118_v33 = vpop.f32.mrf.mxu1 }
 0xd45   : > { %3350 = vxpose.xlu0.b32.start.end [1/1] (short) (narrow) %v3118_v33, 8 }
 0xd46   : > { %v7694_v34 = vpop.f32.mrf.mxu1 }
 0xd48   : > { %v3270_v35 = vpop.f32.mrf.mxu1  ;;  %v3346_v36 = vpop.f32.mrf.mxu0 }
 0xd49   : > { %3414 = vxpose.xlu0.b32.start.end [1/1] (short) (narrow) %v3270_v35, 8  ;;  %3446 = vxpose.xlu1.b32.start.end [1/1] (short) (narrow) %v3346_v36, 8  ;;  %v7359_v35 = vld [vmem:[%s9766_s24] ss:$0 sm:$0xff] }
 0xd4a   : > { %v7704_v37 = vpop.f32.mrf.mxu1  ;;  %v7709_v38 = vpop.f32.mrf.mxu0 }
 0xdbc   : > { %v3398_v40 = vpop.trf.xlu1 }
 0xdc1   : > { %v3366_v41 = vpop.trf.xlu0 }
 0xdc5   : > { %v3430_v5 = vpop.trf.xlu0  ;;  %v3462_v42 = vpop.trf.xlu1 }
 0xdc6   : > { %v3478_v44 = vcombine.low %v3366_v41, %v3430_v5  ;;  %v3479_v45 = vcombine.high %v3366_v41, %v3430_v5  ;;  %v3494_v46 = vcombine.low %v3398_v40, %v3462_v42  ;;  %v3495_v47 = vcombine.high %v3398_v40, %v3462_v42 }
 0xdc8   : > { %v3486_v48 = vrot.slane %v3478_v44, %v8973_v43  ;;  %v3493_v50 = vrot.slane %v3479_v45, %v8973_v43  ;;  %v3502_v51 = vrot.slane %v3494_v46, %v8973_v43  ;;  %v3509_v52 = vrot.slane %v3495_v47, %v8973_v43  ;;  %v3740_v46 = vld [vmem:[#allocation16 + $0x18] sm:$0xff]  ;;  %v3739_v47 = vld [vmem:[#allocation16 + $0x10] sm:$0xff] }
 0xdc9   : > { %7722 = vmatpush3.msra.mxu0 %v3740_v46 }
 0xdca   : > { %v3510_v53 = vcombine.low %v3486_v48, %v3502_v51  ;;  %v3511_v55 = vcombine.high %v3486_v48, %v3502_v51  ;;  %v3526_v54 = vcombine.low %v3493_v50, %v3509_v52  ;;  %v3527_v56 = vcombine.high %v3493_v50, %v3509_v52  ;;  %7723 = vmatprep.subr.mxu0 %v8472_v0  ;;  %v3738_v48 = vld [vmem:[#allocation16 + $0x8] sm:$0xff]  ;;  %v3829_v50 = vld [vmem:[%s9767_s20 + $0x38] sm:$0xff]  ;;  %v3827_v52 = vld [vmem:[%s9767_s20 + $0x28] sm:$0xff] }
 0xdcb   : > { %7724 = vmatpush3.msra.mxu0 %v3739_v47  ;;  %v3828_v51 = vld [vmem:[%s9767_s20 + $0x30] sm:$0xff] }
 0xdcc   : > { %v3518_v62 = vrot.slane %v3510_v53, %v8976_v49  ;;  %v3525_v63 = vrot.slane %v3511_v55, %v8976_v49  ;;  %v3534_v1 = vrot.slane %v3526_v54, %v8976_v49  ;;  %v3541_v2 = vrot.slane %v3527_v56, %v8976_v49  ;;  %7725 = vmatprep.subr.mxu0 %v8472_v0  ;;  %v3826_v53 = vld [vmem:[%s9767_s20 + $0x20] sm:$0xff]  ;;  %v3825_v55 = vld [vmem:[%s9767_s20 + $0x18] sm:$0xff] }
 0xdcd   : > { %7726 = vmatpush3.msra.mxu0 %v3738_v48 }
 0xdce   : > { %v3546_v3 = vcombine.low %v3518_v62, %v3525_v63  ;;  %v7357_v6 = vcombine.high %v3518_v62, %v3525_v63  ;;  %v3562_v7 = vcombine.low %v3534_v1, %v3541_v2  ;;  %v7358_v8 = vcombine.high %v3534_v1, %v3541_v2  ;;  %7727 = vmatprep.subr.mxu0 %v8472_v0 }
 0xdcf   : > { %v3730_v62 = vrot.slane %v9061_v60, %v9204_v58  ;;  %v3735_v2 = vrot.slane %v9066_v61, %v9204_v58 }
 0xdd0   : > { %v3553_v10 = vrot.slane %v3546_v3, %v8973_v43  ;;  %v3561_v11 = vrot.slane %v7357_v6, %v8973_v43  ;;  %v3569_v12 = vrot.slane %v3562_v7, %v8973_v43  ;;  %v3577_v13 = vrot.slane %v7358_v8, %v8973_v43  ;;  %v3824_v7 = vld [vmem:[%s9767_s20 + $0x10] sm:$0xff]  ;;  %v3823_v8 = vld [vmem:[%s9767_s20 + $0x8] sm:$0xff] }
 0xdd2   : > { %v3579_v14 = vcombine.high %v3553_v10, %v3561_v11  ;;  %v3595_v15 = vcombine.high %v3569_v12, %v3577_v13  ;;  %v3578_v16 = vcombine.low %v3553_v10, %v3561_v11  ;;  %v3594_v17 = vcombine.low %v3569_v12, %v3577_v13  ;;  %v7361_v10 = vld [vmem:[%s9768_s8] ss:$0 sm:$0xff] }
 0xdd4   : > { %v3593_v18 = vrot.slane %v3579_v14, %v8976_v49  ;;  %v3609_v19 = vrot.slane %v3595_v15, %v8976_v49  ;;  %v3586_v20 = vrot.slane %v3578_v16, %v8976_v49  ;;  %v3602_v21 = vrot.slane %v3594_v17, %v8976_v49  ;;  %v7363_v15 = vld [vmem:[%s9769_s0] ss:$0 sm:$0xff] }
 0xdd6   : > { %v3612_v24 = vcombine.low %v3593_v18, %v3609_v19  ;;  %v3611_v26 = vcombine.high %v3586_v20, %v3602_v21  ;;  %v3610_v27 = vcombine.low %v3586_v20, %v3602_v21  ;;  %v3613_v28 = vcombine.high %v3593_v18, %v3609_v19 }
 0xdd8   : > { %3619 = vrot.lane.b32.xlu1 %v3612_v24, %s9702_s15  ;;  %3615 = vrot.lane.b32.xlu0 %v3611_v26, %s9700_s5  ;;  %s9772_s15 = smov 24   ;;  %s9773_s5 = scalar_lea.vmem [#allocation5], %s8825_s9 }
 0xdd9   : > { %s8383_s9 = scalar_lea.vmem %s8382_s29, 256 }
 0xddc   : > { %3623 = vrot.lane.b32.xlu1 %v3613_v28, %s9698_s21  ;;  %s9777_s21 = sld [smem:[#allocation28_spill]] }
 0xde2   : > { %p9780_p1 = scmp.ne.s32.totalorder %s9777_s21, 0 }
 0xe4a   : > { %v3620_v29 = vpop.permute.xlu1 %3619  ;;  %v3616_v30 = vpop.permute.xlu0 %3615 }
 0xe4b   : > { %v3626_v31 = vsel %vm1072_vm2, %v3610_v27, %v3616_v30  ;;  %v7369_v30 = vld [vmem:[%s9764_s4 + $0x30] sm:$0xff] }
 0xe4c   : > { %v3627_v33 = vsel %vm2134_vm4, %v3626_v31, %v3620_v29  ;;  %v7370_v29 = vld [vmem:[%s9764_s4 + $0x38] sm:$0xff]  ;;  %v7368_v31 = vld [vmem:[%s9764_s4 + $0x28] sm:$0xff] }
 0xe4e   : > { %v3624_v32 = vpop.permute.xlu1 %3623 }
 0xe4f   : > { %v3628_v34 = vsel %vm2136_vm5, %v3627_v33, %v3624_v32  ;;  %v7367_v32 = vld [vmem:[%s9764_s4 + $0x20] sm:$0xff] }
 0xe50   : > { %7719 = vmatmul.mubr.msk.f32.vlgmr.msra.gmra.mxu1 %vm851_vm1, %v3628_v34 }
 0xe51   : > { %7748 = vmatprep.mubr.msk.f32.mxu1 %vm8473_vm0, %v8472_v0  ;;  %7733 = vmatpush3.msra.mxu1 %v3829_v50 }
 0xe52   : > { %7734 = vmatprep.subr.mxu1 %v8472_v0 }
 0xe53   : > { %7735 = vmatpush3.msra.mxu1 %v3828_v51 }
 0xe54   : > { %7736 = vmatprep.subr.mxu1 %v8472_v0 }
 0xe55   : > { %7737 = vmatpush3.msra.mxu1 %v3827_v52 }
 0xe56   : > { %7738 = vmatprep.subr.mxu1 %v8472_v0 }
 0xe57   : > { %7739 = vmatpush3.msra.mxu1 %v3826_v53 }
 0xe58   : > { %7740 = vmatprep.subr.mxu1 %v8472_v0 }
 0xe59   : > { %7741 = vmatpush3.msra.mxu1 %v3825_v55 }
 0xe5a   : > { %7742 = vmatprep.subr.mxu1 %v8472_v0 }
 0xe5b   : > { %7743 = vmatpush3.msra.mxu1 %v3824_v7 }
 0xe5c   : > { %7744 = vmatprep.subr.mxu1 %v8472_v0 }
 0xe5d   : > { %7745 = vmatpush3.msra.mxu1 %v3823_v8 }
 0xe5e   : > { %7746 = vmatprep.subr.mxu1 %v8472_v0 }
 0xe5f   : > { %7747 = vmatpush3.msra.mxu1 %v3822_v9 }
 0xe60   : > { %7772 = vmatprep.subr.mxu1 %v8472_v0 }
 0xf10   : > { %v3709_v36 = vpop.f32.mrf.mxu1 }
 0xf11   : > { %v3710_v37 = vadd.f32 %v7359_v35, %v3709_v36  ;;  %v9253_v36 = vsub.s32 2, %v8922_v22 }
 0xf12   : > { %v7720_v38 = vpop.f32.mrf.mxu1 }
 0xf13   : > { %v3713_v39 = vadd.f32 %v3710_v37, %v9072_v4  ;;  %v3737_v4 = vld [vmem:[#allocation16] sm:$0xff]  ;;  %v3928_v37 = vrot.slane %v9061_v60, %v9253_v36 }
 0xf14   : > { %7728 = vmatpush3.msra.mxu0 %v3737_v4 }
 0xf15   : > { %v3714_v40 = vsel %vm851_vm1, %v3713_v39, 0.0  ;;  %7751 = vmatprep.subr.mxu0 %v8472_v0 }
 0xf16   : > { %3715 = vadd.xlane.f32.xlu1 %v3714_v40  ;;  %v3933_v40 = vrot.slane %v9066_v61, %v9253_v36 }
 0xf9f   : > { %v3716_v41 = vpop.xlane.xlu1 %3715 }
 0xfa0   : > { %v3717_v5 = vmul.f32 0.03125, %v3716_v41 }
 0xfa2   : > { %v3718_v42 = vsub.f32 %v3713_v39, %v3717_v5 }
 0xfa4   : > { %v3719_v44 = vmul.f32 %v3718_v42, %v3718_v42 }
 0xfa6   : > { %v3720_v45 = vsel %vm851_vm1, %v3719_v44, 0.0 }
 0xfa7   : > { %3721 = vadd.xlane.f32.xlu0 %v3720_v45 }
0x1030   : > { %v3722_v54 = vpop.xlane.xlu0 %3721 }
0x1031   : > { %v3723_v56 = vmul.f32 0.03125, %v3722_v54 }
0x1033   : > { %v3724_v57 = vadd.f32 1e-05, %v3723_v56 }
0x1035   : > { %8094 = vrsqrt.f32 %v3724_v57 }
0x1042   : > { %v8095_v63 = vpop.eup %8094 }
0x1043   : > { %v3726_v1 = vmul.f32 %v8095_v63, %v3718_v42  ;;  %v7371_v42 = vld [vmem:[#allocation8 + $0x1] ss:$0 sm:$0xff] }
0x1045   : > { %v3731_v3 = vmul.f32 %v3730_v62, %v3726_v1 }
0x1047   : > { %v3736_v6 = vadd.f32 %v3735_v2, %v3731_v3 }
0x1049   : > { %7730 = vmatmul.mubr.msk.f32.vlgmr.msra.gmra.mxu0 %vm851_vm1, %v3736_v6 }
0x104a   : > { %7759 = vmatprep.mubr.msk.f32.mxu0 %vm8473_vm0, %v8472_v0  ;;  %7752 = vmatpush3.msra.mxu0 %v7370_v29 }
0x104b   : > { %7753 = vmatprep.subr.mxu0 %v8472_v0 }
0x104c   : > { %7754 = vmatpush3.msra.mxu0 %v7369_v30 }
0x104d   : > { %7755 = vmatprep.subr.mxu0 %v8472_v0 }
0x104e   : > { %7756 = vmatpush3.msra.mxu0 %v7368_v31 }
0x104f   : > { %7757 = vmatprep.subr.mxu0 %v8472_v0 }
0x1050   : > { %7758 = vmatpush3.msra.mxu0 %v7367_v32 }
0x1051   : > { %7762 = vmatprep.subr.mxu0 %v8472_v0 }
0x1109   : > { %v3817_v11 = vpop.f32.mrf.mxu0 }
0x110a   : > { %v3818_v12 = vadd.f32 %v7361_v10, %v3817_v11 }
0x110b   : > { %v7731_v13 = vpop.f32.mrf.mxu0 }
0x110c   : > { %v3821_v14 = vmax.f32 %v3818_v12, 0.0 }
0x110e   : > { %7749 = vmatmul.mubr.msk.f32.vlgmr.msra.gmra.mxu1 %vm3837_vm7, %v3821_v14 }
0x110f   : > { %7774 = vmatprep.mubr.msk.f32.mxu1 %vm8473_vm0, %v8472_v0 }
0x11ce   : > { %v3907_v16 = vpop.f32.mrf.mxu1 }
0x11cf   : > { %v3908_v17 = vadd.f32 %v7363_v15, %v3907_v16 }
0x11d0   : > { %v7750_v18 = vpop.f32.mrf.mxu1 }
0x11d1   : > { %v3911_v19 = vadd.f32 %v3908_v17, %v3736_v6 }
0x11d3   : > { %v3912_v20 = vsel %vm851_vm1, %v3911_v19, 0.0 }
0x11d4   : > { %3913 = vadd.xlane.f32.xlu0 %v3912_v20 }
0x125d   : > { %v3914_v21 = vpop.xlane.xlu0 %3913 }
0x125e   : > { %v3915_v24 = vmul.f32 0.03125, %v3914_v21 }
0x1260   : > { %v3916_v26 = vsub.f32 %v3911_v19, %v3915_v24 }
0x1262   : > { %v3917_v27 = vmul.f32 %v3916_v26, %v3916_v26 }
0x1264   : > { %v3918_v28 = vsel %vm851_vm1, %v3917_v27, 0.0 }
0x1265   : > { %3919 = vadd.xlane.f32.xlu1 %v3918_v28 }
0x12ee   : > { %v3920_v33 = vpop.xlane.xlu1 %3919 }
0x12ef   : > { %v3921_v34 = vmul.f32 0.03125, %v3920_v33 }
0x12f1   : > { %v3922_v35 = vadd.f32 1e-05, %v3921_v34 }
0x12f3   : > { %8096 = vrsqrt.f32 %v3922_v35 }
0x1300   : > { %v8097_v38 = vpop.eup %8096 }
0x1301   : > { %v3924_v39 = vmul.f32 %v8097_v38, %v3916_v26 }
0x1303   : > { %v3929_v41 = vmul.f32 %v3928_v37, %v3924_v39 }
0x1305   : > { %v9259_v5 = vadd.f32 %v3933_v40, %v3929_v41 }
0x1307   : > { %7760 = vmatmul.mubr.msk.f32.vlgmr.msra.gmra.mxu0 %vm851_vm1, %v9259_v5 }
0x1308   : > { %7764 = vmatprep.mubr.msk.f32.mxu0 %vm8473_vm0, %v8472_v0 }
0x13c7   : > { %v4021_v22 = vpop.f32.mrf.mxu0 }
0x13c8   : > { %v9265_v44 = vadd.f32 %v7371_v42, %v4021_v22 }
0x13c9   : > { %v7761_v45 = vpop.f32.mrf.mxu0 }
0x13ca   : > { %4028 = vrot.lane.b32.xlu1 %v9265_v44, %s8477_s12  ;;  %4026 = vrot.lane.b32.xlu0 %v9265_v44, %s8475_s2 }
0x13ce   : > { %4030 = vrot.lane.b32.xlu1 %v9265_v44, %s9706_s28  ;;  %4032 = vrot.lane.b32.xlu0 %v9265_v44, %s9704_s19  ;;  %s9774_s28 = smov 104  }
0x143c   : > { %v4029_v60 = vpop.permute.xlu1 %4028  ;;  %v4027_v61 = vpop.permute.xlu0 %4026 }
0x143d   : > { %4036 = vrot.lane.b32.xlu0 %v4029_v60, %s9704_s19  ;;  %4034 = vrot.lane.b32.xlu1 %v4027_v61, %s9704_s19 }
0x1440   : > { %v4031_v46 = vpop.permute.xlu1 %4030  ;;  %v4033_v47 = vpop.permute.xlu0 %4032 }
0x1441   : > { %4038 = vrot.lane.b32.xlu1 %v4031_v46, %s9704_s19  ;;  %s9778_s19 = sld [smem:[#allocation45_spill]] }
0x145b   : > { %4044 = vxpose.xlu0.b32.start.end [1/1] (short) (narrow) %v4033_v47, 8 }
0x14af   : > { %v4035_v48 = vpop.permute.xlu1 %4034  ;;  %v4037_v4 = vpop.permute.xlu0 %4036 }
0x14b0   : > { %4076 = vxpose.xlu1.b32.start.end [1/1] (short) (narrow) %v4035_v48, 8  ;;  %4108 = vxpose.xlu0.b32.start.end [1/1] (short) (narrow) %v4037_v4, 8 }
0x14b3   : > { %v4039_v50 = vpop.permute.xlu1 %4038 }
0x14b4   : > { %4140 = vxpose.xlu0.b32.start.end [1/1] (short) (narrow) %v4039_v50, 8 }
0x14d7   : > { %v4060_v51 = vpop.trf.xlu0 }
0x14d8   : > { %7763 = vmatpush3.msra.mxu0 %v4060_v51 }
0x14d9   : > { %7765 = vmatmul.mubr.msk.f32.vlgmr.msra.gmra.mxu0 %vm1072_vm2, %v9265_v44  ;;  %7767 = vmatprep.subr.mxu0 %v8472_v0 }
0x14da   : > { %7769 = vmatprep.mubr.msk.f32.mxu0 %vm8473_vm0, %v8472_v0 }
0x152c   : > { %v4092_v52 = vpop.trf.xlu1  ;;  %v4124_v53 = vpop.trf.xlu0 }
0x152d   : > { %7768 = vmatpush3.msra.mxu0 %v4092_v52  ;;  %7773 = vmatpush3.msra.mxu1 %v4124_v53 }
0x152e   : > { %7770 = vmatmul.mubr.msk.f32.vlgmr.msra.gmra.mxu0 %vm1072_vm2, %v4027_v61  ;;  %7775 = vmatmul.mubr.msk.f32.vlgmr.msra.gmra.mxu1 %vm1072_vm2, %v4029_v60 }
0x152f   : > { %7777 = vmatprep.subr.mxu0 %v8472_v0  ;;  %7779 = vmatprep.mubr.msk.f32.mxu0 %vm8473_vm0, %v8472_v0 }
0x1530   : > { %v4156_v55 = vpop.trf.xlu0  ;;  %7782 = vmatprep.subr.mxu1 %v8472_v0  ;;  %7784 = vmatprep.mubr.msk.f32.mxu1 %vm8473_vm0, %v8472_v0 }
0x1531   : > { %7778 = vmatpush3.msra.mxu0 %v4156_v55 }
0x1532   : > { %7780 = vmatmul.mubr.msk.f32.vlgmr.msra.gmra.mxu0 %vm1072_vm2, %v4031_v46  ;;  %7787 = vmatprep.subr.mxu0 %v8472_v0 }
0x1533   : > { %7789 = vmatprep.mubr.msk.f32.mxu0 %vm8473_vm0, %v8472_v0 }
0x1599   : > { %v4240_v54 = vpop.f32.mrf.mxu0 }
0x159a   : > { %v4460_v56 = vmul.f32 0.35355338, %v4240_v54 }
0x159b   : > { %v7766_v57 = vpop.f32.mrf.mxu0 }
0x159c   : > { %v4464_v62 = vadd.f32 %v4460_v56, %v8926_v25 }
0x159e   : > { %v4468_v63 = vsel %vm1072_vm2, %v4464_v62, -inf }
0x159f   : > { %4469 = vmax.xlane.f32.xlu0 %v4468_v63 }
0x15ee   : > { %v4312_v1 = vpop.f32.mrf.mxu0  ;;  %v4384_v2 = vpop.f32.mrf.mxu1 }
0x15ef   : > { %v4461_v3 = vmul.f32 0.35355338, %v4312_v1  ;;  %v4462_v6 = vmul.f32 0.35355338, %v4384_v2 }
0x15f0   : > { %v7771_v7 = vpop.f32.mrf.mxu0  ;;  %v7776_v8 = vpop.f32.mrf.mxu1 }
0x15f1   : > { %v4465_v9 = vadd.f32 %v4461_v3, %v8926_v25  ;;  %v4466_v13 = vadd.f32 %v4462_v6, %v8926_v25 }
0x15f2   : > { %v4456_v10 = vpop.f32.mrf.mxu0 }
0x15f3   : > { %v4463_v11 = vmul.f32 0.35355338, %v4456_v10  ;;  %v4471_v12 = vsel %vm1072_vm2, %v4465_v9, -inf  ;;  %v4474_v16 = vsel %vm1072_vm2, %v4466_v13, -inf  ;;  %v7390_v10 = vld [vmem:[%s9765_s16 + $0x38] sm:$0xff] }
0x15f4   : > { %4472 = vmax.xlane.f32.xlu1 %v4471_v12  ;;  %v7781_v14 = vpop.f32.mrf.mxu0 }
0x15f5   : > { %v4467_v15 = vadd.f32 %v4463_v11, %v8926_v25 }
0x15f7   : > { %v4477_v17 = vsel %vm1072_vm2, %v4467_v15, -inf }
0x15f8   : > { %4475 = vmax.xlane.f32.xlu1 %v4474_v16  ;;  %4478 = vmax.xlane.f32.xlu0 %v4477_v17 }
0x1609   : > { %4512 = vrot.lane.b32.xlu1 %v9265_v44, %s8478_s11 }
0x160d   : > { %4516 = vrot.lane.b32.xlu1 %v4029_v60, %s8478_s11 }
0x160e   : > { %4514 = vrot.lane.b32.xlu0 %v4027_v61, %s8478_s11 }
0x1612   : > { %4518 = vrot.lane.b32.xlu0 %v4031_v46, %s8478_s11  ;;  %s9771_s11 = smov 8  }
0x1628   : > { %v4470_v18 = vpop.xlane.xlu0 %4469 }
0x1629   : > { %v4480_v19 = vsub.f32 %v4464_v62, %v4470_v18 }
0x162b   : > { %v4484_v20 = vmul.f32 1.442695, %v4480_v19 }
0x162d   : > { %8098 = vpow2.f32 %v4484_v20 }
0x163a   : > { %v8099_v25 = vpop.eup %8098 }
0x163b   : > { %v4492_v21 = vsel %vm1072_vm2, %v8099_v25, 0.0 }
0x163c   : > { %4493 = vadd.xlane.f32.xlu1 %v4492_v21 }
0x167d   : > { %v4473_v24 = vpop.xlane.xlu1 %4472 }
0x167e   : > { %v4481_v26 = vsub.f32 %v4465_v9, %v4473_v24 }
0x1680   : > { %v4486_v27 = vmul.f32 1.442695, %v4481_v26 }
0x1681   : > { %v4476_v28 = vpop.xlane.xlu1 %4475  ;;  %v4479_v29 = vpop.xlane.xlu0 %4478 }
0x1682   : > { %8100 = vpow2.f32 %v4486_v27  ;;  %v4482_v30 = vsub.f32 %v4466_v13, %v4476_v28  ;;  %v4483_v31 = vsub.f32 %v4467_v15, %v4479_v29  ;;  %v7389_v29 = vld [vmem:[%s9765_s16 + $0x30] sm:$0xff] }
0x1684   : > { %v4488_v32 = vmul.f32 1.442695, %v4482_v30  ;;  %v4490_v33 = vmul.f32 1.442695, %v4483_v31  ;;  %v7388_v30 = vld [vmem:[%s9765_s16 + $0x28] sm:$0xff] }
0x1685   : > { %v4513_v41 = vpop.permute.xlu1 %4512  ;;  %v4515_v22 = vpop.permute.xlu0 %4514 }
0x1686   : > { %8102 = vpow2.f32 %v4488_v32 }
0x1687   : > { %8104 = vpow2.f32 %v4490_v33 }
0x1689   : > { %v4517_v42 = vpop.permute.xlu1 %4516  ;;  %v4519_v45 = vpop.permute.xlu0 %4518 }
0x168f   : > { %v8101_v34 = vpop.eup %8100 }
0x1690   : > { %v4495_v35 = vsel %vm1072_vm2, %v8101_v34, 0.0 }
0x1691   : > { %4496 = vadd.xlane.f32.xlu0 %v4495_v35 }
0x1693   : > { %v8103_v37 = vpop.eup %8102 }
0x1694   : > { %v8105_v38 = vpop.eup %8104  ;;  %v4498_v39 = vsel %vm1072_vm2, %v8103_v37, 0.0 }
0x1695   : > { %4499 = vadd.xlane.f32.xlu1 %v4498_v39  ;;  %v4501_v40 = vsel %vm1072_vm2, %v8105_v38, 0.0 }
0x1696   : > { %4502 = vadd.xlane.f32.xlu0 %v4501_v40  ;;  %v7387_v40 = vld [vmem:[%s9765_s16 + $0x20] sm:$0xff] }
0x16c3   : > { %4556 = vxpose.xlu0.b32.start.end [1/1] (short) (narrow) %v4515_v22, 8 }
0x16c5   : > { %v4494_v44 = vpop.xlane.xlu1 %4493 }
0x16c6   : > { %8106 = vrcp.f32 %v4494_v44 }
0x16c7   : > { %4588 = vxpose.xlu0.b32.start.end [1/1] (short) (narrow) %v4517_v42, 8 }
0x16c8   : > { %4524 = vxpose.xlu1.b32.start.end [1/1] (short) (narrow) %v4513_v41, 8 }
0x16cc   : > { %4620 = vxpose.xlu1.b32.start.end [1/1] (short) (narrow) %v4519_v45, 8 }
0x16d3   : > { %v8107_v60 = vpop.eup %8106 }
0x16d4   : > { %v4508_v61 = vmul.f32 %v8107_v60, %v8099_v25 }
0x16d6   : > { %7783 = vmatpush3.xpose.msk.msra.mxu1 %vm1072_vm2, %v4508_v61 }
0x16d7   : > { %7792 = vmatprep.subr.mxu1 %v8472_v0 }
0x171a   : > { %v4497_v46 = vpop.xlane.xlu0 %4496 }
0x171b   : > { %8108 = vrcp.f32 %v4497_v46 }
0x171e   : > { %v4500_v50 = vpop.xlane.xlu1 %4499 }
0x171f   : > { %v4503_v4 = vpop.xlane.xlu0 %4502 }
0x1720   : > { %8110 = vrcp.f32 %v4503_v4 }
0x1721   : > { %8112 = vrcp.f32 %v4500_v50 }
0x1728   : > { %v8109_v47 = vpop.eup %8108 }
0x1729   : > { %v4509_v48 = vmul.f32 %v8109_v47, %v8101_v34 }
0x172b   : > { %7788 = vmatpush3.xpose.msk.msra.mxu0 %vm1072_vm2, %v4509_v48 }
0x172c   : > { %7797 = vmatprep.subr.mxu0 %v8472_v0 }
0x172d   : > { %v8111_v51 = vpop.eup %8110 }
0x172e   : > { %v4511_v53 = vmul.f32 %v8111_v51, %v8105_v38  ;;  %v8113_v55 = vpop.eup %8112 }
0x172f   : > { %v4510_v56 = vmul.f32 %v8113_v55, %v8103_v37 }
0x173f   : > { %v4572_v52 = vpop.trf.xlu0 }
0x1740   : > { %7790 = vmatmul.mubr.msk.f32.vlgmr.msra.gmra.mxu0 %vm1072_vm2, %v4572_v52 }
0x1741   : > { %7798 = vmatpush3.xpose.msk.msra.mxu0 %vm1072_vm2, %v4511_v53  ;;  %7799 = vmatprep.mubr.msk.f32.mxu0 %vm8473_vm0, %v8472_v0 }
0x1742   : > { %7813 = vmatprep.subr.mxu0 %v8472_v0 }
0x1743   : > { %v4604_v57 = vpop.trf.xlu0 }
0x1744   : > { %v4540_v54 = vpop.trf.xlu1 }
0x1745   : > { %7785 = vmatmul.mubr.msk.f32.vlgmr.msra.gmra.mxu1 %vm1072_vm2, %v4540_v54 }
0x1746   : > { %7793 = vmatpush3.xpose.msk.msra.mxu1 %vm1072_vm2, %v4510_v56  ;;  %7794 = vmatprep.mubr.msk.f32.mxu1 %vm8473_vm0, %v8472_v0 }
0x1747   : > { %7802 = vmatprep.subr.mxu1 %v8472_v0 }
0x1748   : > { %v4636_v62 = vpop.trf.xlu1 }
0x1749   : > { %7795 = vmatmul.mubr.msk.f32.vlgmr.msra.gmra.mxu1 %vm1072_vm2, %v4604_v57  ;;  %7800 = vmatmul.mubr.msk.f32.vlgmr.msra.gmra.mxu0 %vm1072_vm2, %v4636_v62 }
0x174a   : > { %7810 = vmatprep.mubr.msk.f32.mxu1 %vm8473_vm0, %v8472_v0  ;;  %7821 = vmatprep.mubr.msk.f32.mxu0 %vm8473_vm0, %v8472_v0 }
0x174b   : > { %7803 = vmatpush3.msra.mxu1 %v7390_v10  ;;  %v5435_v10 = vld [vmem:[#allocation13 + $0x38] sm:$0xff] }
0x174c   : > { %7804 = vmatprep.subr.mxu1 %v8472_v0 }
0x174d   : > { %7805 = vmatpush3.msra.mxu1 %v7389_v29 }
0x174e   : > { %7806 = vmatprep.subr.mxu1 %v8472_v0 }
0x174f   : > { %7807 = vmatpush3.msra.mxu1 %v7388_v30 }
0x1750   : > { %7808 = vmatprep.subr.mxu1 %v8472_v0 }
0x1751   : > { %7809 = vmatpush3.msra.mxu1 %v7387_v40 }
0x1752   : > { %7824 = vmatprep.subr.mxu1 %v8472_v0 }
0x1800   : > { %v4800_v63 = vpop.f32.mrf.mxu0 }
0x1801   : > { %4988 = vxpose.xlu1.b32.start.end [1/1] (short) (narrow) %v4800_v63, 8 }
0x1802   : > { %v7791_v1 = vpop.f32.mrf.mxu0 }
0x1805   : > { %v4724_v2 = vpop.f32.mrf.mxu1 }
0x1806   : > { %4956 = vxpose.xlu0.b32.start.end [1/1] (short) (narrow) %v4724_v2, 8  ;;  %v7391_v2 = vld [vmem:[#allocation10 + $0x1] ss:$0 sm:$0xff] }
0x1807   : > { %v7786_v3 = vpop.f32.mrf.mxu1 }
0x1809   : > { %v4876_v6 = vpop.f32.mrf.mxu1  ;;  %v4952_v7 = vpop.f32.mrf.mxu0 }
0x180a   : > { %5020 = vxpose.xlu0.b32.start.end [1/1] (short) (narrow) %v4876_v6, 8  ;;  %5052 = vxpose.xlu1.b32.start.end [1/1] (short) (narrow) %v4952_v7, 8 }
0x180b   : > { %v7796_v8 = vpop.f32.mrf.mxu1  ;;  %v7801_v9 = vpop.f32.mrf.mxu0 }
0x187d   : > { %v5004_v11 = vpop.trf.xlu1 }
0x1882   : > { %v4972_v12 = vpop.trf.xlu0 }
0x1886   : > { %v5036_v13 = vpop.trf.xlu0  ;;  %v5068_v14 = vpop.trf.xlu1 }
0x1887   : > { %v5084_v15 = vcombine.low %v4972_v12, %v5036_v13  ;;  %v5085_v16 = vcombine.high %v4972_v12, %v5036_v13  ;;  %v5100_v17 = vcombine.low %v5004_v11, %v5068_v14  ;;  %v5101_v18 = vcombine.high %v5004_v11, %v5068_v14  ;;  %v5434_v11 = vld [vmem:[#allocation13 + $0x30] sm:$0xff]  ;;  %v5433_v12 = vld [vmem:[#allocation13 + $0x28] sm:$0xff]  ;;  %v5432_v13 = vld [vmem:[#allocation13 + $0x20] sm:$0xff] }
0x1888   : > { %v8136_v14 = vld [vmem:[%s9773_s5] sm:$0xff]  ;;  %s7119_s5 = scalar_lea.sflag [#allocation4], %s8822_s6 }
0x1889   : > { %v5092_v19 = vrot.slane %v5084_v15, %v8973_v43  ;;  %v5099_v20 = vrot.slane %v5085_v16, %v8973_v43  ;;  %v5108_v25 = vrot.slane %v5100_v17, %v8973_v43  ;;  %v5115_v21 = vrot.slane %v5101_v18, %v8973_v43 }
0x188b   : > { %v5116_v24 = vcombine.low %v5092_v19, %v5108_v25  ;;  %v5117_v26 = vcombine.high %v5092_v19, %v5108_v25  ;;  %v5132_v27 = vcombine.low %v5099_v20, %v5115_v21  ;;  %v5133_v28 = vcombine.high %v5099_v20, %v5115_v21  ;;  %v7396_v19 = vld [vmem:[%s9647_s7 + $0x38] sm:$0xff]  ;;  %v7395_v20 = vld [vmem:[%s9647_s7 + $0x30] sm:$0xff]  ;;  %v7394_v25 = vld [vmem:[%s9647_s7 + $0x28] sm:$0xff] }
0x188c   : > { %7814 = vmatpush3.msra.mxu0 %v7396_v19  ;;  %v7393_v21 = vld [vmem:[%s9647_s7 + $0x20] sm:$0xff] }
0x188d   : > { %v5124_v31 = vrot.slane %v5116_v24, %v8976_v49  ;;  %v5131_v32 = vrot.slane %v5117_v26, %v8976_v49  ;;  %v5140_v33 = vrot.slane %v5132_v27, %v8976_v49  ;;  %v5147_v34 = vrot.slane %v5133_v28, %v8976_v49  ;;  %7815 = vmatprep.subr.mxu0 %v8472_v0  ;;  %v7400_v24 = vld [vmem:[%s9650_s10 + $0x1] ss:$0 sm:$0xff] }
0x188e   : > { %7816 = vmatpush3.msra.mxu0 %v7395_v20 }
0x188f   : > { %v5152_v35 = vcombine.low %v5124_v31, %v5131_v32  ;;  %v7385_v37 = vcombine.high %v5124_v31, %v5131_v32  ;;  %v5168_v38 = vcombine.low %v5140_v33, %v5147_v34  ;;  %v7386_v39 = vcombine.high %v5140_v33, %v5147_v34  ;;  %7817 = vmatprep.subr.mxu0 %v8472_v0  ;;  %v9415_v32 = vld [vmem:[%s9657_s17 + $0x4] sm:$0x7] }
0x1890   : > { %7818 = vmatpush3.msra.mxu0 %v7394_v25  ;;  %v9420_v33 = vld [vmem:[%s9658_s18 + $0x4] sm:$0x7]  ;;  %v5338_v34 = vrot.slane %v9415_v32, %v9056_v59 }
0x1891   : > { %v5159_v41 = vrot.slane %v5152_v35, %v8973_v43  ;;  %v5167_v42 = vrot.slane %v7385_v37, %v8973_v43  ;;  %v5175_v22 = vrot.slane %v5168_v38, %v8973_v43  ;;  %v5183_v44 = vrot.slane %v7386_v39, %v8973_v43  ;;  %7819 = vmatprep.subr.mxu0 %v8472_v0 }
0x1892   : > { %7820 = vmatpush3.msra.mxu0 %v7393_v21  ;;  %v5343_v38 = vrot.slane %v9420_v33, %v9056_v59 }
0x1893   : > { %v5185_v45 = vcombine.high %v5159_v41, %v5167_v42  ;;  %v5201_v60 = vcombine.high %v5175_v22, %v5183_v44  ;;  %v5184_v61 = vcombine.low %v5159_v41, %v5167_v42  ;;  %v5200_v46 = vcombine.low %v5175_v22, %v5183_v44  ;;  %7835 = vmatprep.subr.mxu0 %v8472_v0 }
0x1895   : > { %v5199_v47 = vrot.slane %v5185_v45, %v8976_v49  ;;  %v5215_v48 = vrot.slane %v5201_v60, %v8976_v49  ;;  %v5192_v4 = vrot.slane %v5184_v61, %v8976_v49  ;;  %v5208_v50 = vrot.slane %v5200_v46, %v8976_v49  ;;  %v7397_v45 = vld [vmem:[#allocation11 + $0x1] ss:$0 sm:$0xff] }
0x1897   : > { %v5218_v51 = vcombine.low %v5199_v47, %v5215_v48  ;;  %v5217_v52 = vcombine.high %v5192_v4, %v5208_v50  ;;  %v5216_v53 = vcombine.low %v5192_v4, %v5208_v50  ;;  %v5219_v55 = vcombine.high %v5199_v47, %v5215_v48 }
0x1899   : > { %5225 = vrot.lane.b32.xlu1 %v5218_v51, %s9770_s3  ;;  %5221 = vrot.lane.b32.xlu0 %v5217_v52, %s9771_s11 }
0x189d   : > { %5229 = vrot.lane.b32.xlu1 %v5219_v55, %s9772_s15 }
0x190b   : > { %v5226_v54 = vpop.permute.xlu1 %5225  ;;  %v5222_v56 = vpop.permute.xlu0 %5221 }
0x190c   : > { %v5232_v57 = vsel %vm1072_vm2, %v5216_v53, %v5222_v56 }
0x190d   : > { %v5233_v63 = vsel %vm2134_vm4, %v5232_v57, %v5226_v54 }
0x190f   : > { %v5230_v62 = vpop.permute.xlu1 %5229 }
0x1910   : > { %v5234_v1 = vsel %vm2136_vm5, %v5233_v63, %v5230_v62 }
0x1911   : > { %7811 = vmatmul.mubr.msk.f32.vlgmr.msra.gmra.mxu1 %vm851_vm1, %v5234_v1 }
0x1912   : > { %7832 = vmatprep.mubr.msk.f32.mxu1 %vm8473_vm0, %v8472_v0  ;;  %7825 = vmatpush3.msra.mxu1 %v5435_v10 }
0x1913   : > { %7826 = vmatprep.subr.mxu1 %v8472_v0 }
0x1914   : > { %7827 = vmatpush3.msra.mxu1 %v5434_v11 }
0x1915   : > { %7828 = vmatprep.subr.mxu1 %v8472_v0 }
0x1916   : > { %7829 = vmatpush3.msra.mxu1 %v5433_v12 }
0x1917   : > { %7830 = vmatprep.subr.mxu1 %v8472_v0 }
0x1918   : > { %7831 = vmatpush3.msra.mxu1 %v5432_v13 }
0x1919   : > { %7833 = vmatmul.mubr.msk.f32.vlgmr.msra.gmra.mxu1 %vm851_vm1, %v8136_v14  ;;  %7845 = vmatprep.subr.mxu1 %v8472_v0 }
0x191a   : > { %7847 = vmatprep.mubr.msk.f32.mxu1 %vm8473_vm0, %v8472_v0 }
0x19d1   : > { %v5317_v3 = vpop.f32.mrf.mxu1 }
0x19d2   : > { %v5318_v6 = vadd.f32 %v7391_v2, %v5317_v3 }
0x19d3   : > { %v7812_v7 = vpop.f32.mrf.mxu1 }
0x19d4   : > { %v5321_v8 = vadd.f32 %v5318_v6, %v9259_v5 }
0x19d6   : > { %v5322_v9 = vsel %vm851_vm1, %v5321_v8, 0.0 }
0x19d7   : > { %5323 = vadd.xlane.f32.xlu1 %v5322_v9 }
0x19d9   : > { %v5510_v26 = vpop.f32.mrf.mxu1 }
0x19da   : > { %v9404_v27 = vadd.f32 %v7400_v24, %v5510_v26 }
0x19db   : > { %v7834_v28 = vpop.f32.mrf.mxu1 }
0x19e8   : > { %5525 = vrot.lane.b32.xlu1 %v9404_v27, %s8477_s12 }
0x19ec   : > { %5528 = vrot.lane.b32.xlu1 %v9404_v27, %s9774_s28 }
0x1a60   : > { %v5324_v5 = vpop.xlane.xlu1 %5323 }
0x1a61   : > { %v5325_v15 = vmul.f32 0.03125, %v5324_v5 }
0x1a63   : > { %v5326_v16 = vsub.f32 %v5321_v8, %v5325_v15 }
0x1a64   : > { %v5526_v42 = vpop.permute.xlu1 %5525 }
0x1a65   : > { %v5327_v17 = vmul.f32 %v5326_v16, %v5326_v16 }
0x1a67   : > { %v5328_v18 = vsel %vm851_vm1, %v5327_v17, 0.0 }
0x1a68   : > { %5329 = vadd.xlane.f32.xlu0 %v5328_v18  ;;  %v5529_v46 = vpop.permute.xlu1 %5528 }
0x1a7e   : > { %5522 = vrot.lane.b32.xlu0 %v9404_v27, %s8475_s2 }
0x1af1   : > { %v5330_v29 = vpop.xlane.xlu0 %5329 }
0x1af2   : > { %v5331_v30 = vmul.f32 0.03125, %v5330_v29 }
0x1af4   : > { %v5332_v31 = vadd.f32 1e-05, %v5331_v30 }
0x1af5   : > { %v5523_v41 = vpop.permute.xlu0 %5522 }
0x1af6   : > { %8114 = vrsqrt.f32 %v5332_v31  ;;  %5563 = vxpose.xlu0.b32.start.end [1/1] (short) (narrow) %v5523_v41, 8 }
0x1afa   : > { %5595 = vxpose.xlu0.b32.start.end [1/1] (short) (narrow) %v5526_v42, 8 }
0x1b03   : > { %v8115_v35 = vpop.eup %8114 }
0x1b04   : > { %v5334_v37 = vmul.f32 %v8115_v35, %v5326_v16 }
0x1b06   : > { %v5339_v39 = vmul.f32 %v5338_v34, %v5334_v37 }
0x1b08   : > { %v9426_v40 = vadd.f32 %v5343_v38, %v5339_v39 }
0x1b0a   : > { %7822 = vmatmul.mubr.msk.f32.vlgmr.msra.gmra.mxu0 %vm851_vm1, %v9426_v40 }
0x1b0b   : > { %7837 = vmatprep.mubr.msk.f32.mxu0 %vm8473_vm0, %v8472_v0 }
0x1b72   : > { %v5579_v22 = vpop.trf.xlu0 }
0x1b76   : > { %v5611_v44 = vpop.trf.xlu0 }
0x1b77   : > { %7846 = vmatpush3.msra.mxu1 %v5611_v44 }
0x1b78   : > { %7855 = vmatprep.subr.mxu1 %v8472_v0 }
0x1bca   : > { %v5427_v59 = vpop.f32.mrf.mxu0 }
0x1bcb   : > { %v5428_v60 = vadd.f32 %v7397_v45, %v5427_v59 }
0x1bcc   : > { %v7823_v61 = vpop.f32.mrf.mxu0 }
0x1bcd   : > { %5515 = vrot.lane.b32.xlu0 %v5428_v60, %s8475_s2  ;;  %5517 = vrot.lane.b32.xlu1 %v5428_v60, %s8477_s12  ;;  %s9775_s2 = smov 96  }
0x1bd1   : > { %5519 = vrot.lane.b32.xlu0 %v5428_v60, %s9774_s28 }
0x1bef   : > { %5627 = vxpose.xlu0.b32.start.end [1/1] (short) (narrow) %v5529_v46, 8 }
0x1bf6   : > { %5531 = vxpose.xlu1.b32.start.end [1/1] (short) (narrow) %v9404_v27, 8 }
0x1c3f   : > { %v5518_v47 = vpop.permute.xlu1 %5517  ;;  %v5516_v48 = vpop.permute.xlu0 %5515 }
0x1c40   : > { %7848 = vmatmul.mubr.msk.f32.vlgmr.msra.gmra.mxu1 %vm1072_vm2, %v5518_v47 }
0x1c41   : > { %7857 = vmatprep.mubr.msk.f32.mxu1 %vm8473_vm0, %v8472_v0 }
0x1c43   : > { %v5520_v4 = vpop.permute.xlu0 %5519 }
0x1c6b   : > { %v5643_v51 = vpop.trf.xlu0 }
0x1c72   : > { %v5547_v50 = vpop.trf.xlu1 }
0x1c73   : > { %7836 = vmatpush3.msra.mxu0 %v5547_v50 }
0x1c74   : > { %7838 = vmatmul.mubr.msk.f32.vlgmr.msra.gmra.mxu0 %vm1072_vm2, %v5428_v60  ;;  %7840 = vmatprep.subr.mxu0 %v8472_v0 }
0x1c75   : > { %7841 = vmatpush3.msra.mxu0 %v5579_v22  ;;  %7842 = vmatprep.mubr.msk.f32.mxu0 %vm8473_vm0, %v8472_v0 }
0x1c76   : > { %7850 = vmatprep.subr.mxu0 %v8472_v0 }
0x1c78   : > { %7843 = vmatmul.mubr.msk.f32.vlgmr.msra.gmra.mxu0 %vm1072_vm2, %v5516_v48 }
0x1c79   : > { %7851 = vmatpush3.msra.mxu0 %v5643_v51  ;;  %7852 = vmatprep.mubr.msk.f32.mxu0 %vm8473_vm0, %v8472_v0 }
0x1c7a   : > { %7860 = vmatprep.subr.mxu0 %v8472_v0 }
0x1c7c   : > { %7853 = vmatmul.mubr.msk.f32.vlgmr.msra.gmra.mxu0 %vm1072_vm2, %v5520_v4 }
0x1c7d   : > { %7862 = vmatprep.mubr.msk.f32.mxu0 %vm8473_vm0, %v8472_v0 }
0x1d00   : > { %v5871_v52 = vpop.f32.mrf.mxu1 }
0x1d01   : > { %v5949_v54 = vmul.f32 0.35355338, %v5871_v52 }
0x1d02   : > { %v7849_v53 = vpop.f32.mrf.mxu1 }
0x1d03   : > { %v5953_v1 = vadd.f32 %v5949_v54, %v9104_v23 }
0x1d05   : > { %v5961_v10 = vsel %vm1072_vm2, %v5953_v1, -inf }
0x1d34   : > { %v5727_v55 = vpop.f32.mrf.mxu0 }
0x1d35   : > { %v5947_v56 = vmul.f32 0.35355338, %v5727_v55 }
0x1d36   : > { %v7839_v57 = vpop.f32.mrf.mxu0 }
0x1d37   : > { %v5951_v62 = vadd.f32 %v5947_v56, %v9104_v23 }
0x1d38   : > { %v5799_v63 = vpop.f32.mrf.mxu0 }
0x1d39   : > { %v5948_v2 = vmul.f32 0.35355338, %v5799_v63  ;;  %v5955_v3 = vsel %vm1072_vm2, %v5951_v62, -inf }
0x1d3a   : > { %5956 = vmax.xlane.f32.xlu1 %v5955_v3  ;;  %v7844_v6 = vpop.f32.mrf.mxu0 }
0x1d3b   : > { %v5952_v7 = vadd.f32 %v5948_v2, %v9104_v23 }
0x1d3c   : > { %v5943_v8 = vpop.f32.mrf.mxu0 }
0x1d3d   : > { %v5950_v9 = vmul.f32 0.35355338, %v5943_v8  ;;  %v5958_v11 = vsel %vm1072_vm2, %v5952_v7, -inf }
0x1d3e   : > { %5962 = vmax.xlane.f32.xlu1 %v5961_v10  ;;  %5959 = vmax.xlane.f32.xlu0 %v5958_v11  ;;  %v7854_v12 = vpop.f32.mrf.mxu0 }
0x1d3f   : > { %v5954_v13 = vadd.f32 %v5950_v9, %v9104_v23 }
0x1d41   : > { %v5964_v14 = vsel %vm1072_vm2, %v5954_v13, -inf }
0x1d42   : > { %5965 = vmax.xlane.f32.xlu1 %v5964_v14 }
0x1d53   : > { %6001 = vrot.lane.b32.xlu1 %v5523_v41, %s9775_s2 }
0x1d54   : > { %5999 = vrot.lane.b32.xlu0 %v9404_v27, %s9775_s2 }
0x1d57   : > { %6005 = vrot.lane.b32.xlu1 %v5529_v46, %s9775_s2 }
0x1d58   : > { %6003 = vrot.lane.b32.xlu0 %v5526_v42, %s9775_s2  ;;  %s7132_s2 = sshll.u32 %s826_s30, 4  ;;  %s7133_s2 = int_to_ptr.vmem [resolvable:$true] %s7132_s2 }
0x1d59   : > { %p8384_p0 = scmp.lt.s32.totalorder %s7133_s2, %s8382_s29 }
0x1dc3   : > { %v5957_v5 = vpop.xlane.xlu1 %5956 }
0x1dc4   : > { %v5967_v15 = vsub.f32 %v5951_v62, %v5957_v5 }
0x1dc6   : > { %v5971_v16 = vmul.f32 1.442695, %v5967_v15 }
0x1dc7   : > { %v5963_v17 = vpop.xlane.xlu1 %5962  ;;  %v5960_v18 = vpop.xlane.xlu0 %5959 }
0x1dc8   : > { %8116 = vpow2.f32 %v5971_v16  ;;  %v5969_v19 = vsub.f32 %v5953_v1, %v5963_v17  ;;  %v5968_v23 = vsub.f32 %v5952_v7, %v5960_v18  ;;  %v6726_v7 = vld [vmem:[#allocation14 + $0x38] sm:$0xff] }
0x1dca   : > { %v5975_v20 = vmul.f32 1.442695, %v5969_v19  ;;  %v5973_v25 = vmul.f32 1.442695, %v5968_v23 }
0x1dcb   : > { %v5966_v21 = vpop.xlane.xlu1 %5965  ;;  %v6000_v38 = vpop.permute.xlu0 %5999 }
0x1dcc   : > { %8118 = vpow2.f32 %v5975_v20  ;;  %v5970_v24 = vsub.f32 %v5954_v13, %v5966_v21  ;;  %v6725_v21 = vld [vmem:[#allocation14 + $0x30] sm:$0xff] }
0x1dcd   : > { %8120 = vpow2.f32 %v5973_v25 }
0x1dce   : > { %v5977_v26 = vmul.f32 1.442695, %v5970_v24  ;;  %v6724_v24 = vld [vmem:[#allocation14 + $0x28] sm:$0xff] }
0x1dcf   : > { %v6002_v39 = vpop.permute.xlu1 %6001  ;;  %v6004_v41 = vpop.permute.xlu0 %6003 }
0x1dd0   : > { %8122 = vpow2.f32 %v5977_v26 }
0x1dd3   : > { %v6006_v42 = vpop.permute.xlu1 %6005 }
0x1dd5   : > { %v8117_v27 = vpop.eup %8116 }
0x1dd6   : > { %v5979_v28 = vsel %vm1072_vm2, %v8117_v27, 0.0 }
0x1dd7   : > { %5980 = vadd.xlane.f32.xlu1 %v5979_v28 }
0x1dd9   : > { %v8119_v29 = vpop.eup %8118 }
0x1dda   : > { %v8121_v30 = vpop.eup %8120  ;;  %v5985_v31 = vsel %vm1072_vm2, %v8119_v29, 0.0 }
0x1ddb   : > { %v5982_v34 = vsel %vm1072_vm2, %v8121_v30, 0.0  ;;  %5986 = vadd.xlane.f32.xlu1 %v5985_v31 }
0x1ddc   : > { %5983 = vadd.xlane.f32.xlu0 %v5982_v34 }
0x1ddd   : > { %v8123_v35 = vpop.eup %8122 }
0x1dde   : > { %v5988_v37 = vsel %vm1072_vm2, %v8123_v35, 0.0 }
0x1de0   : > { %5989 = vadd.xlane.f32.xlu0 %v5988_v37  ;;  %v6723_v37 = vld [vmem:[#allocation14 + $0x20] sm:$0xff] }
0x1e0d   : > { %6011 = vxpose.xlu0.b32.start.end [1/1] (short) (narrow) %v6000_v38, 8 }
0x1e0e   : > { %6043 = vxpose.xlu1.b32.start.end [1/1] (short) (narrow) %v6002_v39, 8 }
0x1e11   : > { %6075 = vxpose.xlu0.b32.start.end [1/1] (short) (narrow) %v6004_v41, 8 }
0x1e15   : > { %6107 = vxpose.xlu0.b32.start.end [1/1] (short) (narrow) %v6006_v42, 8 }
0x1e60   : > { %v5981_v22 = vpop.xlane.xlu1 %5980 }
0x1e61   : > { %8124 = vrcp.f32 %v5981_v22 }
0x1e64   : > { %v5987_v46 = vpop.xlane.xlu1 %5986 }
0x1e65   : > { %v5984_v44 = vpop.xlane.xlu0 %5983 }
0x1e66   : > { %8126 = vrcp.f32 %v5984_v44 }
0x1e67   : > { %8128 = vrcp.f32 %v5987_v46 }
0x1e69   : > { %v5990_v47 = vpop.xlane.xlu0 %5989 }
0x1e6a   : > { %8130 = vrcp.f32 %v5990_v47 }
0x1e6e   : > { %v8125_v45 = vpop.eup %8124 }
0x1e6f   : > { %v5995_v59 = vmul.f32 %v8125_v45, %v8117_v27 }
0x1e71   : > { %7856 = vmatpush3.xpose.msk.msra.mxu1 %vm1072_vm2, %v5995_v59 }
0x1e72   : > { %7865 = vmatprep.subr.mxu1 %v8472_v0 }
0x1e73   : > { %v8127_v60 = vpop.eup %8126 }
0x1e74   : > { %v5996_v61 = vmul.f32 %v8127_v60, %v8121_v30  ;;  %v8129_v48 = vpop.eup %8128 }
0x1e75   : > { %v5997_v51 = vmul.f32 %v8129_v48, %v8119_v29 }
0x1e76   : > { %7861 = vmatpush3.xpose.msk.msra.mxu0 %vm1072_vm2, %v5996_v61 }
0x1e77   : > { %7870 = vmatprep.subr.mxu0 %v8472_v0  ;;  %v8131_v4 = vpop.eup %8130 }
0x1e78   : > { %v5998_v53 = vmul.f32 %v8131_v4, %v8123_v35 }
0x1e89   : > { %v6027_v50 = vpop.trf.xlu0 }
0x1e8a   : > { %7858 = vmatmul.mubr.msk.f32.vlgmr.msra.gmra.mxu1 %vm1072_vm2, %v6027_v50  ;;  %v6059_v52 = vpop.trf.xlu1 }
0x1e8b   : > { %7866 = vmatpush3.xpose.msk.msra.mxu1 %vm1072_vm2, %v5997_v51  ;;  %7863 = vmatmul.mubr.msk.f32.vlgmr.msra.gmra.mxu0 %vm1072_vm2, %v6059_v52 }
0x1e8c   : > { %7871 = vmatpush3.xpose.msk.msra.mxu0 %vm1072_vm2, %v5998_v53  ;;  %7867 = vmatprep.mubr.msk.f32.mxu1 %vm8473_vm0, %v8472_v0 }
0x1e8d   : > { %v6091_v55 = vpop.trf.xlu0  ;;  %7872 = vmatprep.mubr.msk.f32.mxu0 %vm8473_vm0, %v8472_v0  ;;  %7875 = vmatprep.subr.mxu1 %v8472_v0 }
0x1e8e   : > { %7868 = vmatmul.mubr.msk.f32.vlgmr.msra.gmra.mxu1 %vm1072_vm2, %v6091_v55  ;;  %7886 = vmatprep.subr.mxu0 %v8472_v0 }
0x1e8f   : > { %7883 = vmatprep.mubr.msk.f32.mxu1 %vm8473_vm0, %v8472_v0  ;;  %7876 = vmatpush3.msra.mxu1 %v6726_v7 }
0x1e90   : > { %7877 = vmatprep.subr.mxu1 %v8472_v0 }
0x1e91   : > { %v6123_v54 = vpop.trf.xlu0  ;;  %7878 = vmatpush3.msra.mxu1 %v6725_v21  ;;  %v6830_v21 = vrot.slane %v9420_v33, %v9204_v58 }
0x1e92   : > { %7873 = vmatmul.mubr.msk.f32.vlgmr.msra.gmra.mxu0 %vm1072_vm2, %v6123_v54  ;;  %7879 = vmatprep.subr.mxu1 %v8472_v0 }
0x1e93   : > { %7894 = vmatprep.mubr.msk.f32.mxu0 %vm8473_vm0, %v8472_v0  ;;  %7880 = vmatpush3.msra.mxu1 %v6724_v24 }
0x1e94   : > { %7881 = vmatprep.subr.mxu1 %v8472_v0 }
0x1e95   : > { %7882 = vmatpush3.msra.mxu1 %v6723_v37  ;;  %v7431_v37 = vld [vmem:[%s9769_s0 + $0x1] ss:$0 sm:$0xff]  ;;  %s8377_s0 = scalar_lea.vmem %s7133_s2, 128 }
0x1e96   : > { %7897 = vmatprep.subr.mxu1 %v8472_v0  ;;  %p8378_p13 = scmp.ne.s32.totalorder %s7133_s2, %s8377_s0  ;;  %p8385_p9 = scmp.lt.s32.totalorder %s8383_s9, %s8377_s0 }
0x1e98   : > { %p8379_p3 = pnand %p8378_p13, %p9780_p1  ;;  %p8386_p2 = por %p8385_p9, %p8384_p0 }
0x1e9a   : > { %p8380_p8 = pneg %p8379_p3 }
0x1e9c   : > { %p8387_p11 = pnand %p8386_p2, %p8380_p8 }
0x1f4a   : > { %v6211_v56 = vpop.f32.mrf.mxu1 }
0x1f4b   : > { %6443 = vxpose.xlu1.b32.start.end [1/1] (short) (narrow) %v6211_v56, 8  ;;  %v6287_v57 = vpop.f32.mrf.mxu0 }
0x1f4c   : > { %v7859_v62 = vpop.f32.mrf.mxu1  ;;  %6475 = vxpose.xlu0.b32.start.end [1/1] (short) (narrow) %v6287_v57, 8 }
0x1f4d   : > { %v7864_v63 = vpop.f32.mrf.mxu0 }
0x1f4e   : > { %v6363_v1 = vpop.f32.mrf.mxu1 }
0x1f4f   : > { %6507 = vxpose.xlu1.b32.start.end [1/1] (short) (narrow) %v6363_v1, 8 }
0x1f50   : > { %v7869_v2 = vpop.f32.mrf.mxu1 }
0x1f52   : > { %v6439_v3 = vpop.f32.mrf.mxu0 }
0x1f53   : > { %6539 = vxpose.xlu0.b32.start.end [1/1] (short) (narrow) %v6439_v3, 8 }
0x1f54   : > { %v7874_v6 = vpop.f32.mrf.mxu0 }
0x1fc7   : > { %v6459_v8 = vpop.trf.xlu1 }
0x1fc8   : > { %v6491_v9 = vpop.trf.xlu0 }
0x1fcb   : > { %v6523_v10 = vpop.trf.xlu1 }
0x1fcc   : > { %v6571_v11 = vcombine.low %v6459_v8, %v6523_v10  ;;  %v6572_v12 = vcombine.high %v6459_v8, %v6523_v10  ;;  %v6836_v10 = vld [vmem:[#allocation16 + $0x38] sm:$0xff] }
0x1fcd   : > { %7887 = vmatpush3.msra.mxu0 %v6836_v10 }
0x1fce   : > { %v6579_v15 = vrot.slane %v6571_v11, %v8973_v43  ;;  %v6586_v16 = vrot.slane %v6572_v12, %v8973_v43  ;;  %v6835_v11 = vld [vmem:[#allocation16 + $0x30] sm:$0xff]  ;;  %7888 = vmatprep.subr.mxu0 %v8472_v0  ;;  %v6834_v12 = vld [vmem:[#allocation16 + $0x28] sm:$0xff] }
0x1fcf   : > { %v6555_v13 = vpop.trf.xlu0  ;;  %7889 = vmatpush3.msra.mxu0 %v6835_v11 }
0x1fd0   : > { %v6587_v14 = vcombine.low %v6491_v9, %v6555_v13  ;;  %v6588_v5 = vcombine.high %v6491_v9, %v6555_v13  ;;  %7890 = vmatprep.subr.mxu0 %v8472_v0  ;;  %v7429_v13 = vld [vmem:[%s9767_s20 + $0x78] sm:$0xff] }
0x1fd1   : > { %7891 = vmatpush3.msra.mxu0 %v6834_v12 }
0x1fd2   : > { %v6595_v17 = vrot.slane %v6587_v14, %v8973_v43  ;;  %v6602_v18 = vrot.slane %v6588_v5, %v8973_v43  ;;  %7892 = vmatprep.subr.mxu0 %v8472_v0  ;;  %v7428_v14 = vld [vmem:[%s9767_s20 + $0x70] sm:$0xff]  ;;  %v7427_v5 = vld [vmem:[%s9767_s20 + $0x68] sm:$0xff] }
0x1fd4   : > { %v6603_v19 = vcombine.low %v6579_v15, %v6595_v17  ;;  %v6604_v23 = vcombine.high %v6579_v15, %v6595_v17  ;;  %v6619_v20 = vcombine.low %v6586_v16, %v6602_v18  ;;  %v6620_v25 = vcombine.high %v6586_v16, %v6602_v18  ;;  %v7426_v15 = vld [vmem:[%s9767_s20 + $0x60] sm:$0xff]  ;;  %v7425_v16 = vld [vmem:[%s9767_s20 + $0x58] sm:$0xff] }
0x1fd6   : > { %v6611_v26 = vrot.slane %v6603_v19, %v8976_v49  ;;  %v6618_v27 = vrot.slane %v6604_v23, %v8976_v49  ;;  %v6627_v28 = vrot.slane %v6619_v20, %v8976_v49  ;;  %v6634_v29 = vrot.slane %v6620_v25, %v8976_v49 }
0x1fd7   : > { %v6825_v23 = vrot.slane %v9415_v32, %v9204_v58  ;;  %v7422_v58 = vld [vmem:[%s9767_s20 + $0x40] sm:$0xff] }
0x1fd8   : > { %v6639_v30 = vcombine.low %v6611_v26, %v6618_v27  ;;  %v7414_v31 = vcombine.high %v6611_v26, %v6618_v27  ;;  %v6655_v34 = vcombine.low %v6627_v28, %v6634_v29  ;;  %v7415_v35 = vcombine.high %v6627_v28, %v6634_v29  ;;  %v7424_v27 = vld [vmem:[%s9767_s20 + $0x50] sm:$0xff]  ;;  %v7423_v28 = vld [vmem:[%s9767_s20 + $0x48] sm:$0xff]  ;;  %v7420_v29 = vld [vmem:[%s9768_s8 + $0x1] ss:$0 sm:$0xff] }
0x1fda   : > { %v6646_v38 = vrot.slane %v6639_v30, %v8973_v43  ;;  %v6654_v39 = vrot.slane %v7414_v31, %v8973_v43  ;;  %v6662_v41 = vrot.slane %v6655_v34, %v8973_v43  ;;  %v6670_v42 = vrot.slane %v7415_v35, %v8973_v43 }
0x1fdc   : > { %v6672_v22 = vcombine.high %v6646_v38, %v6654_v39  ;;  %v6688_v44 = vcombine.high %v6662_v41, %v6670_v42  ;;  %v6671_v45 = vcombine.low %v6646_v38, %v6654_v39  ;;  %v6687_v59 = vcombine.low %v6662_v41, %v6670_v42 }
0x1fde   : > { %v6686_v60 = vrot.slane %v6672_v22, %v8976_v49  ;;  %v6702_v61 = vrot.slane %v6688_v44, %v8976_v49  ;;  %v6679_v46 = vrot.slane %v6671_v45, %v8976_v49  ;;  %v6695_v47 = vrot.slane %v6687_v59, %v8976_v49  ;;  %v7417_v49 = vld [vmem:[%s9766_s24 + $0x1] ss:$0 sm:$0xff] }
0x1fe0   : > { %v6705_v48 = vcombine.low %v6686_v60, %v6702_v61  ;;  %v6704_v4 = vcombine.high %v6679_v46, %v6695_v47  ;;  %v6703_v50 = vcombine.low %v6679_v46, %v6695_v47  ;;  %v6706_v43 = vcombine.high %v6686_v60, %v6702_v61  ;;  %v7036_v46 = vld [vmem:[%s9776_s14 + $0x18] sm:$0xff]  ;;  %v7035_v47 = vld [vmem:[%s9776_s14 + $0x10] sm:$0xff] }
0x1fe2   : > { %6712 = vrot.lane.b32.xlu0 %v6705_v48, %s9770_s3  ;;  %6708 = vrot.lane.b32.xlu1 %v6704_v4, %s9771_s11  ;;  %v7034_v48 = vld [vmem:[%s9776_s14 + $0x8] sm:$0xff]  ;;  %v7033_v4 = vld [vmem:[%s9776_s14] sm:$0xff]  ;;  %s9779_s11 = sld [smem:[#allocation46_spill]] }
0x1fe6   : > { %6716 = vrot.lane.b32.xlu1 %v6706_v43, %s9772_s15 }
0x1fe8   : > { %s9603_s15 = scalar_lea.hbm %s9779_s11, %s7436_s26 }
0x2054   : > { %v6709_v51 = vpop.permute.xlu1 %6708  ;;  %v6713_v52 = vpop.permute.xlu0 %6712 }
0x2055   : > { %v6719_v53 = vsel %vm1072_vm2, %v6703_v50, %v6709_v51 }
0x2056   : > { %v6720_v54 = vsel %vm2134_vm4, %v6719_v53, %v6713_v52  ;;  %v7026_v52 = vrot.slane %v9415_v32, %v9253_v36 }
0x2058   : > { %v6717_v55 = vpop.permute.xlu1 %6716 }
0x2059   : > { %v6721_v56 = vsel %vm2136_vm5, %v6720_v54, %v6717_v55  ;;  %v7031_v54 = vrot.slane %v9420_v33, %v9253_v36 }
0x205a   : > { %7884 = vmatmul.mubr.msk.f32.vlgmr.msra.gmra.mxu1 %vm851_vm1, %v6721_v56 }
0x205b   : > { %7913 = vmatprep.mubr.msk.f32.mxu1 %vm8473_vm0, %v8472_v0  ;;  %7898 = vmatpush3.msra.mxu1 %v7429_v13 }
0x205c   : > { %7899 = vmatprep.subr.mxu1 %v8472_v0 }
0x205d   : > { %7900 = vmatpush3.msra.mxu1 %v7428_v14 }
0x205e   : > { %7901 = vmatprep.subr.mxu1 %v8472_v0 }
0x205f   : > { %7902 = vmatpush3.msra.mxu1 %v7427_v5 }
0x2060   : > { %7903 = vmatprep.subr.mxu1 %v8472_v0 }
0x2061   : > { %7904 = vmatpush3.msra.mxu1 %v7426_v15 }
0x2062   : > { %7905 = vmatprep.subr.mxu1 %v8472_v0 }
0x2063   : > { %7906 = vmatpush3.msra.mxu1 %v7425_v16 }
0x2064   : > { %7907 = vmatprep.subr.mxu1 %v8472_v0 }
0x2065   : > { %7908 = vmatpush3.msra.mxu1 %v7424_v27 }
0x2066   : > { %7909 = vmatprep.subr.mxu1 %v8472_v0 }
0x2067   : > { %7910 = vmatpush3.msra.mxu1 %v7423_v28 }
0x2068   : > { %7911 = vmatprep.subr.mxu1 %v8472_v0 }
0x2069   : > { %7912 = vmatpush3.msra.mxu1 %v7422_v58 }
0x211a   : > { %v6804_v57 = vpop.f32.mrf.mxu1 }
0x211b   : > { %v6805_v62 = vadd.f32 %v7417_v49, %v6804_v57 }
0x211c   : > { %v7885_v63 = vpop.f32.mrf.mxu1 }
0x211d   : > { %v6808_v1 = vadd.f32 %v6805_v62, %v9426_v40  ;;  %v6833_v40 = vld [vmem:[#allocation16 + $0x20] sm:$0xff] }
0x211e   : > { %7893 = vmatpush3.msra.mxu0 %v6833_v40 }
0x211f   : > { %v6809_v2 = vsel %vm851_vm1, %v6808_v1, 0.0  ;;  %7916 = vmatprep.subr.mxu0 %v8472_v0 }
0x2120   : > { %6810 = vadd.xlane.f32.xlu1 %v6809_v2 }
0x21a9   : > { %v6811_v3 = vpop.xlane.xlu1 %6810 }
0x21aa   : > { %v6812_v6 = vmul.f32 0.03125, %v6811_v3 }
0x21ac   : > { %v6813_v7 = vsub.f32 %v6808_v1, %v6812_v6 }
0x21ae   : > { %v6814_v8 = vmul.f32 %v6813_v7, %v6813_v7 }
0x21b0   : > { %v6815_v9 = vsel %vm851_vm1, %v6814_v8, 0.0 }
0x21b1   : > { %6816 = vadd.xlane.f32.xlu0 %v6815_v9 }
0x223a   : > { %v6817_v17 = vpop.xlane.xlu0 %6816 }
0x223b   : > { %v6818_v18 = vmul.f32 0.03125, %v6817_v17 }
0x223d   : > { %v6819_v19 = vadd.f32 1e-05, %v6818_v18 }
0x223f   : > { %8132 = vrsqrt.f32 %v6819_v19 }
0x224c   : > { %v8133_v20 = vpop.eup %8132 }
0x224d   : > { %v6821_v25 = vmul.f32 %v8133_v20, %v6813_v7 }
0x224f   : > { %v6826_v24 = vmul.f32 %v6825_v23, %v6821_v25 }
0x2251   : > { %v6831_v26 = vadd.f32 %v6830_v21, %v6826_v24 }
0x2253   : > { %7895 = vmatmul.mubr.msk.f32.vlgmr.msra.gmra.mxu0 %vm851_vm1, %v6831_v26 }
0x2254   : > { %7924 = vmatprep.mubr.msk.f32.mxu0 %vm8473_vm0, %v8472_v0  ;;  %7917 = vmatpush3.msra.mxu0 %v7036_v46 }
0x2255   : > { %7918 = vmatprep.subr.mxu0 %v8472_v0 }
0x2256   : > { %7919 = vmatpush3.msra.mxu0 %v7035_v47 }
0x2257   : > { %7920 = vmatprep.subr.mxu0 %v8472_v0 }
0x2258   : > { %7921 = vmatpush3.msra.mxu0 %v7034_v48 }
0x2259   : > { %7922 = vmatprep.subr.mxu0 %v8472_v0  ;;  %v7433_v0 = vld [vmem:[%s9778_s19] ss:$0 sm:$0xff] }
0x225a   : > { %7923 = vmatpush3.msra.mxu0 %v7033_v4 }
0x2313   : > { %v6914_v30 = vpop.f32.mrf.mxu0 }
0x2314   : > { %v6915_v31 = vadd.f32 %v7420_v29, %v6914_v30 }
0x2315   : > { %v7896_v34 = vpop.f32.mrf.mxu0 }
0x2316   : > { %v6918_v35 = vmax.f32 %v6915_v31, 0.0 }
0x2318   : > { %7914 = vmatmul.mubr.msk.f32.vlgmr.msra.gmra.mxu1 %vm3837_vm7, %v6918_v35 }
0x23d8   : > { %v7005_v38 = vpop.f32.mrf.mxu1 }
0x23d9   : > { %v7006_v39 = vadd.f32 %v7431_v37, %v7005_v38 }
0x23da   : > { %v7915_v41 = vpop.f32.mrf.mxu1 }
0x23db   : > { %v7009_v42 = vadd.f32 %v7006_v39, %v6831_v26 }
0x23dd   : > { %v7010_v22 = vsel %vm851_vm1, %v7009_v42, 0.0 }
0x23de   : > { %7011 = vadd.xlane.f32.xlu1 %v7010_v22 }
0x2467   : > { %v7012_v44 = vpop.xlane.xlu1 %7011 }
0x2468   : > { %v7013_v45 = vmul.f32 0.03125, %v7012_v44 }
0x246a   : > { %v7014_v59 = vsub.f32 %v7009_v42, %v7013_v45 }
0x246c   : > { %v7015_v60 = vmul.f32 %v7014_v59, %v7014_v59 }
0x246e   : > { %v7016_v61 = vsel %vm851_vm1, %v7015_v60, 0.0 }
0x246f   : > { %7017 = vadd.xlane.f32.xlu0 %v7016_v61 }
0x24f8   : > { %v7018_v50 = vpop.xlane.xlu0 %7017 }
0x24f9   : > { %v7019_v43 = vmul.f32 0.03125, %v7018_v50 }
0x24fb   : > { %v7020_v51 = vadd.f32 1e-05, %v7019_v43 }
0x24fd   : > { %8134 = vrsqrt.f32 %v7020_v51 }
0x250a   : > { %v8135_v53 = vpop.eup %8134 }
0x250b   : > { %v7022_v55 = vmul.f32 %v8135_v53, %v7014_v59 }
0x250d   : > { %v7027_v56 = vmul.f32 %v7026_v52, %v7022_v55 }
0x250f   : > { %v7032_v49 = vadd.f32 %v7031_v54, %v7027_v56 }
0x2511   : > { %7925 = vmatmul.mubr.msk.f32.vlgmr.msra.gmra.mxu0 %vm851_vm1, %v7032_v49 }
0x25d1   : > { %v7113_v57 = vpop.f32.mrf.mxu0 }
0x25d2   : > { %v7114_v32 = vadd.f32 %v7433_v0, %v7113_v57 }
0x25d3   : > { %v7926_v36 = vpop.f32.mrf.mxu0 }
0x25d4   : > { %7117 = vst [vmem:[%s826_s30] sm:$0xff] %v7114_v32 }
0x25d5   : > { %8390 = shalt.err (!%p8387_p11)
}
0x25d6   : > { %s8391_s28 = scalar_lea.hbm %s9603_s15, 128  ;;  %s8395_s26 = scalar_lea.hbm %s9779_s11, 256 }
0x25d7   : > { %p8392_p12 = scmp.ne.s32.totalorder %s9603_s15, %s8391_s28  ;;  %p8396_p7 = scmp.lt.s32.totalorder %s9603_s15, %s9779_s11 }
0x25d8   : > { %p8397_p10 = scmp.lt.s32.totalorder %s8395_s26, %s8391_s28 }
0x25d9   : > { %p8393_p5 = pnand %p8392_p12, %p9780_p1 }
0x25da   : > { %p8398_p4 = por %p8397_p10, %p8396_p7 }
0x25db   : > { %p8394_p6 = pneg %p8393_p5 }
0x25dd   : > { %p8399_p13 = pnand %p8398_p4, %p8394_p6 }
0x25df   : > { %8402 = shalt.err (!%p8399_p13)
}
0x25e0   : > { %7957 = dma.vmem_to_hbm [thread:$0]  (%p9780_p1), %s7133_s2, 128, %s9603_s15, %s7119_s5  }
0x25e1 PF: > { %s9781_s0 = sld [smem:[#allocation24_spill]]  ;;  %p9784_p8 = scmp.ge.s32.totalorder %s8457_s27, 2 }
0x25e2   : > { %s9782_s3 = sld [smem:[#allocation29_spill]] }
0x25e7   : > { %s7144_s23 = sand.u32 1, %s9781_s0  }
0x25e8   : > { %p9783_p3 = scmp.ne.s32.totalorder %s9782_s3, 0  ;;  %s7145_s29 = scalar_lea.sflag [#allocation4], %s7144_s23 }
0x25ea   : > { %p7989_p0 = pnand %p9784_p8, %p9783_p3 }
0x25ec   : > { %p7990_p9 = pneg %p7989_p0 }
0x25ee   : > { %8440 = dma.done.wait (%p7990_p9), %s7145_s29, 128  }
0x25ef   : > { %8442 = vsyncadd (%p7990_p9), %s7145_s29, 4294967168  ;;  %s9785_s27 = sld [smem:[#allocation26_spill]]  ;;  %s9788_s2 = smov %s8449_s25 }
0x25f0   : > { %s9786_s9 = sld [smem:[#allocation25_spill]] }
0x25f1   : > { %s9787_s26 = sld [smem:[#allocation27_spill]] }
0x25f5   : > { %p40_p2 = scmp.ge.s32.totalorder %s9785_s27, 4  }
0x25f6   : > { %s9789_s25 = smov %s9786_s9 }
0x25f7   :  { %42 = sbr.rel (!%p40_p2) target bundleno = 28 (0x1c), region = 213 }
0x25fc   :  { %7150 = vsyncpa [#allocation3], 1 }
0x25fd   :  { %7152 = vsyncpa [#allocation3 + $0x1], 1 }
0x25fe   :  { %7153 = vsyncpa [#allocation6], 1 }
0x25ff   :  { %7155 = vsyncpa [#allocation6 + $0x1], 1 }
0x2600   :  { %7156 = vsyncpa [#allocation9], 1 }
0x2601   :  { %7157 = vsyncpa [#allocation12], 1 }
0x2602   :  { %7158 = vsyncpa [#allocation15], 1 }
0x2603   :  { %7159 = vsyncpa [#allocation4], 1 }
0x2604   :  { %7161 = vsyncpa [#allocation4 + $0x1], 1 }

</bundles_post_ra>
